<compile_context>
chip_gen: v7x
topology: tpu7x:2x2x1
jax: 0.10.0
libtpu: 0.0.40
codegen_flags: <defaults>
</compile_context>

<pallas_src>
import functools

import jax
import jax.numpy as jnp
from jax.experimental import pallas as pl
from jax.experimental.pallas import tpu as pltpu


_LANES = 128
_OFFSETS = tuple((dy, dx) for dy in range(3) for dx in range(3))  # 3x3 taps


def _compiler_params():
    # Safe scoped-VMEM cap for all of v5e / v6e / v7x (v7x physical = 64 MiB).
    return pltpu.CompilerParams(
        dimension_semantics=("parallel",),
        vmem_limit_bytes=32 * 1024 * 1024,
    )


# ----------------------- fused im2col 3x3 conv kernels -----------------------

def _conv3x3_kernel(xpad_ref, w_ref, b_ref, o_ref, *, relu):
    """One 'same' 3x3 conv layer on a single image (one grid step per batch).

    xpad_ref : (1, H+2, W+2, Cin)   bf16, zero-padded input
    w_ref    : (9, Cin, Cout)       bf16, taps in (dy*3+dx) order (VMEM-resident)
    b_ref    : (1, Cout)            f32
    o_ref    : (1, H+2, W+2, Cout)  bf16, written already zero-padded
    """
    _, hp, wp, cin = xpad_ref.shape
    h, w = hp - 2, wp - 2
    cout = o_ref.shape[-1]

    acc = jnp.zeros((h * w, cout), jnp.float32)
    for k, (dy, dx) in enumerate(_OFFSETS):
        # Static shifted slice -> fused im2col (no HBM cols array).
        patch = xpad_ref[0, dy:dy + h, dx:dx + w, :].reshape(h * w, cin)
        acc = acc + jnp.dot(patch, w_ref[k], preferred_element_type=jnp.float32)

    acc = acc + b_ref[...]
    if relu:
        acc = jnp.maximum(acc, 0.0)

    # Emit zero halo + interior so the next layer reads it directly.
    o_ref[...] = jnp.zeros(o_ref.shape, o_ref.dtype)
    o_ref[0, 1:1 + h, 1:1 + w, :] = acc.reshape(h, w, cout).astype(o_ref.dtype)


def _conv_layer(xpad, w, b, *, relu):
    n, hp, wp, cin = xpad.shape
    h, wd = hp - 2, wp - 2
    cout = w.shape[-1]
    kern = functools.partial(_conv3x3_kernel, relu=relu)
    return pl.pallas_call(
        kern,
        out_shape=jax.ShapeDtypeStruct((n, hp, wp, cout), jnp.bfloat16),
        grid=(n,),
        in_specs=[
            pl.BlockSpec((1, hp, wp, cin), lambda i: (i, 0, 0, 0)),
            pl.BlockSpec((9, cin, cout), lambda i: (0, 0, 0)),   # resident weights
            pl.BlockSpec((1, cout), lambda i: (0, 0)),           # resident bias
        ],
        out_specs=pl.BlockSpec((1, hp, wp, cout), lambda i: (i, 0, 0, 0)),
        compiler_params=_compiler_params(),
        cost_estimate=pl.CostEstimate(
            flops=2 * n * h * wd * 9 * cin * cout,
            transcendentals=0,
            bytes_accessed=n * hp * wp * (cin + cout) * 2 + 9 * cin * cout * 2,
        ),
    )(xpad, w, b)


def _conv3x3_admm_pre_kernel(lam_ref, vpad_ref, w_ref, b_ref,
                             x_ref, u_ref, atb_ref, z_ref, rhs_ref):
    """Final (linear) conv layer fused with the ADMM pre-update:

        dwv = conv3x3(vpad)           (no ReLU)
        z   = (x - u) - dwv
        rhs = z + lam * Atb + u
    """
    _, hp, wp, cin = vpad_ref.shape
    h, w = hp - 2, wp - 2
    cout = z_ref.shape[-1]

    acc = jnp.zeros((h * w, cout), jnp.float32)
    for k, (dy, dx) in enumerate(_OFFSETS):
        patch = vpad_ref[0, dy:dy + h, dx:dx + w, :].reshape(h * w, cin)
        acc = acc + jnp.dot(patch, w_ref[k], preferred_element_type=jnp.float32)
    dwv = acc + b_ref[...]

    lam = lam_ref[0]
    x = x_ref[0].reshape(h * w, cout)
    u = u_ref[0].reshape(h * w, cout)
    atb = atb_ref[0].reshape(h * w, cout)

    z = (x - u) - dwv
    rhs = z + lam * atb + u
    z_ref[0] = z.reshape(h, w, cout)
    rhs_ref[0] = rhs.reshape(h, w, cout)


def _conv_admm_pre(lam, vpad, w, b, x_h, u_h, atb_h):
    n, hp, wp, cin = vpad.shape
    h, wd = hp - 2, wp - 2
    cout = x_h.shape[-1]
    img_spec = pl.BlockSpec((1, h, wd, cout), lambda i: (i, 0, 0, 0))
    out_shape = (jax.ShapeDtypeStruct((n, h, wd, cout), jnp.float32),
                 jax.ShapeDtypeStruct((n, h, wd, cout), jnp.float32))
    return pl.pallas_call(
        _conv3x3_admm_pre_kernel,
        out_shape=out_shape,
        grid=(n,),
        in_specs=[
            pl.BlockSpec(memory_space=pltpu.MemorySpace.SMEM),        # lam (1,)
            pl.BlockSpec((1, hp, wp, cin), lambda i: (i, 0, 0, 0)),   # v (padded, bf16)
            pl.BlockSpec((9, cin, cout), lambda i: (0, 0, 0)),        # resident weights
            pl.BlockSpec((1, cout), lambda i: (0, 0)),                # resident bias
            img_spec,                                                 # x
            img_spec,                                                 # u
            img_spec,                                                 # Atb
        ],
        out_specs=(img_spec, img_spec),
        compiler_params=_compiler_params(),
        cost_estimate=pl.CostEstimate(
            flops=2 * n * h * wd * 9 * cin * cout + 6 * n * h * wd * cout,
            transcendentals=0,
            bytes_accessed=n * (hp * wp * cin * 2 + 5 * h * wd * cout * 4),
        ),
    )(lam, vpad, w, b, x_h, u_h, atb_h)


# ----------------------- tiled lane-dense elementwise ------------------------

def _admm_post_kernel(u_ref, z_ref, xnew_ref, unew_ref):
    # u_new = u + z - x_new
    unew_ref[...] = u_ref[...] + z_ref[...] - xnew_ref[...]


def _flatten_lane_dense(x, max_row_tile=512):
    """Zero-padded, lane-dense (rows, 128) flatten; returns (flat2d, row_tile)."""
    n = x.size
    rows = -(-n // _LANES)
    if rows <= max_row_tile:
        row_tile = -(-rows // 8) * 8          # single sublane-aligned tile
    else:
        row_tile = max_row_tile               # multiple of 8
    rows = -(-rows // row_tile) * row_tile
    flat = jnp.ravel(x)
    pad = rows * _LANES - n
    if pad:
        flat = jnp.concatenate([flat, jnp.zeros((pad,), flat.dtype)])
    return flat.reshape(rows, _LANES), row_tile


def _admm_post(u_h, z_h, xnew_h):
    shape = u_h.shape
    uf, row_tile = _flatten_lane_dense(u_h)
    zf, _ = _flatten_lane_dense(z_h)
    xf, _ = _flatten_lane_dense(xnew_h)
    rows = uf.shape[0]
    spec = pl.BlockSpec((row_tile, _LANES), lambda i: (i, 0))
    out = pl.pallas_call(
        _admm_post_kernel,
        out_shape=jax.ShapeDtypeStruct((rows, _LANES), jnp.float32),
        grid=(rows // row_tile,),
        in_specs=[spec, spec, spec],
        out_specs=spec,
        input_output_aliases={0: 0},          # u_new written into u's buffer
        compiler_params=_compiler_params(),
        cost_estimate=pl.CostEstimate(
            flops=2 * rows * _LANES,
            transcendentals=0,
            bytes_accessed=4 * rows * _LANES * 4),
    )(uf, zf, xf)
    return out.reshape(-1)[:u_h.size].reshape(shape)


# ------------------------ dwblock (CNN denoiser) params -----------------------

def init_dw_params(key, input_channels, features, output_channels, n_layers):
    """conv3x3 -> ReLU, (n_layers-2) x [conv3x3 -> ReLU], conv3x3 (linear).

    Weights stored as (9, cin, cout) bf16 in (dy*3+dx) tap order (matches the
    in-kernel shifted-slice order); biases as (1, cout) f32.
    Note: importing PyTorch Conv2d weights (cout, cin, 3, 3) requires
    w.permute(2, 3, 1, 0) before reshaping to (9, cin, cout).
    """
    dims = [input_channels] + [features] * (n_layers - 1) + [output_channels]
    params = []
    for li in range(n_layers):
        cin, cout = dims[li], dims[li + 1]
        key, k1, k2 = jax.random.split(key, 3)
        w = jax.random.normal(k1, (3, 3, cin, cout), jnp.float32)
        w = w * (0.1 / jnp.sqrt(9.0 * cin))
        b = jax.random.normal(k2, (1, cout), jnp.float32) * 0.01
        params.append((w.reshape(9, cin, cout).astype(jnp.bfloat16), b))
    return params


# ---------------------- SENSE operator A (data consistency) -------------------

def _r2c(x_nhwc):   # (N, H, W, 2) float32 -> (N, H, W) complex64
    return (x_nhwc[..., 0] + 1j * x_nhwc[..., 1]).astype(jnp.complex64)


def _c2r(x):        # (N, H, W) complex -> (N, H, W, 2) float32
    return jnp.stack([x.real, x.imag], axis=-1).astype(jnp.float32)


class SenseOp:
    """Cartesian multi-coil SENSE:  A(x) = mask * FFT2(csm * x)."""

    n_cg = 8

    def AH(self, y, csm, mask):
        imgs = jnp.fft.ifft2(mask[:, None] * y, norm="ortho")
        return jnp.sum(jnp.conj(csm) * imgs, axis=1)

    def AHA(self, v, csm, mask):
        k = mask[:, None] * jnp.fft.fft2(csm * v[:, None], norm="ortho")
        return self.AH(k, csm, mask)

    def inv(self, x, rhs, lam, csm, mask):
        """Solve (I + lam * A^H A) v = rhs with batched CG, warm start at x."""
        # TODO(synk): FFT has no Pallas TPU equivalent; A.inv stays in plain JAX.
        x_c, rhs_c = _r2c(x), _r2c(rhs)

        def op(v):
            return v + lam * self.AHA(v, csm, mask)

        def dot(a, b):
            return jnp.sum(jnp.conj(a) * b, axis=(-2, -1), keepdims=True).real

        v = x_c
        r = rhs_c - op(v)
        p = r
        rs = dot(r, r)
        for _ in range(self.n_cg):
            ap = op(p)
            alpha = rs / (dot(p, ap) + 1e-12)
            v = v + alpha * p
            r = r - alpha * ap
            rs_new = dot(r, r)
            p = r + (rs_new / (rs + 1e-12)) * p
            rs = rs_new
        return _c2r(v)


# --------------------------------- admmBlock -----------------------------------

class AdmmBlockPallas:
    def __init__(self, A, lam, input_channels, features, output_channels,
                 number_of_layers, spectral_norm=False,
                 key=jax.random.PRNGKey(0)):
        # TODO(synk): spectral_norm is a training-time weight reparameterization; not applied.
        self.A = A
        self.lam = jnp.float32(lam)            # nn.Parameter(lam)
        self.alpha = jnp.float32(1.0)          # defined but unused (as in reference forward)
        self.dw_params = init_dw_params(key, input_channels, features,
                                        output_channels, number_of_layers)

    def __call__(self, x, u, Atb, csm, mask):
        # x, u, Atb: NCHW float32 (PyTorch convention); NHWC internally.
        x_h = jnp.transpose(x, (0, 2, 3, 1))
        u_h = jnp.transpose(u, (0, 2, 3, 1))
        atb_h = jnp.transpose(Atb, (0, 2, 3, 1))

        # v = x - u in plain JAX: XLA fuses it with the bf16 cast + zero pad
        # feeding the first conv layer (no standalone elementwise kernel).
        v_pad = jnp.pad((x_h - u_h).astype(jnp.bfloat16),
                        ((0, 0), (1, 1), (1, 1), (0, 0)))

        # dw conv stack: fused-im2col Pallas kernels, bf16 MXU, f32 accumulation.
        h_pad = v_pad
        for w, b in self.dw_params[:-1]:
            h_pad = _conv_layer(h_pad, w, b, relu=True)

        # Last (linear) conv layer fused with the ADMM pre-update -> z, rhs.
        lam_arr = jnp.reshape(self.lam, (1,))
        w_last, b_last = self.dw_params[-1]
        z_h, rhs_h = _conv_admm_pre(lam_arr, h_pad, w_last, b_last,
                                    x_h, u_h, atb_h)

        # x = A.inv(x, rhs, lam, csm, mask)    (plain JAX FFT-based CG)
        x_new_h = self.A.inv(x_h, rhs_h, self.lam, csm, mask)

        # u = u + z - x                        (tiled lane-dense Pallas kernel)
        u_new_h = _admm_post(u_h, z_h, x_new_h)

        x_new = jnp.transpose(x_new_h, (0, 3, 1, 2))
        u_new = jnp.transpose(u_new_h, (0, 3, 1, 2))
        return x_new, u_new


# --------------------------------- demo --------------------------------------

if __name__ == "__main__":
    key = jax.random.PRNGKey(0)
    k = jax.random.split(key, 8)

    N, C, H, W = 2, 2, 16, 16            # C=2: real/imag channels
    n_coil = 4
    features, n_layers = 8, 3
    lam = 0.05

    A = SenseOp()
    block = AdmmBlockPallas(A, lam, input_channels=C, features=features,
                            output_channels=C, number_of_layers=n_layers,
                            key=k[0])

    # synthetic multi-coil SENSE data
    csm = (jax.random.normal(k[1], (N, n_coil, H, W)) +
           1j * jax.random.normal(k[2], (N, n_coil, H, W))).astype(jnp.complex64)
    csm = csm / jnp.sqrt(jnp.sum(jnp.abs(csm) ** 2, axis=1, keepdims=True))
    mask = (jax.random.uniform(k[3], (N, H, W)) < 0.4).astype(jnp.float32)

    x_true = (jax.random.normal(k[4], (N, H, W)) +
              1j * jax.random.normal(k[5], (N, H, W))).astype(jnp.complex64)
    b = mask[:, None] * jnp.fft.fft2(csm * x_true[:, None], norm="ortho")
    Atb_c = A.AH(b, csm, mask)                         # (N, H, W) complex
    Atb = jnp.transpose(_c2r(Atb_c), (0, 3, 1, 2))     # NCHW, C=2

    x0 = Atb                                           # standard init x0 = A^H b
    u0 = jnp.zeros_like(x0)

    x1, u1 = block(x0, u0, Atb, csm, mask)
    jax.block_until_ready((x1, u1))

    assert x1.shape == (N, C, H, W) and u1.shape == (N, C, H, W)
    assert bool(jnp.all(jnp.isfinite(x1))) and bool(jnp.all(jnp.isfinite(u1)))
    print("KERNEL_OK")
</pallas_src>

<mosaic_0001>
module attributes {stable_mosaic.version = 11 : i64} {
  func.func @_conv3x3_kernel(%arg0: i32, %arg1: memref<1x18x18x2xbf16, #tpu.memory_space<vmem>>, %arg2: memref<9x2x8xbf16, #tpu.memory_space<vmem>>, %arg3: memref<1x8xf32, #tpu.memory_space<vmem>>, %arg4: memref<1x18x18x8xbf16, #tpu.memory_space<vmem>>) attributes {dimension_semantics = [#tpu.dimension_semantics<parallel>], iteration_bounds = array<i64: 2>, scalar_prefetch = 0 : i64, scratch_operands = 0 : i64, tpu.core_type = #tpu.core_type<tc>, window_params = [{transform_indices = @transform_0, window_bounds = array<i64: 1, 18, 18, 2>}, {pipeline_mode = #tpu.pipeline_mode<synchronous>, transform_indices = @transform_1, window_bounds = array<i64: 9, 2, 8>}, {pipeline_mode = #tpu.pipeline_mode<synchronous>, transform_indices = @transform_2, window_bounds = array<i64: 1, 8>}, {transform_indices = @transform_3, window_bounds = array<i64: 1, 18, 18, 8>}]} {
    %cst = arith.constant 0.000000e+00 : f32
    %0 = vector.broadcast %cst : f32 to vector<256x8xf32>
    %c0 = arith.constant 0 : index
    %c0_0 = arith.constant 0 : index
    %c0_1 = arith.constant 0 : index
    %c0_2 = arith.constant 0 : index
    %1 = vector.load %arg1[%c0, %c0_0, %c0_1, %c0_2] : memref<1x18x18x2xbf16, #tpu.memory_space<vmem>>, vector<1x16x16x2xbf16>
    %2 = vector.shape_cast %1 : vector<1x16x16x2xbf16> to vector<16x16x2xbf16>
    %3 = vector.shape_cast %2 : vector<16x16x2xbf16> to vector<256x2xbf16>
    %c0_3 = arith.constant 0 : index
    %c0_4 = arith.constant 0 : index
    %c0_5 = arith.constant 0 : index
    %4 = vector.load %arg2[%c0_3, %c0_4, %c0_5] : memref<9x2x8xbf16, #tpu.memory_space<vmem>>, vector<1x2x8xbf16>
    %5 = vector.shape_cast %4 : vector<1x2x8xbf16> to vector<2x8xbf16>
    %cst_6 = arith.constant dense<0.000000e+00> : vector<256x8xf32>
    %6 = tpu.matmul %3, %5, %cst_6 {dimension_numbers = #tpu.dot_dimension_numbers<[1], [0], [0], [1], [0, 0, 1, 1], [], []>} : vector<256x2xbf16>, vector<2x8xbf16>, vector<256x8xf32> -> vector<256x8xf32>
    %7 = arith.addf %0, %6 : vector<256x8xf32>
    %c0_7 = arith.constant 0 : index
    %c0_8 = arith.constant 0 : index
    %c1 = arith.constant 1 : index
    %c0_9 = arith.constant 0 : index
    %8 = vector.load %arg1[%c0_7, %c0_8, %c1, %c0_9] : memref<1x18x18x2xbf16, #tpu.memory_space<vmem>>, vector<1x16x16x2xbf16>
    %9 = vector.shape_cast %8 : vector<1x16x16x2xbf16> to vector<16x16x2xbf16>
    %10 = vector.shape_cast %9 : vector<16x16x2xbf16> to vector<256x2xbf16>
    %c1_10 = arith.constant 1 : index
    %c0_11 = arith.constant 0 : index
    %c0_12 = arith.constant 0 : index
    %11 = vector.load %arg2[%c1_10, %c0_11, %c0_12] : memref<9x2x8xbf16, #tpu.memory_space<vmem>>, vector<1x2x8xbf16>
    %12 = vector.shape_cast %11 : vector<1x2x8xbf16> to vector<2x8xbf16>
    %cst_13 = arith.constant dense<0.000000e+00> : vector<256x8xf32>
    %13 = tpu.matmul %10, %12, %cst_13 {dimension_numbers = #tpu.dot_dimension_numbers<[1], [0], [0], [1], [0, 0, 1, 1], [], []>} : vector<256x2xbf16>, vector<2x8xbf16>, vector<256x8xf32> -> vector<256x8xf32>
    %14 = arith.addf %7, %13 : vector<256x8xf32>
    %c0_14 = arith.constant 0 : index
    %c0_15 = arith.constant 0 : index
    %c2 = arith.constant 2 : index
    %c0_16 = arith.constant 0 : index
    %15 = vector.load %arg1[%c0_14, %c0_15, %c2, %c0_16] : memref<1x18x18x2xbf16, #tpu.memory_space<vmem>>, vector<1x16x16x2xbf16>
    %16 = vector.shape_cast %15 : vector<1x16x16x2xbf16> to vector<16x16x2xbf16>
    %17 = vector.shape_cast %16 : vector<16x16x2xbf16> to vector<256x2xbf16>
    %c2_17 = arith.constant 2 : index
    %c0_18 = arith.constant 0 : index
    %c0_19 = arith.constant 0 : index
    %18 = vector.load %arg2[%c2_17, %c0_18, %c0_19] : memref<9x2x8xbf16, #tpu.memory_space<vmem>>, vector<1x2x8xbf16>
    %19 = vector.shape_cast %18 : vector<1x2x8xbf16> to vector<2x8xbf16>
    %cst_20 = arith.constant dense<0.000000e+00> : vector<256x8xf32>
    %20 = tpu.matmul %17, %19, %cst_20 {dimension_numbers = #tpu.dot_dimension_numbers<[1], [0], [0], [1], [0, 0, 1, 1], [], []>} : vector<256x2xbf16>, vector<2x8xbf16>, vector<256x8xf32> -> vector<256x8xf32>
    %21 = arith.addf %14, %20 : vector<256x8xf32>
    %c0_21 = arith.constant 0 : index
    %c1_22 = arith.constant 1 : index
    %c0_23 = arith.constant 0 : index
    %c0_24 = arith.constant 0 : index
    %22 = vector.load %arg1[%c0_21, %c1_22, %c0_23, %c0_24] : memref<1x18x18x2xbf16, #tpu.memory_space<vmem>>, vector<1x16x16x2xbf16>
    %23 = vector.shape_cast %22 : vector<1x16x16x2xbf16> to vector<16x16x2xbf16>
    %24 = vector.shape_cast %23 : vector<16x16x2xbf16> to vector<256x2xbf16>
    %c3 = arith.constant 3 : index
    %c0_25 = arith.constant 0 : index
    %c0_26 = arith.constant 0 : index
    %25 = vector.load %arg2[%c3, %c0_25, %c0_26] : memref<9x2x8xbf16, #tpu.memory_space<vmem>>, vector<1x2x8xbf16>
    %26 = vector.shape_cast %25 : vector<1x2x8xbf16> to vector<2x8xbf16>
    %cst_27 = arith.constant dense<0.000000e+00> : vector<256x8xf32>
    %27 = tpu.matmul %24, %26, %cst_27 {dimension_numbers = #tpu.dot_dimension_numbers<[1], [0], [0], [1], [0, 0, 1, 1], [], []>} : vector<256x2xbf16>, vector<2x8xbf16>, vector<256x8xf32> -> vector<256x8xf32>
    %28 = arith.addf %21, %27 : vector<256x8xf32>
    %c0_28 = arith.constant 0 : index
    %c1_29 = arith.constant 1 : index
    %c1_30 = arith.constant 1 : index
    %c0_31 = arith.constant 0 : index
    %29 = vector.load %arg1[%c0_28, %c1_29, %c1_30, %c0_31] : memref<1x18x18x2xbf16, #tpu.memory_space<vmem>>, vector<1x16x16x2xbf16>
    %30 = vector.shape_cast %29 : vector<1x16x16x2xbf16> to vector<16x16x2xbf16>
    %31 = vector.shape_cast %30 : vector<16x16x2xbf16> to vector<256x2xbf16>
    %c4 = arith.constant 4 : index
    %c0_32 = arith.constant 0 : index
    %c0_33 = arith.constant 0 : index
    %32 = vector.load %arg2[%c4, %c0_32, %c0_33] : memref<9x2x8xbf16, #tpu.memory_space<vmem>>, vector<1x2x8xbf16>
    %33 = vector.shape_cast %32 : vector<1x2x8xbf16> to vector<2x8xbf16>
    %cst_34 = arith.constant dense<0.000000e+00> : vector<256x8xf32>
    %34 = tpu.matmul %31, %33, %cst_34 {dimension_numbers = #tpu.dot_dimension_numbers<[1], [0], [0], [1], [0, 0, 1, 1], [], []>} : vector<256x2xbf16>, vector<2x8xbf16>, vector<256x8xf32> -> vector<256x8xf32>
    %35 = arith.addf %28, %34 : vector<256x8xf32>
    %c0_35 = arith.constant 0 : index
    %c1_36 = arith.constant 1 : index
    %c2_37 = arith.constant 2 : index
    %c0_38 = arith.constant 0 : index
    %36 = vector.load %arg1[%c0_35, %c1_36, %c2_37, %c0_38] : memref<1x18x18x2xbf16, #tpu.memory_space<vmem>>, vector<1x16x16x2xbf16>
    %37 = vector.shape_cast %36 : vector<1x16x16x2xbf16> to vector<16x16x2xbf16>
    %38 = vector.shape_cast %37 : vector<16x16x2xbf16> to vector<256x2xbf16>
    %c5 = arith.constant 5 : index
    %c0_39 = arith.constant 0 : index
    %c0_40 = arith.constant 0 : index
    %39 = vector.load %arg2[%c5, %c0_39, %c0_40] : memref<9x2x8xbf16, #tpu.memory_space<vmem>>, vector<1x2x8xbf16>
    %40 = vector.shape_cast %39 : vector<1x2x8xbf16> to vector<2x8xbf16>
    %cst_41 = arith.constant dense<0.000000e+00> : vector<256x8xf32>
    %41 = tpu.matmul %38, %40, %cst_41 {dimension_numbers = #tpu.dot_dimension_numbers<[1], [0], [0], [1], [0, 0, 1, 1], [], []>} : vector<256x2xbf16>, vector<2x8xbf16>, vector<256x8xf32> -> vector<256x8xf32>
    %42 = arith.addf %35, %41 : vector<256x8xf32>
    %c0_42 = arith.constant 0 : index
    %c2_43 = arith.constant 2 : index
    %c0_44 = arith.constant 0 : index
    %c0_45 = arith.constant 0 : index
    %43 = vector.load %arg1[%c0_42, %c2_43, %c0_44, %c0_45] : memref<1x18x18x2xbf16, #tpu.memory_space<vmem>>, vector<1x16x16x2xbf16>
    %44 = vector.shape_cast %43 : vector<1x16x16x2xbf16> to vector<16x16x2xbf16>
    %45 = vector.shape_cast %44 : vector<16x16x2xbf16> to vector<256x2xbf16>
    %c6 = arith.constant 6 : index
    %c0_46 = arith.constant 0 : index
    %c0_47 = arith.constant 0 : index
    %46 = vector.load %arg2[%c6, %c0_46, %c0_47] : memref<9x2x8xbf16, #tpu.memory_space<vmem>>, vector<1x2x8xbf16>
    %47 = vector.shape_cast %46 : vector<1x2x8xbf16> to vector<2x8xbf16>
    %cst_48 = arith.constant dense<0.000000e+00> : vector<256x8xf32>
    %48 = tpu.matmul %45, %47, %cst_48 {dimension_numbers = #tpu.dot_dimension_numbers<[1], [0], [0], [1], [0, 0, 1, 1], [], []>} : vector<256x2xbf16>, vector<2x8xbf16>, vector<256x8xf32> -> vector<256x8xf32>
    %49 = arith.addf %42, %48 : vector<256x8xf32>
    %c0_49 = arith.constant 0 : index
    %c2_50 = arith.constant 2 : index
    %c1_51 = arith.constant 1 : index
    %c0_52 = arith.constant 0 : index
    %50 = vector.load %arg1[%c0_49, %c2_50, %c1_51, %c0_52] : memref<1x18x18x2xbf16, #tpu.memory_space<vmem>>, vector<1x16x16x2xbf16>
    %51 = vector.shape_cast %50 : vector<1x16x16x2xbf16> to vector<16x16x2xbf16>
    %52 = vector.shape_cast %51 : vector<16x16x2xbf16> to vector<256x2xbf16>
    %c7 = arith.constant 7 : index
    %c0_53 = arith.constant 0 : index
    %c0_54 = arith.constant 0 : index
    %53 = vector.load %arg2[%c7, %c0_53, %c0_54] : memref<9x2x8xbf16, #tpu.memory_space<vmem>>, vector<1x2x8xbf16>
    %54 = vector.shape_cast %53 : vector<1x2x8xbf16> to vector<2x8xbf16>
    %cst_55 = arith.constant dense<0.000000e+00> : vector<256x8xf32>
    %55 = tpu.matmul %52, %54, %cst_55 {dimension_numbers = #tpu.dot_dimension_numbers<[1], [0], [0], [1], [0, 0, 1, 1], [], []>} : vector<256x2xbf16>, vector<2x8xbf16>, vector<256x8xf32> -> vector<256x8xf32>
    %56 = arith.addf %49, %55 : vector<256x8xf32>
    %c0_56 = arith.constant 0 : index
    %c2_57 = arith.constant 2 : index
    %c2_58 = arith.constant 2 : index
    %c0_59 = arith.constant 0 : index
    %57 = vector.load %arg1[%c0_56, %c2_57, %c2_58, %c0_59] : memref<1x18x18x2xbf16, #tpu.memory_space<vmem>>, vector<1x16x16x2xbf16>
    %58 = vector.shape_cast %57 : vector<1x16x16x2xbf16> to vector<16x16x2xbf16>
    %59 = vector.shape_cast %58 : vector<16x16x2xbf16> to vector<256x2xbf16>
    %c8 = arith.constant 8 : index
    %c0_60 = arith.constant 0 : index
    %c0_61 = arith.constant 0 : index
    %60 = vector.load %arg2[%c8, %c0_60, %c0_61] : memref<9x2x8xbf16, #tpu.memory_space<vmem>>, vector<1x2x8xbf16>
    %61 = vector.shape_cast %60 : vector<1x2x8xbf16> to vector<2x8xbf16>
    %cst_62 = arith.constant dense<0.000000e+00> : vector<256x8xf32>
    %62 = tpu.matmul %59, %61, %cst_62 {dimension_numbers = #tpu.dot_dimension_numbers<[1], [0], [0], [1], [0, 0, 1, 1], [], []>} : vector<256x2xbf16>, vector<2x8xbf16>, vector<256x8xf32> -> vector<256x8xf32>
    %63 = arith.addf %56, %62 : vector<256x8xf32>
    %c0_63 = arith.constant 0 : index
    %c0_64 = arith.constant 0 : index
    %64 = vector.load %arg3[%c0_63, %c0_64] : memref<1x8xf32, #tpu.memory_space<vmem>>, vector<1x8xf32>
    %65 = vector.broadcast %64 : vector<1x8xf32> to vector<256x8xf32>
    %66 = arith.addf %63, %65 : vector<256x8xf32>
    %cst_65 = arith.constant 0.000000e+00 : f32
    %67 = vector.broadcast %cst_65 : f32 to vector<256x8xf32>
    %68 = arith.maximumf %66, %67 : vector<256x8xf32>
    %cst_66 = arith.constant 0.000000e+00 : bf16
    %69 = vector.broadcast %cst_66 : bf16 to vector<1x18x18x8xbf16>
    %c0_67 = arith.constant 0 : index
    %c0_68 = arith.constant 0 : index
    %c0_69 = arith.constant 0 : index
    %c0_70 = arith.constant 0 : index
    %70 = vector.load %arg4[%c0_67, %c0_68, %c0_69, %c0_70] : memref<1x18x18x8xbf16, #tpu.memory_space<vmem>>, vector<1x18x18x8xbf16>
    tpu.vector_store %arg4[%c0_67, %c0_68, %c0_69, %c0_70], %69 {strides = array<i32>} : memref<1x18x18x8xbf16, #tpu.memory_space<vmem>>, vector<1x18x18x8xbf16>,
    %71 = vector.shape_cast %68 : vector<256x8xf32> to vector<16x16x8xf32>
    %72 = arith.truncf %71 : vector<16x16x8xf32> to vector<16x16x8xbf16>
    %c0_71 = arith.constant 0 : index
    %c1_72 = arith.constant 1 : index
    %c1_73 = arith.constant 1 : index
    %c0_74 = arith.constant 0 : index
    %73 = vector.load %arg4[%c0_71, %c1_72, %c1_73, %c0_74] : memref<1x18x18x8xbf16, #tpu.memory_space<vmem>>, vector<1x16x16x8xbf16>
    %74 = vector.shape_cast %73 : vector<1x16x16x8xbf16> to vector<16x16x8xbf16>
    %75 = vector.shape_cast %72 : vector<16x16x8xbf16> to vector<1x16x16x8xbf16>
    tpu.vector_store %arg4[%c0_71, %c1_72, %c1_73, %c0_74], %75 {strides = array<i32>} : memref<1x18x18x8xbf16, #tpu.memory_space<vmem>>, vector<1x16x16x8xbf16>,
    return
  }
  func.func @transform_0(%arg0: i32) -> (i32, i32, i32, i32) {
    %c0_i32 = arith.constant 0 : i32
    %c0_i32_0 = arith.constant 0 : i32
    %c0_i32_1 = arith.constant 0 : i32
    %c0_i32_2 = arith.constant 0 : i32
    return %arg0, %c0_i32, %c0_i32_0, %c0_i32_1 : i32, i32, i32, i32
  }
  func.func @transform_1(%arg0: i32) -> (i32, i32, i32) {
    %c0_i32 = arith.constant 0 : i32
    %c0_i32_0 = arith.constant 0 : i32
    %c0_i32_1 = arith.constant 0 : i32
    %c0_i32_2 = arith.constant 0 : i32
    return %c0_i32, %c0_i32_0, %c0_i32_1 : i32, i32, i32
  }
  func.func @transform_2(%arg0: i32) -> (i32, i32) {
    %c0_i32 = arith.constant 0 : i32
    %c0_i32_0 = arith.constant 0 : i32
    %c0_i32_1 = arith.constant 0 : i32
    return %c0_i32, %c0_i32_0 : i32, i32
  }
  func.func @transform_3(%arg0: i32) -> (i32, i32, i32, i32) {
    %c0_i32 = arith.constant 0 : i32
    %c0_i32_0 = arith.constant 0 : i32
    %c0_i32_1 = arith.constant 0 : i32
    %c0_i32_2 = arith.constant 0 : i32
    return %arg0, %c0_i32, %c0_i32_0, %c0_i32_1 : i32, i32, i32, i32
  }
}

</mosaic_0001>

<bundles_post_ra>
// kernel: tpu_custom_call.1
= control target key start
LH: loop header
LB: loop body
LE: loop exit
PB: predicated region body
PF: predicated region fallthrough
CT: control target
= control target key end

     0   :  { %s7011_s12 = smov 0   ;;  %s9205_s0 = inlined_call_operand.vmem [shape: bf16[2,18,18,2], index: 0, kind: input, shape index: {}]   ;;  %s9206_s1 = inlined_call_operand.vmem [shape: bf16[9,2,8], index: 1, kind: input, shape index: {}]   ;;  %s9207_s2 = inlined_call_operand.vmem [shape: f32[1,8], index: 2, kind: input, shape index: {}]   ;;  %s9208_s3 = inlined_call_operand.vmem [shape: bf16[2,18,18,8], index: 3, kind: output, shape index: {}]  }
   0x1 LB: > { %s5450_s13 = sadd.s32 4294967295, %s6988_s12   ;;  %p5454_p0 = scmp.ge.s32.totalorder %s6988_s12, 1  ;;  %s6988_s12 = sphi %s7011_s12, %s13_s12  }
   0x2   : > { %p137_p1 = scmp.lt.s32.totalorder %s6988_s12, 3 }
   0x4   : > { %p138_p2 = pnand %p5454_p0, %p137_p1 }
   0x6   : > { %141 = sbr.rel (%p138_p2) target bundleno = 615 (0x267), region = 32 }
   0xd   : > { %v5457_v0 = vld [vmem:[%s9206_s1 + $0x1] sm:$0x1]  ;;  %vm707_vm0 = vcmask 1040384   ;;  %v5684_v1 = vld [vmem:[%s9206_s1 + $0x4] sm:$0x1]  ;;  %p161_p3 = scmp.lt.s32.totalorder %s5450_s13, 1 }
   0xe   : > { %6857 = vmatprep.subr.msk.bf16.mxu1 %vm707_vm0, %v5457_v0  ;;  %6861 = vmatprep.subr.msk.bf16.mxu0 %vm707_vm0, %v5684_v1  ;;  %v709_v2 = vsel %vm707_vm0, %v5457_v0, 0  ;;  %v7029_v3 = vsel %vm707_vm0, %v5684_v1, 0  ;;  %v204_v4 = vld [vmem:[%s9206_s1] sm:$0x1]  ;;  %v5749_v5 = vld [vmem:[%s9206_s1 + $0x5] sm:$0x1] }
   0xf   : > { %9222 = vst [vmem:[#allocation2_spill] sm:$0xff] %v7029_v3  ;;  %6294 = vmatpush3.bf16.msra.mxu1 %v709_v2  ;;  %6430 = vmatpush3.bf16.msra.mxu0 %v7029_v3  ;;  %s9283_s13 = smov (!%p161_p3, %s5450_s13), 1  ;;  %vm221_vm1 = vsmask.f32 3328  ;;  %vm222_vm2 = vsmask.f32 7440 }
  0x10   : > { %6858 = vmatprep.subr.msk.bf16.mxu1 %vm707_vm0, %v204_v4  ;;  %6863 = vmatprep.subr.msk.bf16.mxu0 %vm707_vm0, %v5749_v5  ;;  %s6867_s22 = smul.u32 216, %s9283_s13  ;;  %vm658_vm3 = vcmask 15360   ;;  %v7061_v17 = vsel %vm707_vm0, %v204_v4, 0  ;;  %v7067_v26 = vld [vmem:[%s9206_s1 + $0x6] sm:$0x1]  ;;  %vm7074_vm4 = vmor %vm221_vm1, %vm222_vm2  ;;  %v7080_v37 = vsel %vm707_vm0, %v5749_v5, 0 }
  0x11   : > { %v7084_v41 = vsel %vm707_vm0, %v7067_v26, 0  ;;  %vm1212_vm5 = vcmask 1042432   ;;  %vm1213_vm6 = vcmask 1046532   ;;  %vm4802_vm8 = vcmask 60416  }
  0x12   : > { %s7048_s25 = scalar_lea.vmem %s9205_s0, %s6867_s22  ;;  %vm7300_vm7 = vmor %vm1212_vm5, %vm1213_vm6  ;;  %s8729_s17 = scalar_lea.vmem %s9208_s3, %s6867_s22  ;;  %v6990_v32 = vmov 0   ;;  %vm4805_vm9 = vcmask 57344   ;;  %vm5279_vm10 = vsmask.f32 7938  ;;  %vm4954_vm11 = vsmask.f32 256 }
  0x13   : > { %v172_v6 = vld [vmem:[%s7048_s25] sm:$0xf]  ;;  %v173_v7 = vld [vmem:[%s7048_s25 + $0x4] sm:$0xf]  ;;  %v205_v8 = vld [vmem:[%s7048_s25 + $0x8] sm:$0x1] }
  0x14   : > { %v225_v9 = vshrl.u32 %v172_v6, 16  ;;  %v228_v10 = vshll.u32 %v172_v6, 16  ;;  %v234_v11 = vshll.u32 %v173_v7, 16  ;;  %v238_v12 = vshrl.u32 %v173_v7, 16  ;;  %v5636_v13 = vld [vmem:[%s7048_s25 + $0xc] sm:$0xf]  ;;  %vm8871_vm13 = vmand %vm4802_vm8, %vm5279_vm10 }
  0x15   : > { %v244_v14 = vshll.u32 %v205_v8, 16  ;;  %v7055_v15 = vld [vmem:[%s7048_s25 + $0x10] sm:$0xf]  ;;  %v7058_v16 = vld [vmem:[%s7048_s25 + $0x14] sm:$0x1]  ;;  %v2029_v23 = vshrl.u32 %v5636_v13, 16  ;;  %vm8886_vm15 = vmand %vm4805_vm9, %vm4954_vm11 }
  0x16   : > { %v227_v18 = vrot.slane %v225_v9, 4  ;;  %v230_v19 = vrot.slane %v228_v10, 5  ;;  %v236_v20 = vrot.slane %v234_v11, 5  ;;  %v240_v21 = vrot.slane %v238_v12, 4  ;;  %v174_v31 = vld [vmem:[%s7048_s25 + $0xc] sm:$0xf] }
  0x17   : > { %v246_v22 = vrot.slane %v244_v14, 5  ;;  %v2032_v24 = vshll.u32 %v5636_v13, 16  ;;  %v2038_v25 = vshll.u32 %v7055_v15, 16  ;;  %v2042_v29 = vshrl.u32 %v7055_v15, 16  ;;  %v175_v36 = vld [vmem:[%s7048_s25 + $0x10] sm:$0xf] }
  0x18   : > { %v231_v27 = vor.u32 %v230_v19, %v227_v18  ;;  %v241_v28 = vor.u32 %v240_v21, %v236_v20  ;;  %v2048_v30 = vshll.u32 %v7058_v16, 16  ;;  %v2031_v33 = vrot.slane %v2029_v23, 4  ;;  %v206_v44 = vld [vmem:[%s7048_s25 + $0x14] sm:$0x1]  ;;  %v5639_v55 = vld [vmem:[%s7048_s25 + $0x18] sm:$0xf] }
  0x19   : > { %v2034_v34 = vrot.slane %v2032_v24, 5  ;;  %v2040_v35 = vrot.slane %v2038_v25, 5  ;;  %v2044_v40 = vrot.slane %v2042_v29, 4  ;;  %v249_v45 = vshrl.u32 %v174_v31, 16  ;;  %v7093_v60 = vld [vmem:[%s7048_s25 + $0x1c] sm:$0xf] }
  0x1a   : > { %v232_v38 = vrot.slane %v231_v27, 4  ;;  %v242_v39 = vrot.slane %v241_v28, 4  ;;  %v2050_v43 = vrot.slane %v2048_v30, 5  ;;  %v252_v46 = vshll.u32 %v174_v31, 16  ;;  %v7101_v1 = vld [vmem:[%s7048_s25 + $0x20] sm:$0x1] }
  0x1b   : > { %v2035_v42 = vor.u32 %v2034_v34, %v2031_v33  ;;  %v2045_v49 = vor.u32 %v2044_v40, %v2040_v35  ;;  %v258_v50 = vshll.u32 %v175_v36, 16  ;;  %v251_v53 = vrot.slane %v249_v45, 4  ;;  %v176_v18 = vld [vmem:[%s7048_s25 + $0x18] sm:$0xf]  ;;  %v177_v23 = vld [vmem:[%s7048_s25 + $0x1c] sm:$0xf] }
  0x1c   : > { %v237_v47 = vsel %vm7074_vm4, %v232_v38, %v236_v20  ;;  %v247_v48 = vsel %vm7074_vm4, %v242_v39, %v246_v22  ;;  %v254_v54 = vrot.slane %v252_v46, 5  ;;  %v262_v58 = vshrl.u32 %v175_v36, 16  ;;  %v207_v31 = vld [vmem:[%s7048_s25 + $0x20] sm:$0x1]  ;;  %v5642_v40 = vld [vmem:[%s7048_s25 + $0x24] sm:$0xf] }
  0x1d   : > { %v5458_v51 = vcombine.low %v237_v47, %v247_v48  ;;  %v2036_v52 = vrot.slane %v2035_v42, 4  ;;  %v2046_v56 = vrot.slane %v2045_v49, 4  ;;  %v260_v57 = vrot.slane %v258_v50, 5  ;;  %v7124_v46 = vld [vmem:[%s7048_s25 + $0x28] sm:$0xf] }
  0x1e   : > { %v268_v59 = vshll.u32 %v206_v44, 16  ;;  %v2772_v62 = vrot.slane %v7055_v15, 5  ;;  %v2775_v63 = vrot.slane %v7058_v16, 5  ;;  %v255_v0 = vor.u32 %v254_v54, %v251_v53  ;;  %v7133_v54 = vld [vmem:[%s7048_s25 + $0x2c] sm:$0x1] }
  0x1f   : > { %6295 = vmatprep.mubr.msk.bf16.mxu1 %vm658_vm3, %v5458_v51  ;;  %v2041_v61 = vsel %vm7074_vm4, %v2036_v52, %v2040_v35  ;;  %v2051_v2 = vsel %vm7074_vm4, %v2046_v56, %v2050_v43  ;;  %v264_v4 = vrot.slane %v262_v58, 4  ;;  %v2053_v6 = vshrl.u32 %v5639_v55, 16  ;;  %v5538_v51 = vld [vmem:[%s9206_s1 + $0x2] sm:$0x1]  ;;  %v7333_v16 = vld [vmem:[%s7048_s25 + $0x7c] sm:$0xf] }
  0x20   : > { %v270_v5 = vrot.slane %v268_v59, 5  ;;  %v5685_v7 = vcombine.low %v2041_v61, %v2051_v2  ;;  %v256_v8 = vrot.slane %v255_v0, 4  ;;  %v2056_v9 = vshll.u32 %v5639_v55, 16  ;;  %v178_v0 = vld [vmem:[%s7048_s25 + $0x24] sm:$0xf] }
  0x21   : > { %v2062_v10 = vshll.u32 %v7093_v60, 16  ;;  %v265_v11 = vor.u32 %v264_v4, %v260_v57  ;;  %v2055_v12 = vrot.slane %v2053_v6, 4  ;;  %v2066_v13 = vshrl.u32 %v7093_v60, 16  ;;  %4810 = vst.msk [vmem:[%s8729_s17 + $0x18] sm:$0xf] %vm4802_vm8, %v6990_v32 }
  0x22   : > { %v2072_v14 = vshll.u32 %v7101_v1, 16  ;;  %6431 = vmatprep.mubr.msk.bf16.mxu0 %vm658_vm3, %v5685_v7  ;;  %v261_v19 = vsel %vm7074_vm4, %v256_v8, %v260_v57  ;;  %v2058_v20 = vrot.slane %v2056_v9, 5  ;;  %v2779_v22 = vrot.slane %v7093_v60, 5  ;;  %v179_v7 = vld [vmem:[%s7048_s25 + $0x28] sm:$0xf] }
  0x23   : > { %v2064_v21 = vrot.slane %v2062_v10, 5  ;;  %v266_v24 = vrot.slane %v265_v11, 4  ;;  %v2068_v25 = vrot.slane %v2066_v13, 4  ;;  %v2782_v28 = vrot.slane %v7101_v1, 5  ;;  %v208_v13 = vld [vmem:[%s7048_s25 + $0x2c] sm:$0x1] }
  0x24   : > { %v2074_v27 = vrot.slane %v2072_v14, 5  ;;  %v2059_v29 = vor.u32 %v2058_v20, %v2055_v12  ;;  %v7117_v30 = vrot.slane %v2779_v22, 4  ;;  %v273_v33 = vshrl.u32 %v176_v18, 16  ;;  %4803 = vst.msk [vmem:[%s8729_s17] sm:$0xf] %vm4802_vm8, %v6990_v32 }
  0x25   : > { %v276_v34 = vshll.u32 %v176_v18, 16  ;;  %v271_v35 = vsel %vm7074_vm4, %v266_v24, %v270_v5  ;;  %v2069_v36 = vor.u32 %v2068_v25, %v2064_v21  ;;  %v282_v38 = vshll.u32 %v177_v23, 16  ;;  %v5645_v24 = vld [vmem:[%s7048_s25 + $0x30] sm:$0xf]  ;;  %4804 = vst.msk [vmem:[%s8729_s17 + $0x4] sm:$0xf] %vm4802_vm8, %v6990_v32 }
  0x26   : > { %v286_v39 = vshrl.u32 %v177_v23, 16  ;;  %v5459_v42 = vcombine.low %v261_v19, %v271_v35  ;;  %v2060_v43 = vrot.slane %v2059_v29, 4  ;;  %v275_v44 = vrot.slane %v273_v33, 4  ;;  %v7153_v33 = vld [vmem:[%s7048_s25 + $0x34] sm:$0xf] }
  0x27   : > { %v278_v45 = vrot.slane %v276_v34, 5  ;;  %v2070_v47 = vrot.slane %v2069_v36, 4  ;;  %v284_v48 = vrot.slane %v282_v38, 5  ;;  %v292_v50 = vshll.u32 %v207_v31, 16  ;;  %4807 = vst.msk [vmem:[%s8729_s17 + $0xc] sm:$0xf] %vm4802_vm8, %v6990_v32 }
  0x28   : > { %v288_v49 = vrot.slane %v286_v39, 4  ;;  %6296 = vmatmul.mubr.msk.bf16.vlgmr.msra.gmra.mrb[0].mxu1 %vm658_vm3, %v5459_v42  ;;  %v2065_v52 = vsel %vm7074_vm4, %v2060_v43, %v2064_v21  ;;  %v2077_v55 = vshrl.u32 %v5642_v40, 16  ;;  %v2080_v56 = vshll.u32 %v5642_v40, 16  ;;  %v7161_v40 = vld [vmem:[%s7048_s25 + $0x38] sm:$0x1] }
  0x29   : > { %v279_v53 = vor.u32 %v278_v45, %v275_v44  ;;  %6328 = vmatpush3.bf16.msra.mxu1 %v7061_v17  ;;  %v2075_v57 = vsel %vm7074_vm4, %v2070_v47, %v2074_v27  ;;  %v294_v59 = vrot.slane %v292_v50, 5  ;;  %v2086_v61 = vshll.u32 %v7124_v46, 16  ;;  %4808 = vst.msk [vmem:[%s8729_s17 + $0x10] sm:$0xf] %vm4802_vm8, %v6990_v32  ;;  %4811 = vst.msk [vmem:[%s8729_s17 + $0x1c] sm:$0xf] %vm4802_vm8, %v6990_v32 }
  0x2a   : > { %v289_v58 = vor.u32 %v288_v49, %v284_v48  ;;  %v5686_v2 = vcombine.low %v2065_v52, %v2075_v57  ;;  %v2079_v5 = vrot.slane %v2077_v55, 4  ;;  %v2082_v6 = vrot.slane %v2080_v56, 5  ;;  %6859 = vmatprep.subr.msk.bf16.mxu1 %vm707_vm0, %v5538_v51  ;;  %v180_v52 = vld [vmem:[%s7048_s25 + $0x30] sm:$0xf]  ;;  %4813 = vst.msk [vmem:[%s8729_s17 + $0x24] sm:$0xf] %vm4802_vm8, %v6990_v32 }
  0x2b   : > { %v280_v4 = vrot.slane %v279_v53, 4  ;;  %v2088_v9 = vrot.slane %v2086_v61, 5  ;;  %v2090_v17 = vshrl.u32 %v7124_v46, 16  ;;  %v2096_v10 = vshll.u32 %v7133_v54, 16  ;;  %4814 = vst.msk [vmem:[%s8729_s17 + $0x28] sm:$0xf] %vm4802_vm8, %v6990_v32 }
  0x2c   : > { %v290_v8 = vrot.slane %v289_v58, 4  ;;  %6432 = vmatmul.mubr.msk.bf16.vlgmr.msra.gmra.mrb[0].mxu0 %vm658_vm3, %v5686_v2  ;;  %v2083_v12 = vor.u32 %v2082_v6, %v2079_v5  ;;  %v297_v14 = vshrl.u32 %v178_v0, 16  ;;  %v300_v18 = vshll.u32 %v178_v0, 16  ;;  %v181_v58 = vld [vmem:[%s7048_s25 + $0x34] sm:$0xf] }
  0x2d   : > { %v285_v11 = vsel %vm7074_vm4, %v280_v4, %v284_v48  ;;  %6464 = vmatpush3.bf16.msra.mxu0 %v7080_v37  ;;  %v2092_v20 = vrot.slane %v2090_v17, 4  ;;  %v2098_v21 = vrot.slane %v2096_v10, 5  ;;  %v306_v23 = vshll.u32 %v179_v7, 16  ;;  %v209_v4 = vld [vmem:[%s7048_s25 + $0x38] sm:$0x1] }
  0x2e   : > { %v295_v19 = vsel %vm7074_vm4, %v290_v8, %v294_v59  ;;  %v2084_v27 = vrot.slane %v2083_v12, 4  ;;  %v299_v29 = vrot.slane %v297_v14, 4  ;;  %v302_v31 = vrot.slane %v300_v18, 5  ;;  %6864 = vmatprep.subr.msk.bf16.mxu0 %vm707_vm0, %v7067_v26  ;;  %v5648_v12 = vld [vmem:[%s7048_s25 + $0x3c] sm:$0xf] }
  0x2f   : > { %v5460_v25 = vcombine.low %v285_v11, %v295_v19  ;;  %v2093_v34 = vor.u32 %v2092_v20, %v2088_v9  ;;  %v308_v35 = vrot.slane %v306_v23, 5  ;;  %v310_v37 = vshrl.u32 %v179_v7, 16  ;;  %v7178_v20 = vld [vmem:[%s7048_s25 + $0x40] sm:$0xf]  ;;  %4816 = vst.msk [vmem:[%s8729_s17 + $0x30] sm:$0xf] %vm4802_vm8, %v6990_v32 }
  0x30   : > { %v316_v36 = vshll.u32 %v208_v13, 16  ;;  %v2089_v38 = vsel %vm7074_vm4, %v2084_v27, %v2088_v9  ;;  %v303_v39 = vor.u32 %v302_v31, %v299_v29  ;;  %v2101_v42 = vshrl.u32 %v5645_v24, 16  ;;  %4817 = vst.msk [vmem:[%s8729_s17 + $0x34] sm:$0xf] %vm4802_vm8, %v6990_v32  ;;  %4819 = vst.msk [vmem:[%s8729_s17 + $0x3c] sm:$0xf] %vm4802_vm8, %v6990_v32 }
  0x31   : > { %6299 = vmatprep.mubr.msk.bf16.mxu1 %vm658_vm3, %v5460_v25  ;;  %v2104_v43 = vshll.u32 %v5645_v24, 16  ;;  %v2094_v44 = vrot.slane %v2093_v34, 4  ;;  %v312_v45 = vrot.slane %v310_v37, 4  ;;  %v2110_v26 = vshll.u32 %v7153_v33, 16  ;;  %v7183_v34 = vld [vmem:[%s7048_s25 + $0x44] sm:$0x1] }
  0x32   : > { %v318_v47 = vrot.slane %v316_v36, 5  ;;  %v304_v48 = vrot.slane %v303_v39, 4  ;;  %v2103_v49 = vrot.slane %v2101_v42, 4  ;;  %v2114_v51 = vshrl.u32 %v7153_v33, 16  ;;  %v182_v42 = vld [vmem:[%s7048_s25 + $0x3c] sm:$0xf] }
  0x33   : > { %v2106_v50 = vrot.slane %v2104_v43, 5  ;;  %v2099_v53 = vsel %vm7074_vm4, %v2094_v44, %v2098_v21  ;;  %v313_v55 = vor.u32 %v312_v45, %v308_v35  ;;  %v2112_v56 = vrot.slane %v2110_v26, 5  ;;  %v183_v26 = vld [vmem:[%s7048_s25 + $0x40] sm:$0xf]  ;;  %4820 = vst.msk [vmem:[%s8729_s17 + $0x40] sm:$0xf] %vm4802_vm8, %v6990_v32 }
  0x34   : > { %v2120_v57 = vshll.u32 %v7161_v40, 16  ;;  %v5687_v59 = vcombine.low %v2089_v38, %v2099_v53  ;;  %v309_v61 = vsel %vm7074_vm4, %v304_v48, %v308_v35  ;;  %v2116_v2 = vrot.slane %v2114_v51, 4  ;;  %4822 = vst.msk [vmem:[%s8729_s17 + $0x48] sm:$0xf] %vm4802_vm8, %v6990_v32  ;;  %4823 = vst.msk [vmem:[%s8729_s17 + $0x4c] sm:$0xf] %vm4802_vm8, %v6990_v32 }
  0x35   : > { %v2107_v0 = vor.u32 %v2106_v50, %v2103_v49  ;;  %v314_v5 = vrot.slane %v313_v55, 4  ;;  %v321_v7 = vshrl.u32 %v180_v52, 16  ;;  %v324_v8 = vshll.u32 %v180_v52, 16  ;;  %4825 = vst.msk [vmem:[%s8729_s17 + $0x54] sm:$0xf] %vm4802_vm8, %v6990_v32 }
  0x36   : > { %v2122_v6 = vrot.slane %v2120_v57, 5  ;;  %6435 = vmatprep.mubr.msk.bf16.mxu0 %vm658_vm3, %v5687_v59  ;;  %v2117_v17 = vor.u32 %v2116_v2, %v2112_v56  ;;  %v330_v10 = vshll.u32 %v181_v58, 16  ;;  %v334_v11 = vshrl.u32 %v181_v58, 16  ;;  %v5651_v2 = vld [vmem:[%s7048_s25 + $0x48] sm:$0xf] }
  0x37   : > { %v2108_v9 = vrot.slane %v2107_v0, 4  ;;  %v319_v13 = vsel %vm7074_vm4, %v314_v5, %v318_v47  ;;  %v323_v14 = vrot.slane %v321_v7, 4  ;;  %v326_v18 = vrot.slane %v324_v8, 5  ;;  %v7201_v8 = vld [vmem:[%s7048_s25 + $0x4c] sm:$0xf] }
  0x38   : > { %v340_v19 = vshll.u32 %v209_v4, 16  ;;  %v5461_v21 = vcombine.low %v309_v61, %v319_v13  ;;  %v2118_v24 = vrot.slane %v2117_v17, 4  ;;  %v332_v25 = vrot.slane %v330_v10, 5  ;;  %v210_v61 = vld [vmem:[%s7048_s25 + $0x44] sm:$0x1] }
  0x39   : > { %v2113_v23 = vsel %vm7074_vm4, %v2108_v9, %v2112_v56  ;;  %v327_v27 = vor.u32 %v326_v18, %v323_v14  ;;  %v336_v29 = vrot.slane %v334_v11, 4  ;;  %v2125_v35 = vshrl.u32 %v5648_v12, 16  ;;  %4826 = vst.msk [vmem:[%s8729_s17 + $0x58] sm:$0xf] %vm4802_vm8, %v6990_v32  ;;  %4828 = vst.msk [vmem:[%s8729_s17 + $0x60] sm:$0xf] %vm4802_vm8, %v6990_v32 }
  0x3a   : > { %v342_v31 = vrot.slane %v340_v19, 5  ;;  %6300 = vmatmul.mubr.msk.bf16.gmra.mrb[4].mxu1 %vm658_vm3, %v5461_v21  ;;  %v2123_v37 = vsel %vm7074_vm4, %v2118_v24, %v2122_v6  ;;  %v2128_v36 = vshll.u32 %v5648_v12, 16  ;;  %v2134_v38 = vshll.u32 %v7178_v20, 16  ;;  %4829 = vst.msk [vmem:[%s8729_s17 + $0x64] sm:$0xf] %vm4802_vm8, %v6990_v32 }
  0x3b   : > { %v2138_v39 = vshrl.u32 %v7178_v20, 16  ;;  %v5688_v43 = vcombine.low %v2113_v23, %v2123_v37  ;;  %v328_v44 = vrot.slane %v327_v27, 4  ;;  %v337_v45 = vor.u32 %v336_v29, %v332_v25  ;;  %v7209_v23 = vld [vmem:[%s7048_s25 + $0x50] sm:$0x1]  ;;  %v7213_v27 = vld [vmem:[%s7048_s25 + $0x48] sm:$0xf] }
  0x3c   : > { %v2127_v47 = vrot.slane %v2125_v35, 4  ;;  %v2130_v48 = vrot.slane %v2128_v36, 5  ;;  %v2136_v49 = vrot.slane %v2134_v38, 5  ;;  %v2144_v51 = vshll.u32 %v7183_v34, 16  ;;  %v7216_v36 = vld [vmem:[%s7048_s25 + $0x4c] sm:$0xf] }
  0x3d   : > { %v2140_v50 = vrot.slane %v2138_v39, 4  ;;  %6436 = vmatmul.mubr.msk.bf16.gmra.mrb[4].mxu0 %vm658_vm3, %v5688_v43  ;;  %v333_v52 = vsel %vm7074_vm4, %v328_v44, %v332_v25  ;;  %v338_v53 = vrot.slane %v337_v45, 4  ;;  %v345_v55 = vshrl.u32 %v182_v42, 16  ;;  %4831 = vst.msk [vmem:[%s8729_s17 + $0x6c] sm:$0xf] %vm4802_vm8, %v6990_v32 }
  0x3e   : > { %v348_v56 = vshll.u32 %v182_v42, 16  ;;  %v2131_v57 = vor.u32 %v2130_v48, %v2127_v47  ;;  %v2146_v59 = vrot.slane %v2144_v51, 5  ;;  %v354_v0 = vshll.u32 %v183_v26, 16  ;;  %4832 = vst.msk [vmem:[%s8729_s17 + $0x70] sm:$0xf] %vm4802_vm8, %v6990_v32 }
  0x3f   : > { %v2141_v58 = vor.u32 %v2140_v50, %v2136_v49  ;;  %v343_v4 = vsel %vm7074_vm4, %v338_v53, %v342_v31  ;;  %v347_v5 = vrot.slane %v345_v55, 4  ;;  %v358_v7 = vshrl.u32 %v183_v26, 16  ;;  %v211_v26 = vld [vmem:[%s7048_s25 + $0x50] sm:$0x1]  ;;  %v5654_v53 = vld [vmem:[%s7048_s25 + $0x54] sm:$0xf] }
  0x40   : > { %v350_v6 = vrot.slane %v348_v56, 5  ;;  %v5462_v9 = vcombine.low %v333_v52, %v343_v4  ;;  %v2132_v17 = vrot.slane %v2131_v57, 4  ;;  %v356_v11 = vrot.slane %v354_v0, 5  ;;  %v7232_v4 = vld [vmem:[%s7048_s25 + $0x58] sm:$0xf] }
  0x41   : > { %v2142_v10 = vrot.slane %v2141_v58, 4  ;;  %v360_v13 = vrot.slane %v358_v7, 4  ;;  %v364_v14 = vshll.u32 %v210_v61, 16  ;;  %v2149_v18 = vshrl.u32 %v5651_v2, 16  ;;  %4834 = vst.msk [vmem:[%s8729_s17 + $0x78] sm:$0xf] %vm4802_vm8, %v6990_v32 }
  0x42   : > { %v351_v12 = vor.u32 %v350_v6, %v347_v5  ;;  %6303 = vmatprep.mubr.msk.bf16.mxu1 %vm658_vm3, %v5462_v9  ;;  %v2137_v19 = vsel %vm7074_vm4, %v2132_v17, %v2136_v49  ;;  %v2152_v24 = vshll.u32 %v5651_v2, 16  ;;  %v2158_v25 = vshll.u32 %v7201_v8, 16  ;;  %4835 = vst.msk [vmem:[%s8729_s17 + $0x7c] sm:$0xf] %vm4802_vm8, %v6990_v32  ;;  %4837 = vst.msk [vmem:[%s8729_s17 + $0x84] sm:$0xf] %vm4802_vm8, %v6990_v32 }
  0x43   : > { %v2147_v21 = vsel %vm7074_vm4, %v2142_v10, %v2146_v59  ;;  %v361_v35 = vor.u32 %v360_v13, %v356_v11  ;;  %v366_v37 = vrot.slane %v364_v14, 5  ;;  %v2151_v38 = vrot.slane %v2149_v18, 4  ;;  %4838 = vst.msk [vmem:[%s8729_s17 + $0x88] sm:$0xf] %vm4802_vm8, %v6990_v32  ;;  %4840 = vst.msk [vmem:[%s8729_s17 + $0x90] sm:$0xf] %vm4802_vm8, %v6990_v32 }
  0x44   : > { %v5689_v29 = vcombine.low %v2137_v19, %v2147_v21  ;;  %v352_v31 = vrot.slane %v351_v12, 4  ;;  %v2154_v39 = vrot.slane %v2152_v24, 5  ;;  %v2160_v42 = vrot.slane %v2158_v25, 5  ;;  %v7238_v12 = vld [vmem:[%s7048_s25 + $0x5c] sm:$0x1] }
  0x45   : > { %v2162_v43 = vshrl.u32 %v7201_v8, 16  ;;  %v362_v45 = vrot.slane %v361_v35, 4  ;;  %v2168_v47 = vshll.u32 %v7209_v23, 16  ;;  %v369_v48 = vshrl.u32 %v7213_v27, 16  ;;  %v7242_v24 = vld [vmem:[%s7048_s25 + $0x54] sm:$0xf] }
  0x46   : > { %6439 = vmatprep.mubr.msk.bf16.mxu0 %vm658_vm3, %v5689_v29  ;;  %v357_v44 = vsel %vm7074_vm4, %v352_v31, %v356_v11  ;;  %v2155_v49 = vor.u32 %v2154_v39, %v2151_v38  ;;  %v372_v51 = vshll.u32 %v7213_v27, 16  ;;  %v378_v52 = vshll.u32 %v7216_v36, 16  ;;  %4841 = vst.msk [vmem:[%s8729_s17 + $0x94] sm:$0xf] %vm4802_vm8, %v6990_v32  ;;  %4843 = vst.msk [vmem:[%s8729_s17 + $0x9c] sm:$0xf] %vm4802_vm8, %v6990_v32 }
  0x47   : > { %v2164_v50 = vrot.slane %v2162_v43, 4  ;;  %v367_v55 = vsel %vm7074_vm4, %v362_v45, %v366_v37  ;;  %v2170_v56 = vrot.slane %v2168_v47, 5  ;;  %v371_v57 = vrot.slane %v369_v48, 4  ;;  %v7248_v37 = vld [vmem:[%s7048_s25 + $0x58] sm:$0xf] }
  0x48   : > { %v382_v58 = vshrl.u32 %v7216_v36, 16  ;;  %v5463_v59 = vcombine.low %v357_v44, %v367_v55  ;;  %v2156_v61 = vrot.slane %v2155_v49, 4  ;;  %v374_v2 = vrot.slane %v372_v51, 5  ;;  %4844 = vst.msk [vmem:[%s8729_s17 + $0xa0] sm:$0xf] %vm4802_vm8, %v6990_v32 }
  0x49   : > { %v2165_v0 = vor.u32 %v2164_v50, %v2160_v42  ;;  %v380_v5 = vrot.slane %v378_v52, 5  ;;  %v388_v7 = vshll.u32 %v211_v26, 16  ;;  %v2173_v9 = vshrl.u32 %v5654_v53, 16  ;;  %v212_v26 = vld [vmem:[%s7048_s25 + $0x5c] sm:$0x1] }
  0x4a   : > { %v384_v6 = vrot.slane %v382_v58, 4  ;;  %6304 = vmatmul.mubr.msk.bf16.gmra.mrb[8].mxu1 %vm658_vm3, %v5463_v59  ;;  %v2161_v17 = vsel %vm7074_vm4, %v2156_v61, %v2160_v42  ;;  %v375_v11 = vor.u32 %v374_v2, %v371_v57  ;;  %v2176_v13 = vshll.u32 %v5654_v53, 16  ;;  %v5657_v53 = vld [vmem:[%s7048_s25 + $0x60] sm:$0xf]  ;;  %v7262_v59 = vld [vmem:[%s7048_s25 + $0x64] sm:$0xf] }
  0x4b   : > { %v2166_v10 = vrot.slane %v2165_v0, 4  ;;  %v390_v18 = vrot.slane %v388_v7, 5  ;;  %v2175_v19 = vrot.slane %v2173_v9, 4  ;;  %v2182_v21 = vshll.u32 %v7232_v4, 16  ;;  %v7269_v9 = vld [vmem:[%s7048_s25 + $0x68] sm:$0x1] }
  0x4c   : > { %v385_v14 = vor.u32 %v384_v6, %v380_v5  ;;  %v376_v29 = vrot.slane %v375_v11, 4  ;;  %v2178_v31 = vrot.slane %v2176_v13, 5  ;;  %v2186_v35 = vshrl.u32 %v7232_v4, 16  ;;  %4846 = vst.msk [vmem:[%s8729_s17 + $0xa8] sm:$0xf] %vm4802_vm8, %v6990_v32 }
  0x4d   : > { %v2171_v25 = vsel %vm7074_vm4, %v2166_v10, %v2170_v56  ;;  %v2184_v42 = vrot.slane %v2182_v21, 5  ;;  %v2192_v43 = vshll.u32 %v7238_v12, 16  ;;  %v393_v48 = vshrl.u32 %v7242_v24, 16  ;;  %4847 = vst.msk [vmem:[%s8729_s17 + $0xac] sm:$0xf] %vm4802_vm8, %v6990_v32 }
  0x4e   : > { %v5690_v38 = vcombine.low %v2161_v17, %v2171_v25  ;;  %v386_v39 = vrot.slane %v385_v14, 4  ;;  %v381_v44 = vsel %vm7074_vm4, %v376_v29, %v380_v5  ;;  %v2179_v45 = vor.u32 %v2178_v31, %v2175_v19  ;;  %v7273_v19 = vld [vmem:[%s7048_s25 + $0x60] sm:$0xf]  ;;  %4849 = vst.msk [vmem:[%s8729_s17 + $0xb4] sm:$0xf] %vm4802_vm8, %v6990_v32 }
  0x4f   : > { %v2188_v47 = vrot.slane %v2186_v35, 4  ;;  %v2194_v50 = vrot.slane %v2192_v43, 5  ;;  %v396_v51 = vshll.u32 %v7242_v24, 16  ;;  %v402_v52 = vshll.u32 %v7248_v37, 16  ;;  %v7279_v35 = vld [vmem:[%s7048_s25 + $0x64] sm:$0xf] }
  0x50   : > { %6440 = vmatmul.mubr.msk.bf16.gmra.mrb[8].mxu0 %vm658_vm3, %v5690_v38  ;;  %v391_v49 = vsel %vm7074_vm4, %v386_v39, %v390_v18  ;;  %v2180_v56 = vrot.slane %v2179_v45, 4  ;;  %v395_v58 = vrot.slane %v393_v48, 4  ;;  %v406_v2 = vshrl.u32 %v7248_v37, 16  ;;  %4850 = vst.msk [vmem:[%s8729_s17 + $0xb8] sm:$0xf] %vm4802_vm8, %v6990_v32 }
  0x51   : > { %v5464_v55 = vcombine.low %v381_v44, %v391_v49  ;;  %v2189_v57 = vor.u32 %v2188_v47, %v2184_v42  ;;  %v398_v61 = vrot.slane %v396_v51, 5  ;;  %v404_v0 = vrot.slane %v402_v52, 5  ;;  %4852 = vst.msk [vmem:[%s8729_s17 + $0xc0] sm:$0xf] %vm4802_vm8, %v6990_v32  ;;  %4853 = vst.msk [vmem:[%s8729_s17 + $0xc4] sm:$0xf] %vm4802_vm8, %v6990_v32 }
  0x52   : > { %v412_v5 = vshll.u32 %v212_v26, 16  ;;  %v2185_v6 = vsel %vm7074_vm4, %v2180_v56, %v2184_v42  ;;  %v2197_v17 = vshrl.u32 %v5657_v53, 16  ;;  %v2200_v10 = vshll.u32 %v5657_v53, 16  ;;  %4855 = vst.msk [vmem:[%s8729_s17 + $0xcc] sm:$0xf] %vm4802_vm8, %v6990_v32 }
  0x53   : > { %6307 = vmatprep.mubr.msk.bf16.mxu1 %vm658_vm3, %v5464_v55  ;;  %v2190_v7 = vrot.slane %v2189_v57, 4  ;;  %v399_v11 = vor.u32 %v398_v61, %v395_v58  ;;  %v408_v13 = vrot.slane %v406_v2, 4  ;;  %v2206_v18 = vshll.u32 %v7262_v59, 16  ;;  %v5717_v58 = vld [vmem:[%s7048_s25 + $0xc] sm:$0xe] }
  0x54   : > { %v414_v14 = vrot.slane %v412_v5, 5  ;;  %v2199_v25 = vrot.slane %v2197_v17, 4  ;;  %v2202_v29 = vrot.slane %v2200_v10, 5  ;;  %v2210_v31 = vshrl.u32 %v7262_v59, 16  ;;  %4856 = vst.msk [vmem:[%s8729_s17 + $0xd0] sm:$0xf] %vm4802_vm8, %v6990_v32 }
  0x55   : > { %v2195_v21 = vsel %vm7074_vm4, %v2190_v7, %v2194_v50  ;;  %v400_v39 = vrot.slane %v399_v11, 4  ;;  %v409_v42 = vor.u32 %v408_v13, %v404_v0  ;;  %v2208_v43 = vrot.slane %v2206_v18, 5  ;;  %v213_v50 = vld [vmem:[%s7048_s25 + $0x68] sm:$0x1]  ;;  %4812 = vst.msk [vmem:[%s8729_s17 + $0x20] sm:$0x1] %vm4805_vm9, %v6990_v32 }
  0x56   : > { %v5691_v38 = vcombine.low %v2185_v6, %v2195_v21  ;;  %v2203_v44 = vor.u32 %v2202_v29, %v2199_v25  ;;  %v2212_v45 = vrot.slane %v2210_v31, 4  ;;  %v2216_v47 = vshll.u32 %v7269_v9, 16  ;;  %v7307_v29 = vld [vmem:[%s7048_s25 + $0x70] sm:$0xf]  ;;  %4806 = vst.msk [vmem:[%s8729_s17 + $0x8] sm:$0x1] %vm4805_vm9, %v6990_v32 }
  0x57   : > { %v417_v26 = vshrl.u32 %v7273_v19, 16  ;;  %v405_v48 = vsel %vm7074_vm4, %v400_v39, %v404_v0  ;;  %v410_v49 = vrot.slane %v409_v42, 4  ;;  %v420_v51 = vshll.u32 %v7273_v19, 16  ;;  %v7294_v0 = vld [vmem:[%s7048_s25 + $0x6c] sm:$0xf] }
  0x58   : > { %6443 = vmatprep.mubr.msk.bf16.mxu0 %vm658_vm3, %v5691_v38  ;;  %v426_v52 = vshll.u32 %v7279_v35, 16  ;;  %v2204_v53 = vrot.slane %v2203_v44, 4  ;;  %v2213_v55 = vor.u32 %v2212_v45, %v2208_v43  ;;  %v2218_v56 = vrot.slane %v2216_v47, 5  ;;  %4809 = vst.msk [vmem:[%s8729_s17 + $0x14] sm:$0x1] %vm4805_vm9, %v6990_v32 }
  0x59   : > { %v419_v57 = vrot.slane %v417_v26, 4  ;;  %v415_v61 = vsel %vm7074_vm4, %v410_v49, %v414_v14  ;;  %v422_v2 = vrot.slane %v420_v51, 5  ;;  %v430_v6 = vshrl.u32 %v7279_v35, 16  ;;  %v214_v26 = vld [vmem:[%s7048_s25 + $0x74] sm:$0x1] }
  0x5a   : > { %v428_v5 = vrot.slane %v426_v52, 5  ;;  %v5465_v7 = vcombine.low %v405_v48, %v415_v61  ;;  %v2209_v17 = vsel %vm7074_vm4, %v2204_v53, %v2208_v43  ;;  %v2214_v10 = vrot.slane %v2213_v55, 4  ;;  %v5718_v48 = vld [vmem:[%s7048_s25 + $0x18] sm:$0xe]  ;;  %4815 = vst.msk [vmem:[%s8729_s17 + $0x2c] sm:$0x1] %vm4805_vm9, %v6990_v32 }
  0x5b   : > { %v436_v11 = vshll.u32 %v213_v50, 16  ;;  %v423_v14 = vor.u32 %v422_v2, %v419_v57  ;;  %v432_v18 = vrot.slane %v430_v6, 4  ;;  %v5733_v21 = vrot.slane %v5717_v58, 9  ;;  %v7326_v53 = vld [vmem:[%s7048_s25 + $0x78] sm:$0xf] }
  0x5c   : > { %v2774_v25 = vrot.slane %v2772_v62, 4  ;;  %6308 = vmatmul.mubr.msk.bf16.gmra.mrb[12].mxu1 %vm658_vm3, %v5465_v7  ;;  %v2219_v31 = vsel %vm7074_vm4, %v2214_v10, %v2218_v56  ;;  %v441_v39 = vshrl.u32 %v7294_v0, 16  ;;  %v444_v42 = vshll.u32 %v7294_v0, 16  ;;  %v215_v57 = vld [vmem:[%s7048_s25 + $0x80] sm:$0x1] }
  0x5d   : > { %v438_v38 = vrot.slane %v436_v11, 5  ;;  %v5692_v43 = vcombine.low %v2209_v17, %v2219_v31  ;;  %v424_v44 = vrot.slane %v423_v14, 4  ;;  %v433_v45 = vor.u32 %v432_v18, %v428_v5  ;;  %v5719_v10 = vld [vmem:[%s7048_s25 + $0x24] sm:$0xe]  ;;  %4818 = vst.msk [vmem:[%s8729_s17 + $0x38] sm:$0x1] %vm4805_vm9, %v6990_v32 }
  0x5e   : > { %v2773_v47 = vsel %vm7300_vm7, %v5733_v21, %v2772_v62  ;;  %v2776_v49 = vsel %vm7300_vm7, %v2774_v25, %v2775_v63  ;;  %v443_v50 = vrot.slane %v441_v39, 4  ;;  %v446_v51 = vrot.slane %v444_v42, 5  ;;  %v7352_v39 = vld [vmem:[%s7048_s25 + $0x84] sm:$0xf]  ;;  %4821 = vst.msk [vmem:[%s8729_s17 + $0x44] sm:$0x1] %vm4805_vm9, %v6990_v32 }
  0x5f   : > { %v450_v52 = vshll.u32 %v7307_v29, 16  ;;  %6444 = vmatmul.mubr.msk.bf16.gmra.mrb[12].mxu0 %vm658_vm3, %v5692_v43  ;;  %v429_v15 = vsel %vm7074_vm4, %v424_v44, %v428_v5  ;;  %v434_v62 = vrot.slane %v433_v45, 4  ;;  %v5750_v55 = vcombine.low %v2773_v47, %v2776_v49  ;;  %v7360_v43 = vld [vmem:[%s7048_s25 + $0x88] sm:$0xf]  ;;  %4824 = vst.msk [vmem:[%s8729_s17 + $0x50] sm:$0x1] %vm4805_vm9, %v6990_v32 }
  0x60   : > { %v454_v56 = vshrl.u32 %v7307_v29, 16  ;;  %v447_v63 = vor.u32 %v446_v51, %v443_v50  ;;  %v460_v61 = vshll.u32 %v214_v26, 16  ;;  %v5734_v2 = vrot.slane %v5718_v48, 9  ;;  %4827 = vst.msk [vmem:[%s8729_s17 + $0x5c] sm:$0x1] %vm4805_vm9, %v6990_v32 }
  0x61   : > { %v452_v58 = vrot.slane %v450_v52, 5  ;;  %v439_v6 = vsel %vm7074_vm4, %v434_v62, %v438_v38  ;;  %6465 = vmatprep.mubr.msk.bf16.mxu0 %vm658_vm3, %v5750_v55  ;;  %v2783_v5 = vsel %vm7300_vm7, %v7117_v30, %v2782_v28  ;;  %v465_v17 = vshrl.u32 %v7326_v53, 16  ;;  %v216_v52 = vld [vmem:[%s7048_s25 + $0x8c] sm:$0x1]  ;;  %4830 = vst.msk [vmem:[%s8729_s17 + $0x68] sm:$0x1] %vm4805_vm9, %v6990_v32 }
  0x62   : > { %v456_v7 = vrot.slane %v454_v56, 4  ;;  %v5466_v11 = vcombine.low %v429_v15, %v439_v6  ;;  %v448_v14 = vrot.slane %v447_v63, 4  ;;  %v462_v18 = vrot.slane %v460_v61, 5  ;;  %4833 = vst.msk [vmem:[%s8729_s17 + $0x74] sm:$0x1] %vm4805_vm9, %v6990_v32 }
  0x63   : > { %v2780_v21 = vsel %vm7300_vm7, %v5734_v2, %v2779_v22  ;;  %v467_v38 = vrot.slane %v465_v17, 4  ;;  %v468_v1 = vshll.u32 %v7326_v53, 16  ;;  %v474_v30 = vshll.u32 %v7333_v16, 16  ;;  %v7365_v22 = vld [vmem:[%s9206_s1 + $0x7] sm:$0x1] }
  0x64   : > { %v457_v25 = vor.u32 %v456_v7, %v452_v58  ;;  %v5751_v31 = vcombine.low %v2780_v21, %v2783_v5  ;;  %6311 = vmatprep.mubr.msk.bf16.mxu1 %vm658_vm3, %v5466_v11  ;;  %v453_v28 = vsel %vm7074_vm4, %v448_v14, %v452_v58  ;;  %v478_v60 = vshrl.u32 %v7333_v16, 16  ;;  %v7384_v5 = vld [vmem:[%s7048_s25 + $0x90] sm:$0xf]  ;;  %4836 = vst.msk [vmem:[%s8729_s17 + $0x80] sm:$0x1] %vm4805_vm9, %v6990_v32 }
  0x65   : > { %v484_v42 = vshll.u32 %v215_v57, 16  ;;  %v470_v45 = vrot.slane %v468_v1, 5  ;;  %v5735_v47 = vrot.slane %v5719_v10, 9  ;;  %v2786_v26 = vrot.slane %v7124_v46, 5  ;;  %v5720_v57 = vld [vmem:[%s7048_s25 + $0x30] sm:$0xe] }
  0x66   : > { %v458_v44 = vrot.slane %v457_v25, 4  ;;  %v476_v48 = vrot.slane %v474_v30, 5  ;;  %v480_v49 = vrot.slane %v478_v60, 4  ;;  %v2789_v51 = vrot.slane %v7133_v54, 5  ;;  %v7396_v30 = vld [vmem:[%s7048_s25 + $0x94] sm:$0xf] }
  0x67   : > { %v486_v50 = vrot.slane %v484_v42, 5  ;;  %6466 = vmatmul.mubr.msk.bf16.vlgmr.msra.gmra.mrb[0].mxu0 %vm658_vm3, %v5751_v31  ;;  %v471_v62 = vor.u32 %v470_v45, %v467_v38  ;;  %v2787_v55 = vsel %vm7300_vm7, %v5735_v47, %v2786_v26  ;;  %v2788_v56 = vrot.slane %v2786_v26, 4  ;;  %v217_v60 = vld [vmem:[%s7048_s25 + $0x98] sm:$0x1]  ;;  %v5721_v26 = vld [vmem:[%s7048_s25 + $0x3c] sm:$0xe] }
  0x68   : > { %v463_v15 = vsel %vm7074_vm4, %v458_v44, %v462_v18  ;;  %6498 = vmatpush3.bf16.msra.mxu0 %v7084_v41  ;;  %v481_v46 = vor.u32 %v480_v49, %v476_v48  ;;  %v489_v58 = vshrl.u32 %v7352_v39, 16  ;;  %v492_v54 = vshll.u32 %v7352_v39, 16  ;;  %4839 = vst.msk [vmem:[%s8729_s17 + $0x8c] sm:$0x1] %vm4805_vm9, %v6990_v32  ;;  %4842 = vst.msk [vmem:[%s8729_s17 + $0x98] sm:$0x1] %vm4805_vm9, %v6990_v32 }
  0x69   : > { %v5467_v63 = vcombine.low %v453_v28, %v463_v15  ;;  %v472_v61 = vrot.slane %v471_v62, 4  ;;  %v2790_v2 = vsel %vm7300_vm7, %v2788_v56, %v2789_v51  ;;  %v498_v6 = vshll.u32 %v7360_v43, 16  ;;  %6865 = vmatprep.subr.msk.bf16.mxu0 %vm707_vm0, %v7365_v22  ;;  %4845 = vst.msk [vmem:[%s8729_s17 + $0xa4] sm:$0x1] %vm4805_vm9, %v6990_v32  ;;  %4848 = vst.msk [vmem:[%s8729_s17 + $0xb0] sm:$0x1] %vm4805_vm9, %v6990_v32 }
  0x6a   : > { %v502_v7 = vshrl.u32 %v7360_v43, 16  ;;  %v482_v41 = vrot.slane %v481_v46, 4  ;;  %v5752_v17 = vcombine.low %v2787_v55, %v2790_v2  ;;  %v491_v10 = vrot.slane %v489_v58, 4  ;;  %v7416_v46 = vld [vmem:[%s7048_s25 + $0xa0] sm:$0xf] }
  0x6b   : > { %6312 = vmatmul.mubr.msk.bf16.gmra.mrb[16].mxu1 %vm658_vm3, %v5467_v63  ;;  %v494_v11 = vrot.slane %v492_v54, 5  ;;  %v477_v14 = vsel %vm7074_vm4, %v472_v61, %v476_v48  ;;  %v500_v18 = vrot.slane %v498_v6, 5  ;;  %v508_v25 = vshll.u32 %v216_v52, 16  ;;  %v7405_v52 = vld [vmem:[%s7048_s25 + $0x9c] sm:$0xf] }
  0x6c   : > { %v504_v21 = vrot.slane %v502_v7, 4  ;;  %v487_v31 = vsel %vm7074_vm4, %v482_v41, %v486_v50  ;;  %6469 = vmatprep.mubr.msk.bf16.mxu0 %vm658_vm3, %v5752_v17  ;;  %v5736_v1 = vrot.slane %v5720_v57, 9  ;;  %v2793_v28 = vrot.slane %v7153_v33, 5  ;;  %4851 = vst.msk [vmem:[%s8729_s17 + $0xbc] sm:$0x1] %vm4805_vm9, %v6990_v32 }
  0x6d   : > { %v495_v38 = vor.u32 %v494_v11, %v491_v10  ;;  %v5468_v42 = vcombine.low %v477_v14, %v487_v31  ;;  %v510_v45 = vrot.slane %v508_v25, 5  ;;  %v2796_v47 = vrot.slane %v7161_v40, 5  ;;  %v218_v10 = vld [vmem:[%s7048_s25 + $0xa4] sm:$0x1]  ;;  %v5722_v11 = vld [vmem:[%s7048_s25 + $0x48] sm:$0xe] }
  0x6e   : > { %v505_v44 = vor.u32 %v504_v21, %v500_v18  ;;  %v2794_v49 = vsel %vm7300_vm7, %v5736_v1, %v2793_v28  ;;  %v2795_v50 = vrot.slane %v2793_v28, 4  ;;  %v513_v51 = vshrl.u32 %v7384_v5, 16  ;;  %4854 = vst.msk [vmem:[%s8729_s17 + $0xc8] sm:$0x1] %vm4805_vm9, %v6990_v32  ;;  %4857 = vst.msk [vmem:[%s8729_s17 + $0xd4] sm:$0x1] %vm4805_vm9, %v6990_v32 }
  0x6f   : > { %v496_v48 = vrot.slane %v495_v38, 4  ;;  %6315 = vmatprep.mubr.msk.bf16.mxu1 %vm658_vm3, %v5468_v42  ;;  %v516_v15 = vshll.u32 %v7384_v5, 16  ;;  %v522_v62 = vshll.u32 %v7396_v30, 16  ;;  %v526_v40 = vshrl.u32 %v7396_v30, 16 }
  0x70   : > { %v506_v33 = vrot.slane %v505_v44, 4  ;;  %v2797_v56 = vsel %vm7300_vm7, %v2795_v50, %v2796_v47  ;;  %v515_v57 = vrot.slane %v513_v51, 4  ;;  %v532_v63 = vshll.u32 %v217_v60, 16 }
  0x71   : > { %v501_v55 = vsel %vm7074_vm4, %v496_v48, %v500_v18  ;;  %v5753_v54 = vcombine.low %v2794_v49, %v2797_v56  ;;  %v518_v61 = vrot.slane %v516_v15, 5  ;;  %v524_v2 = vrot.slane %v522_v62, 5  ;;  %v7442_v56 = vld [vmem:[%s7048_s25 + $0xac] sm:$0xf] }
  0x72   : > { %v511_v58 = vsel %vm7074_vm4, %v506_v33, %v510_v45  ;;  %v528_v7 = vrot.slane %v526_v40, 4  ;;  %v534_v41 = vrot.slane %v532_v63, 5  ;;  %v5737_v17 = vrot.slane %v5721_v26, 9  ;;  %v7437_v33 = vld [vmem:[%s7048_s25 + $0xa8] sm:$0xf] }
  0x73   : > { %v5469_v6 = vcombine.low %v501_v55, %v511_v58  ;;  %6470 = vmatmul.mubr.msk.bf16.gmra.mrb[4].mxu0 %vm658_vm3, %v5753_v54  ;;  %v519_v14 = vor.u32 %v518_v61, %v515_v57  ;;  %v2800_v18 = vrot.slane %v7178_v20, 5  ;;  %v2803_v21 = vrot.slane %v7183_v34, 5  ;;  %v219_v61 = vld [vmem:[%s7048_s25 + $0xb0] sm:$0x1] }
  0x74   : > { %v537_v25 = vshrl.u32 %v7405_v52, 16  ;;  %v529_v31 = vor.u32 %v528_v7, %v524_v2  ;;  %v540_v38 = vshll.u32 %v7405_v52, 16  ;;  %v546_v1 = vshll.u32 %v7416_v46, 16 }
  0x75   : > { %6316 = vmatmul.mubr.msk.bf16.gmra.mrb[20].mxu1 %vm658_vm3, %v5469_v6  ;;  %v550_v28 = vshrl.u32 %v7416_v46, 16  ;;  %v520_v60 = vrot.slane %v519_v14, 4  ;;  %v2801_v42 = vsel %vm7300_vm7, %v5737_v17, %v2800_v18  ;;  %v2802_v20 = vrot.slane %v2800_v18, 4  ;;  %v7457_v14 = vld [vmem:[%s7048_s25 + $0xb4] sm:$0xf] }
  0x76   : > { %v539_v44 = vrot.slane %v537_v25, 4  ;;  %v530_v34 = vrot.slane %v529_v31, 4  ;;  %v542_v45 = vrot.slane %v540_v38, 5  ;;  %v548_v47 = vrot.slane %v546_v1, 5 }
  0x77   : > { %v552_v26 = vrot.slane %v550_v28, 4  ;;  %v525_v48 = vsel %vm7074_vm4, %v520_v60, %v524_v2  ;;  %v2804_v49 = vsel %vm7300_vm7, %v2802_v20, %v2803_v21  ;;  %v556_v50 = vshll.u32 %v218_v10, 16  ;;  %v5723_v2 = vld [vmem:[%s7048_s25 + $0x54] sm:$0xe] }
  0x78   : > { %v5738_v51 = vrot.slane %v5722_v11, 9  ;;  %v535_v15 = vsel %vm7074_vm4, %v530_v34, %v534_v41  ;;  %v5754_v62 = vcombine.low %v2801_v42, %v2804_v49  ;;  %v543_v40 = vor.u32 %v542_v45, %v539_v44  ;;  %v7466_v42 = vld [vmem:[%s7048_s25 + $0xb8] sm:$0xf]  ;;  %v220_v49 = vld [vmem:[%s7048_s25 + $0xbc] sm:$0x1] }
  0x79   : > { %v553_v55 = vor.u32 %v552_v26, %v548_v47  ;;  %v5470_v57 = vcombine.low %v525_v48, %v535_v15  ;;  %v558_v63 = vrot.slane %v556_v50, 5  ;;  %v2807_v58 = vrot.slane %v7201_v8, 5 }
  0x7a   : > { %v2810_v54 = vrot.slane %v7209_v23, 5  ;;  %6473 = vmatprep.mubr.msk.bf16.mxu0 %vm658_vm3, %v5754_v62  ;;  %v544_v6 = vrot.slane %v543_v40, 4  ;;  %v561_v41 = vshrl.u32 %v7437_v33, 16  ;;  %v564_v17 = vshll.u32 %v7437_v33, 16 }
  0x7b   : > { %v554_v7 = vrot.slane %v553_v55, 4  ;;  %6319 = vmatprep.mubr.msk.bf16.mxu1 %vm658_vm3, %v5470_v57  ;;  %v2808_v10 = vsel %vm7300_vm7, %v5738_v51, %v2807_v58  ;;  %v2809_v11 = vrot.slane %v2807_v58, 4  ;;  %v570_v8 = vshll.u32 %v7442_v56, 16  ;;  %v5724_v55 = vld [vmem:[%s7048_s25 + $0x60] sm:$0xe] }
  0x7c   : > { %v574_v23 = vshrl.u32 %v7442_v56, 16  ;;  %v549_v18 = vsel %vm7074_vm4, %v544_v6, %v548_v47  ;;  %v563_v25 = vrot.slane %v561_v41, 4  ;;  %v566_v31 = vrot.slane %v564_v17, 5  ;;  %v5725_v6 = vld [vmem:[%s7048_s25 + $0x6c] sm:$0xe] }
  0x7d   : > { %v559_v21 = vsel %vm7074_vm4, %v554_v7, %v558_v63  ;;  %v2811_v1 = vsel %vm7300_vm7, %v2809_v11, %v2810_v54  ;;  %v572_v28 = vrot.slane %v570_v8, 5  ;;  %v580_v34 = vshll.u32 %v219_v61, 16  ;;  %v5661_v11 = vld [vmem:[%s7048_s25 + $0x70] sm:$0xf]  ;;  %v5662_v8 = vld [vmem:[%s7048_s25 + $0x74] sm:$0x1] }
  0x7e   : > { %v5471_v38 = vcombine.low %v549_v18, %v559_v21  ;;  %v576_v60 = vrot.slane %v574_v23, 4  ;;  %v5755_v20 = vcombine.low %v2808_v10, %v2811_v1  ;;  %v567_v44 = vor.u32 %v566_v31, %v563_v25 }
  0x7f   : > { %v5739_v45 = vrot.slane %v5723_v2, 9  ;;  %v2814_v26 = vrot.slane %v7232_v4, 5  ;;  %v2817_v48 = vrot.slane %v7238_v12, 5  ;;  %v585_v50 = vshrl.u32 %v7457_v14, 16 }
  0x80   : > { %6320 = vmatmul.mubr.msk.bf16.gmra.mrb[24].mxu1 %vm658_vm3, %v5471_v38  ;;  %v577_v47 = vor.u32 %v576_v60, %v572_v28  ;;  %6474 = vmatmul.mubr.msk.bf16.gmra.mrb[8].mxu0 %vm658_vm3, %v5755_v20  ;;  %v568_v51 = vrot.slane %v567_v44, 4  ;;  %v582_v15 = vrot.slane %v580_v34, 5  ;;  %v588_v62 = vshll.u32 %v7457_v14, 16 }
  0x81   : > { %v594_v40 = vshll.u32 %v7466_v42, 16  ;;  %v2815_v4 = vsel %vm7300_vm7, %v5739_v45, %v2814_v26  ;;  %v2816_v12 = vrot.slane %v2814_v26, 4  ;;  %v587_v63 = vrot.slane %v585_v50, 4 }
  0x82   : > { %v578_v57 = vrot.slane %v577_v47, 4  ;;  %v573_v58 = vsel %vm7074_vm4, %v568_v51, %v572_v28  ;;  %v590_v54 = vrot.slane %v588_v62, 5  ;;  %v598_v2 = vshrl.u32 %v7466_v42, 16  ;;  %v5726_v47 = vld [vmem:[%s7048_s25 + $0x78] sm:$0xe] }
  0x83   : > { %v596_v61 = vrot.slane %v594_v40, 5  ;;  %v2818_v41 = vsel %vm7300_vm7, %v2816_v12, %v2817_v48  ;;  %v604_v17 = vshll.u32 %v220_v49, 16  ;;  %v5740_v10 = vrot.slane %v5724_v55, 9  ;;  %v6925_v51 = vld [vmem:[%s7048_s25] sm:$0xf] }
  0x84   : > { %v583_v7 = vsel %vm7074_vm4, %v578_v57, %v582_v15  ;;  %v5756_v18 = vcombine.low %v2815_v4, %v2818_v41  ;;  %v591_v21 = vor.u32 %v590_v54, %v587_v63  ;;  %v600_v25 = vrot.slane %v598_v2, 4  ;;  %v7504_v15 = vld [vmem:[%s7048_s25 + $0x4] sm:$0xf]  ;;  %v7508_v40 = vld [vmem:[%s7048_s25 + $0x7c] sm:$0xf] }
  0x85   : > { %v5472_v23 = vcombine.low %v573_v58, %v583_v7  ;;  %v606_v31 = vrot.slane %v604_v17, 5  ;;  %v2821_v38 = vrot.slane %v7262_v59, 5  ;;  %v2824_v1 = vrot.slane %v7269_v9, 5  ;;  %v7511_v55 = vld [vmem:[%s7048_s25 + $0x80] sm:$0x1] }
  0x86   : > { %v5741_v28 = vrot.slane %v5725_v6, 9  ;;  %6477 = vmatprep.mubr.msk.bf16.mxu0 %vm658_vm3, %v5756_v18  ;;  %v592_v60 = vrot.slane %v591_v21, 4  ;;  %v601_v20 = vor.u32 %v600_v25, %v596_v61  ;;  %v2828_v44 = vrot.slane %v5661_v11, 5  ;;  %v5667_v57 = vld [vmem:[%s7048_s25 + $0x88] sm:$0xf] }
  0x87   : > { %6323 = vmatprep.mubr.msk.bf16.mxu1 %vm658_vm3, %v5472_v23  ;;  %v2831_v34 = vrot.slane %v5662_v8, 5  ;;  %v2822_v45 = vsel %vm7300_vm7, %v5740_v10, %v2821_v38  ;;  %v2823_v59 = vrot.slane %v2821_v38, 4  ;;  %v5490_v62 = vcombine.low %v6925_v51, %v7504_v15  ;;  %v5668_v54 = vld [vmem:[%s7048_s25 + $0x8c] sm:$0x1]  ;;  %v5670_v17 = vld [vmem:[%s7048_s25 + $0x94] sm:$0xf] }
  0x88   : > { %v597_v9 = vsel %vm7074_vm4, %v592_v60, %v596_v61  ;;  %v602_v26 = vrot.slane %v601_v20, 4  ;;  %v2829_v48 = vsel %vm7300_vm7, %v5741_v28, %v2828_v44  ;;  %v2830_v49 = vrot.slane %v2828_v44, 4  ;;  %v5727_v61 = vld [vmem:[%s7048_s25 + $0x84] sm:$0xe]  ;;  %v5728_v23 = vld [vmem:[%s7048_s25 + $0x90] sm:$0xe] }
  0x89   : > { %v2825_v50 = vsel %vm7300_vm7, %v2823_v59, %v2824_v1  ;;  %v5742_v58 = vrot.slane %v5726_v47, 9  ;;  %v2835_v7 = vrot.slane %v7508_v40, 5  ;;  %v2838_v41 = vrot.slane %v7511_v55, 5  ;;  %v5671_v25 = vld [vmem:[%s7048_s25 + $0x98] sm:$0x1] }
  0x8a   : > { %v607_v4 = vsel %vm7074_vm4, %v602_v26, %v606_v31  ;;  %v5757_v12 = vcombine.low %v2822_v45, %v2825_v50  ;;  %v2832_v63 = vsel %vm7300_vm7, %v2830_v49, %v2831_v34  ;;  %v5743_v10 = vrot.slane %v5727_v61, 9  ;;  %v5673_v31 = vld [vmem:[%s7048_s25 + $0xa0] sm:$0xf]  ;;  %v5674_v60 = vld [vmem:[%s7048_s25 + $0xa4] sm:$0x1] }
  0x8b   : > { %v5473_v2 = vcombine.low %v597_v9, %v607_v4  ;;  %v5758_v6 = vcombine.low %v2829_v48, %v2832_v63  ;;  %v2842_v11 = vrot.slane %v5667_v57, 5  ;;  %v2845_v8 = vrot.slane %v5668_v54, 5  ;;  %v5729_v20 = vld [vmem:[%s7048_s25 + $0x9c] sm:$0xe]  ;;  %v6927_v44 = vld [vmem:[%s7048_s25 + $0xc] sm:$0xf] }
  0x8c   : > { %6478 = vmatmul.mubr.msk.bf16.gmra.mrb[12].mxu0 %vm658_vm3, %v5757_v12  ;;  %v2836_v18 = vsel %vm7300_vm7, %v5742_v58, %v2835_v7  ;;  %v2837_v21 = vrot.slane %v2835_v7, 4  ;;  %v2849_v28 = vrot.slane %v5670_v17, 5  ;;  %v7538_v34 = vld [vmem:[%s7048_s25 + $0x10] sm:$0xf]  ;;  %v6929_v47 = vld [vmem:[%s7048_s25 + $0x18] sm:$0xf] }
  0x8d   : > { %6324 = vmatmul.mubr.msk.bf16.gmra.mrb[28].mxu1 %vm658_vm3, %v5473_v2  ;;  %6481 = vmatprep.mubr.msk.bf16.mxu0 %vm658_vm3, %v5758_v6  ;;  %v2843_v38 = vsel %vm7300_vm7, %v5743_v10, %v2842_v11  ;;  %v2844_v1 = vrot.slane %v2842_v11, 4  ;;  %v5491_v45 = vcombine.low %v6927_v44, %v7538_v34  ;;  %v7545_v9 = vld [vmem:[%s7048_s25 + $0x1c] sm:$0xf]  ;;  %v5744_v48 = vrot.slane %v5728_v23, 9  ;;  %v5676_v57 = vld [vmem:[%s7048_s25 + $0xac] sm:$0xf] }
  0x8e   : > { %6329 = vmatprep.mubr.msk.bf16.mxu1 %vm658_vm3, %v5490_v62  ;;  %v2839_v59 = vsel %vm7300_vm7, %v2837_v21, %v2838_v41  ;;  %v5492_v26 = vcombine.low %v6929_v47, %v7545_v9  ;;  %v2851_v51 = vrot.slane %v2849_v28, 4  ;;  %v2852_v62 = vrot.slane %v5671_v25, 5  ;;  %v6931_v54 = vld [vmem:[%s9206_s1 + $0x2] sm:$0x1]  ;;  %v5679_v2 = vld [vmem:[%s7048_s25 + $0xb8] sm:$0xf] }
  0x8f   : > { %v5759_v49 = vcombine.low %v2836_v18, %v2839_v59  ;;  %v2846_v50 = vsel %vm7300_vm7, %v2844_v1, %v2845_v8  ;;  %v5745_v12 = vrot.slane %v5729_v20, 9  ;;  %v2856_v63 = vrot.slane %v5673_v31, 5  ;;  %v7560_v7 = vld [vmem:[%s9206_s1 + $0x3] sm:$0x1]  ;;  %v5677_v10 = vld [vmem:[%s7048_s25 + $0xb0] sm:$0x1] }
  0x90   : > { %v5760_v4 = vcombine.low %v2843_v38, %v2846_v50  ;;  %v2859_v58 = vrot.slane %v5674_v60, 5  ;;  %v1426_v61 = vsel %vm707_vm0, %v6931_v54, 0  ;;  %v2850_v41 = vsel %vm7300_vm7, %v5744_v48, %v2849_v28  ;;  %v5730_v11 = vld [vmem:[%s7048_s25 + $0xa8] sm:$0xe]  ;;  %v5680_v25 = vld [vmem:[%s7048_s25 + $0xbc] sm:$0x1] }
  0x91   : > { %v2858_v6 = vrot.slane %v2856_v63, 4  ;;  %v2853_v17 = vsel %vm7300_vm7, %v2851_v51, %v2852_v62  ;;  %v2863_v8 = vrot.slane %v5676_v57, 5  ;;  %v2857_v23 = vsel %vm7300_vm7, %v5745_v12, %v2856_v63  ;;  %v5731_v31 = vld [vmem:[%s7048_s25 + $0xb4] sm:$0xe]  ;;  %v6932_v38 = vld [vmem:[%s7048_s25 + $0x24] sm:$0xf] }
  0x92   : > { %v2870_v21 = vrot.slane %v5679_v2, 5  ;;  %v7581_v1 = vld [vmem:[%s7048_s25 + $0x28] sm:$0xf]  ;;  %v5761_v60 = vcombine.low %v2850_v41, %v2853_v17  ;;  %v5746_v44 = vrot.slane %v5730_v11, 9  ;;  %v2866_v59 = vrot.slane %v5677_v10, 5 }
  0x93   : > { %v2860_v18 = vsel %vm7300_vm7, %v2858_v6, %v2859_v58  ;;  %v5493_v28 = vcombine.low %v6932_v38, %v7581_v1  ;;  %v6934_v47 = vld [vmem:[%s7048_s25 + $0x30] sm:$0xf]  ;;  %v2873_v51 = vrot.slane %v5680_v25, 5  ;;  %v5682_v62 = vld [vmem:[%s7048_s25 + $0xc4] sm:$0xf]  ;;  %v2258_v25 = vshrl.u32 %v7508_v40, 16 }
  0x94   : > { %6482 = vmatmul.mubr.msk.bf16.gmra.mrb[16].mxu0 %vm658_vm3, %v5759_v49  ;;  %v5762_v20 = vcombine.low %v2857_v23, %v2860_v18  ;;  %v5747_v49 = vrot.slane %v5731_v31, 9  ;;  %v2872_v50 = vrot.slane %v2870_v21, 4  ;;  %v2864_v57 = vsel %vm7300_vm7, %v5746_v44, %v2863_v8  ;;  %v5732_v12 = vld [vmem:[%s7048_s25 + $0xc0] sm:$0xe]  ;;  %v6936_v41 = vld [vmem:[%s7048_s25 + $0x3c] sm:$0xf] }
  0x95   : > { %6330 = vmatmul.mubr.msk.bf16.vlgmr.msra.gmra.mrb[0].mxu1 %vm658_vm3, %v5491_v45  ;;  %6485 = vmatprep.mubr.msk.bf16.mxu0 %vm658_vm3, %v5760_v4  ;;  %v2865_v45 = vrot.slane %v2863_v8, 4  ;;  %v2877_v63 = vrot.slane %v5682_v62, 5  ;;  %v5748_v6 = vrot.slane %v5732_v12, 9  ;;  %v7606_v17 = vld [vmem:[%s7048_s25 + $0x40] sm:$0xf]  ;;  %v5496_v18 = vcombine.low %v7213_v27, %v7216_v36  ;;  %v6888_v62 = vld [vmem:[%s7048_s25 + $0x24] sm:$0xff]  }
  0x96   : > { %6362 = vmatpush3.bf16.msra.mxu1 %v1426_v61  ;;  %6333 = vmatprep.mubr.msk.bf16.mxu1 %vm658_vm3, %v5492_v26  ;;  %v7586_v26 = vld [vmem:[%s7048_s25 + $0x34] sm:$0xf]  ;;  %v2871_v58 = vsel %vm7300_vm7, %v5747_v49, %v2870_v21  ;;  %v2874_v54 = vsel %vm7300_vm7, %v2872_v50, %v2873_v51  ;;  %v5683_v61 = vld [vmem:[%s7048_s25 + $0xc8] sm:$0x1]  ;;  %v5495_v10 = vcombine.low %v6936_v41, %v7606_v17  ;;  %v2254_v21 = vshll.u32 %v7508_v40, 16 }
  0x97   : > { %6860 = vmatprep.subr.msk.bf16.mxu1 %vm707_vm0, %v7560_v7  ;;  %v5494_v48 = vcombine.low %v6934_v47, %v7586_v26  ;;  %v2867_v4 = vsel %vm7300_vm7, %v2865_v45, %v2866_v59  ;;  %v5764_v11 = vcombine.low %v2871_v58, %v2874_v54  ;;  %v2879_v8 = vrot.slane %v2877_v63, 4  ;;  %v1164_v45 = vld [vmem:[%s7048_s25] sm:$0xe]  ;;  %v1165_v59 = vld [vmem:[%s7048_s25 + $0xc] sm:$0xe] }
  0x98   : > { %v5763_v2 = vcombine.low %v2864_v57, %v2867_v4  ;;  %v2880_v23 = vrot.slane %v5683_v61, 5  ;;  %v2878_v31 = vsel %vm7300_vm7, %v5748_v6, %v2877_v63  ;;  %v7621_v27 = vrot.slane %v2254_v21, 5  ;;  %v1168_v41 = vld [vmem:[%s7048_s25 + $0x30] sm:$0xe] }
  0x99   : > { %v2260_v36 = vrot.slane %v2258_v25, 4  ;;  %v5498_v44 = vcombine.low %v7273_v19, %v7279_v35  ;;  %v2264_v47 = vshll.u32 %v7511_v55, 16  ;;  %v5522_v19 = vrot.slane %v1164_v45, 9 }
  0x9a   : > { %v2881_v38 = vsel %vm7300_vm7, %v2879_v8, %v2880_v23  ;;  %9227 = vst [vmem:[#allocation3_spill] sm:$0xff] %v7621_v27  ;;  %v5523_v35 = vrot.slane %v1165_v59, 9  ;;  %v1231_v4 = vrot.slane %v7545_v9, 5  ;;  %v1238_v12 = vrot.slane %v7581_v1, 5  ;;  %v1169_v8 = vld [vmem:[%s7048_s25 + $0x3c] sm:$0xe] }
  0x9b   : > { %v5765_v40 = vcombine.low %v2878_v31, %v2881_v38  ;;  %v2261_v49 = vor.u32 %v2260_v36, %v7621_v27  ;;  %v7641_v51 = vrot.slane %v2264_v47, 5  ;;  %v5499_v58 = vcombine.low %v7294_v0, %v7307_v29  ;;  %v1170_v31 = vld [vmem:[%s7048_s25 + $0x48] sm:$0xe]  ;;  %v6942_v59 = vld [vmem:[%s7048_s25 + $0x38] sm:$0x1] }
  0x9c   : > { %6486 = vmatmul.mubr.msk.bf16.gmra.mrb[20].mxu0 %vm658_vm3, %v5761_v60  ;;  %v5497_v60 = vcombine.low %v7242_v24, %v7248_v37  ;;  %v6939_v24 = vld [vmem:[%s7048_s25 + $0x14] sm:$0x1]  ;;  %v4066_v54 = vsel %vm707_vm0, %v7365_v22, 0  ;;  %v5500_v61 = vcombine.low %v7326_v53, %v7333_v16  ;;  %v5501_v6 = vcombine.low %v7352_v39, %v7360_v43  ;;  %v6940_v16 = vld [vmem:[%s7048_s25 + $0x20] sm:$0x1] }
  0x9d   : > { %6334 = vmatmul.mubr.msk.bf16.gmra.mrb[4].mxu1 %vm658_vm3, %v5493_v28  ;;  %6489 = vmatprep.mubr.msk.bf16.mxu0 %vm658_vm3, %v5762_v20  ;;  %v1224_v28 = vrot.slane %v7538_v34, 5  ;;  %v6886_v20 = vld [vmem:[%s7048_s25 + $0x18] sm:$0xff]   ;;  %v6938_v34 = vld [vmem:[%s7048_s25 + $0x8] sm:$0x1]  ;;  %v1227_v37 = vrot.slane %v6939_v24, 5  ;;  %9228 = vst [vmem:[#allocation4_spill] sm:$0xff] %v7641_v51  ;;  %v5502_v9 = vcombine.low %v7384_v5, %v7396_v30 }
  0x9e   : > { %6337 = vmatprep.mubr.msk.bf16.mxu1 %vm658_vm3, %v5494_v48  ;;  %v1217_v48 = vrot.slane %v7504_v15, 5  ;;  %v1220_v50 = vrot.slane %v6938_v34, 5  ;;  %v1166_v15 = vld [vmem:[%s7048_s25 + $0x18] sm:$0xe]  ;;  %v7646_v63 = vrot.slane %v2261_v49, 4  ;;  %v1234_v22 = vrot.slane %v6940_v16, 5 }
  0x9f   : > { %v1226_v55 = vrot.slane %v1224_v28, 4  ;;  %v5524_v1 = vrot.slane %v1166_v15, 9  ;;  %v7668_v29 = vsel %vm7300_vm7, %v5523_v35, %v1224_v28  ;;  %v1240_v25 = vrot.slane %v1238_v12, 4  ;;  %v5847_v24 = vld [vmem:[%s7048_s25 + $0x18] sm:$0xf] }
  0xa0   : > { %v1219_v57 = vrot.slane %v1217_v48, 4  ;;  %9229 = vst [vmem:[#allocation5_spill] sm:$0xff] %v7646_v63  ;;  %v7664_v0 = vsel %vm7300_vm7, %v5522_v19, %v1217_v48  ;;  %v1248_v47 = vrot.slane %v6942_v59, 5  ;;  %v7705_v49 = vsel %vm707_vm0, %v7560_v7, 0  ;;  %v5848_v7 = vld [vmem:[%s7048_s25 + $0x1c] sm:$0xf] }
  0xa1   : > { %v7672_v53 = vsel %vm7300_vm7, %v1226_v55, %v1227_v37  ;;  %v7709_v34 = vsel %vm7300_vm7, %v5524_v1, %v1231_v4  ;;  %v6892_v37 = vld [vmem:[%s7048_s25 + $0x3c] sm:$0xff]   ;;  %v5527_v35 = vrot.slane %v1169_v8, 9  ;;  %v6943_v55 = vld [vmem:[%s7048_s25 + $0x44] sm:$0x1]  ;;  %v3587_v8 = vshll.u32 %v5847_v24, 16 }
  0xa2   : > { %v7683_v23 = vsel %vm7300_vm7, %v1219_v57, %v1220_v50  ;;  %v1171_v50 = vld [vmem:[%s7048_s25 + $0x54] sm:$0xe]  ;;  %v1255_v15 = vrot.slane %v6943_v55, 5  ;;  %v5851_v39 = vld [vmem:[%s7048_s25 + $0x28] sm:$0xf] }
  0xa3   : > { %v6950_v5 = vld [vmem:[%s7048_s25 + $0x70] sm:$0xf]  ;;  %vm4955_vm12 = vsmask.f32 4368 }
  0xa4   : > { %6490 = vmatmul.mubr.msk.bf16.gmra.mrb[24].mxu0 %vm658_vm3, %v5763_v2  ;;  %v1167_v2 = vld [vmem:[%s7048_s25 + $0x24] sm:$0xe]  ;;  %v1280_v30 = vrot.slane %v6950_v5, 5  ;;  %vm8880_vm14 = vmor %vm4954_vm11, %vm4955_vm12 }
  0xa5   : > { %6338 = vmatmul.mubr.msk.bf16.gmra.mrb[8].mxu1 %vm658_vm3, %v5495_v10  ;;  %6493 = vmatprep.mubr.msk.bf16.mxu0 %vm658_vm3, %v5764_v11  ;;  %v1245_v10 = vrot.slane %v7586_v26, 5  ;;  %v6890_v11 = vld [vmem:[%s7048_s25 + $0x30] sm:$0xff]   ;;  %v7679_v26 = vld [vmem:[%s9206_s1 + $0x8] sm:$0x1]  ;;  %v5525_v21 = vrot.slane %v1167_v2, 9 }
  0xa6   : > { %6341 = vmatprep.mubr.msk.bf16.mxu1 %vm658_vm3, %v5496_v18  ;;  %v1233_v18 = vrot.slane %v1231_v4, 4  ;;  %v1282_v48 = vrot.slane %v1280_v30, 4 }
  0xa7   : > { %v1247_v45 = vrot.slane %v1245_v10, 4  ;;  %v7716_v19 = vsel %vm7300_vm7, %v5525_v21, %v1238_v12  ;;  %v3597_v21 = vshrl.u32 %v5848_v7, 16 }
  0xa8   : > { %v7725_v4 = vsel %vm7300_vm7, %v1233_v18, %v1234_v22  ;;  %v3584_v22 = vshrl.u32 %v5847_v24, 16  ;;  %v3593_v18 = vshll.u32 %v5848_v7, 16  ;;  %v5850_v24 = vld [vmem:[%s7048_s25 + $0x24] sm:$0xf] }
  0xa9   : > { %v7738_v1 = vsel %vm7300_vm7, %v1247_v45, %v1248_v47 }
  0xaa   : > { %v3586_v43 = vrot.slane %v3584_v22, 4  ;;  %v7780_v7 = vrot.slane %v3593_v18, 5  ;;  %v3611_v22 = vshll.u32 %v5850_v24, 16  ;;  %v3621_v18 = vshrl.u32 %v5851_v39, 16 }
  0xac   : > { %6494 = vmatmul.mubr.msk.bf16.gmra.mrb[28].mxu0 %vm658_vm3, %v5765_v40  ;;  %v6941_v40 = vld [vmem:[%s7048_s25 + $0x2c] sm:$0x1]  ;;  %v3613_v27 = vrot.slane %v3611_v22, 5 }
  0xad   : > { %6342 = vmatmul.mubr.msk.bf16.gmra.mrb[12].mxu1 %vm658_vm3, %v5497_v60  ;;  %6499 = vmatprep.mubr.msk.bf16.mxu0 %vm658_vm3, %v6886_v20  ;;  %v1241_v28 = vrot.slane %v6941_v40, 5  ;;  %v1252_v60 = vrot.slane %v7606_v17, 5  ;;  %v6946_v40 = vld [vmem:[%s7048_s25 + $0x50] sm:$0x1]  ;;  %v6951_v17 = vld [vmem:[%s7048_s25 + $0x74] sm:$0x1] }
  0xae   : > { %6345 = vmatprep.mubr.msk.bf16.mxu1 %vm658_vm3, %v5498_v44  ;;  %v5526_v44 = vrot.slane %v1168_v41, 9  ;;  %v5529_v41 = vrot.slane %v1171_v50, 9  ;;  %v1172_v50 = vld [vmem:[%s7048_s25 + $0x60] sm:$0xe]  ;;  %v5852_v20 = vld [vmem:[%s7048_s25 + $0x2c] sm:$0x1] }
  0xaf   : > { %v1254_v12 = vrot.slane %v1252_v60, 4  ;;  %v7751_v45 = vsel %vm7300_vm7, %v5527_v35, %v1252_v60  ;;  %v6947_v35 = vld [vmem:[%s7048_s25 + $0x5c] sm:$0x1] }
  0xb0   : > { %v7734_v2 = vsel %vm7300_vm7, %v5526_v44, %v1245_v10  ;;  %v1269_v55 = vrot.slane %v6947_v35, 5  ;;  %v1173_v35 = vld [vmem:[%s7048_s25 + $0x6c] sm:$0xe] }
  0xb1   : > { %v7755_v59 = vsel %vm7300_vm7, %v1254_v12, %v1255_v15  ;;  %v6948_v15 = vld [vmem:[%s7048_s25 + $0x64] sm:$0xf]  ;;  %v3599_v12 = vrot.slane %v3597_v21, 4  ;;  %v5531_v5 = vrot.slane %v1173_v35, 9 }
  0xb2   : > { %v6898_v21 = vld [vmem:[%s7048_s25 + $0x60] sm:$0xff]  }
  0xb4   : > { %6500 = vmatmul.mubr.msk.bf16.vlgmr.msra.gmra.mrb[0].mxu0 %vm658_vm3, %v6888_v62  ;;  %v6944_v62 = vld [vmem:[%s7048_s25 + $0x4c] sm:$0xf] }
  0xb5   : > { %6346 = vmatmul.mubr.msk.bf16.gmra.mrb[16].mxu1 %vm658_vm3, %v5499_v58  ;;  %6532 = vmatpush3.bf16.msra.mxu0 %v4066_v54  ;;  %v1259_v57 = vrot.slane %v6944_v62, 5  ;;  %v7729_v58 = vsel %vm7300_vm7, %v1240_v25, %v1241_v28  ;;  %v5528_v54 = vrot.slane %v1170_v31, 9  ;;  %v1262_v28 = vrot.slane %v6946_v40, 5 }
  0xb6   : > { %6349 = vmatprep.mubr.msk.bf16.mxu1 %vm658_vm3, %v5500_v61  ;;  %6503 = vmatprep.mubr.msk.bf16.mxu0 %vm658_vm3, %v6890_v11  ;;  %v6894_v61 = vld [vmem:[%s7048_s25 + $0x48] sm:$0xff]   ;;  %v6945_v11 = vld [vmem:[%s7048_s25 + $0x58] sm:$0xf]  ;;  %v1273_v62 = vrot.slane %v6948_v15, 5  ;;  %v5854_v15 = vld [vmem:[%s7048_s25 + $0x34] sm:$0xf] }
  0xb7   : > { %6866 = vmatprep.subr.msk.bf16.mxu0 %vm707_vm0, %v7679_v26  ;;  %v1266_v16 = vrot.slane %v6945_v11, 5  ;;  %v1261_v31 = vrot.slane %v1259_v57, 4  ;;  %v7759_v47 = vsel %vm7300_vm7, %v5528_v54, %v1259_v57  ;;  %v5849_v57 = vld [vmem:[%s7048_s25 + $0x20] sm:$0x1]  ;;  %v5853_v54 = vld [vmem:[%s7048_s25 + $0x30] sm:$0xf] }
  0xb8   : > { %v5530_v11 = vrot.slane %v1172_v50, 9  ;;  %v3635_v50 = vshll.u32 %v5853_v54, 16  ;;  %v3603_v25 = vshll.u32 %v5849_v57, 16  ;;  %v3641_v36 = vshll.u32 %v5854_v15, 16 }
  0xb9   : > { %v7770_v60 = vsel %vm7300_vm7, %v5529_v41, %v1266_v16  ;;  %v7786_v41 = vsel %vm7300_vm7, %v1261_v31, %v1262_v28  ;;  %v1275_v31 = vrot.slane %v1273_v62, 4  ;;  %v3632_v28 = vshrl.u32 %v5853_v54, 16 }
  0xba   : > { %v7828_v35 = vrot.slane %v3641_v36, 5 }
  0xbc   : > { %6504 = vmatmul.mubr.msk.bf16.gmra.mrb[4].mxu0 %vm658_vm3, %v6892_v37  ;;  %v1268_v37 = vrot.slane %v1266_v16, 4  ;;  %v6949_v16 = vld [vmem:[%s7048_s25 + $0x68] sm:$0x1] }
  0xbd   : > { %6350 = vmatmul.mubr.msk.bf16.gmra.mrb[20].mxu1 %vm658_vm3, %v5501_v6  ;;  %6507 = vmatprep.mubr.msk.bf16.mxu0 %vm658_vm3, %v6894_v61  ;;  %v3589_v6 = vrot.slane %v3587_v8, 5  ;;  %v6896_v61 = vld [vmem:[%s7048_s25 + $0x54] sm:$0xff]   ;;  %v1276_v40 = vrot.slane %v6949_v16, 5  ;;  %v3617_v8 = vshll.u32 %v5851_v39, 16  ;;  %v3600_v16 = vor.u32 %v3599_v12, %v7780_v7 }
  0xbe   : > { %6353 = vmatprep.mubr.msk.bf16.mxu1 %vm658_vm3, %v5502_v9  ;;  %v3608_v9 = vshrl.u32 %v5850_v24, 16  ;;  %v7795_v44 = vsel %vm7300_vm7, %v1268_v37, %v1269_v55  ;;  %v1283_v24 = vrot.slane %v6951_v17, 5  ;;  %v3645_v39 = vshrl.u32 %v5854_v15, 16 }
  0xbf   : > { %v3590_v10 = vor.u32 %v3589_v6, %v3586_v43  ;;  %v7801_v37 = vrot.slane %v3617_v8, 5  ;;  %v3623_v55 = vrot.slane %v3621_v18, 4  ;;  %v9230_v43 = vcombine.low %v7405_v52, %v7416_v46  ;;  %v6952_v8 = vld [vmem:[%s7048_s25 + $0x7c] sm:$0xf]  ;;  %v7837_v18 = vld [vmem:[%s7048_s25 + $0x38] sm:$0x1] }
  0xc0   : > { %v3610_v38 = vrot.slane %v3608_v9, 4  ;;  %v7810_v17 = vsel %vm7300_vm7, %v5530_v11, %v1273_v62  ;;  %v7814_v57 = vsel %vm7300_vm7, %v1275_v31, %v1276_v40  ;;  %v3634_v6 = vrot.slane %v3632_v28, 4  ;;  %9232 = vst [vmem:[#allocation6_spill] sm:$0xff] %v7837_v18 }
  0xc1   : > { %v3637_v12 = vrot.slane %v3635_v50, 5  ;;  %v9231_v52 = vcombine.low %v7437_v33, %v7442_v56  ;;  %v3591_v46 = vrot.slane %v3590_v10, 4  ;;  %v3601_v54 = vrot.slane %v3600_v16, 4  ;;  %v6900_v33 = vld [vmem:[%s7048_s25 + $0x6c] sm:$0xff]   ;;  %v1175_v16 = vld [vmem:[%s7048_s25 + $0x84] sm:$0xe] }
  0xc2   : > { %v3627_v62 = vshll.u32 %v5852_v20, 16  ;;  %v7822_v11 = vsel %vm7300_vm7, %v5531_v5, %v1280_v30  ;;  %v7826_v40 = vsel %vm7300_vm7, %v1282_v48, %v1283_v24  ;;  %v3647_v9 = vrot.slane %v3645_v39, 4  ;;  %v6901_v48 = vld [vmem:[%s7048_s25 + $0x78] sm:$0xff]  }
  0xc3   : > { %v3614_v10 = vor.u32 %v3613_v27, %v3610_v38  ;;  %v3624_v20 = vor.u32 %v3623_v55, %v7801_v37  ;;  %v1287_v30 = vrot.slane %v6952_v8, 5  ;;  %v3638_v38 = vor.u32 %v3637_v12, %v3634_v6  ;;  %v5856_v5 = vld [vmem:[%s7048_s25 + $0x3c] sm:$0xf] }
  0xc4   : > { %6508 = vmatmul.mubr.msk.bf16.gmra.mrb[8].mxu0 %vm658_vm3, %v6896_v61  ;;  %v3605_v61 = vrot.slane %v3603_v25, 5  ;;  %v1174_v25 = vld [vmem:[%s7048_s25 + $0x78] sm:$0xe]  ;;  %v7853_v50 = vrot.slane %v3627_v62, 5  ;;  %v3648_v39 = vor.u32 %v3647_v9, %v7828_v35  ;;  %v3651_v55 = vshll.u32 %v7837_v18, 16 }
  0xc5   : > { %6354 = vmatmul.mubr.msk.bf16.gmra.mrb[24].mxu1 %vm658_vm3, %v9230_v43  ;;  %6511 = vmatprep.mubr.msk.bf16.mxu0 %vm658_vm3, %v6898_v21  ;;  %v3596_v21 = vsel %vm7074_vm4, %v3591_v46, %v7780_v7  ;;  %v5532_v24 = vrot.slane %v1174_v25, 9  ;;  %v6953_v43 = vld [vmem:[%s7048_s25 + $0x88] sm:$0xf]  ;;  %v7861_v7 = vld [vmem:[%s7048_s25 + $0x40] sm:$0xf]  ;;  %v3615_v12 = vrot.slane %v3614_v10, 4  ;;  %v9234_v62 = vcombine.low %v7457_v14, %v7466_v42 }
  0xc6   : > { %6357 = vmatprep.mubr.msk.bf16.mxu1 %vm658_vm3, %v9231_v52  ;;  %v3606_v31 = vsel %vm7074_vm4, %v3601_v54, %v3605_v61  ;;  %v1294_v6 = vrot.slane %v6953_v43, 5  ;;  %9233 = vst [vmem:[#allocation7_spill] sm:$0xff] %v7861_v7  ;;  %v3625_v52 = vrot.slane %v3624_v20, 4  ;;  %v1289_v46 = vrot.slane %v1287_v30, 4  ;;  %v6954_v54 = vld [vmem:[%s7048_s25 + $0x80] sm:$0x1] }
  0xc7   : > { %v1290_v61 = vrot.slane %v6954_v54, 5  ;;  %v3639_v9 = vrot.slane %v3638_v38, 4  ;;  %v5533_v25 = vrot.slane %v1175_v16, 9  ;;  %v3656_v8 = vshrl.u32 %v5856_v5, 16  ;;  %v6902_v10 = vld [vmem:[%s7048_s25 + $0x84] sm:$0xff]  }
  0xc8   : > { %v3659_v43 = vshll.u32 %v5856_v5, 16  ;;  %v7875_v20 = vcombine.low %v3596_v21, %v3606_v31  ;;  %v7879_v14 = vsel %vm707_vm0, %v7679_v26, 0  ;;  %v3669_v38 = vshrl.u32 %v7861_v7, 16  ;;  %v6903_v21 = vld [vmem:[%s7048_s25 + $0x90] sm:$0xff]   ;;  %v6959_v18 = vld [vmem:[%s7048_s25 + $0xa0] sm:$0xf] }
  0xc9   : > { %v3649_v16 = vrot.slane %v3648_v39, 4  ;;  %v3653_v5 = vrot.slane %v3651_v55, 5  ;;  %v1296_v54 = vrot.slane %v1294_v6, 4  ;;  %v3620_v31 = vsel %vm7074_vm4, %v3615_v12, %v7801_v37 }
  0xca   : > { %v3630_v26 = vsel %vm7074_vm4, %v3625_v52, %v7853_v50  ;;  %v7894_v39 = vsel %vm7300_vm7, %v5532_v24, %v1287_v30  ;;  %v7898_v55 = vsel %vm7300_vm7, %v1289_v46, %v1290_v61  ;;  %v3644_v37 = vsel %vm7074_vm4, %v3639_v9, %v7828_v35  ;;  %v5862_v30 = vld [vmem:[%s7048_s25 + $0x54] sm:$0xf]  ;;  %v7915_v24 = vld [vmem:[%s7048_s25 + $0x58] sm:$0xf]  ;;  %v7920_v61 = vld [vmem:[%s7048_s25 + $0x90] sm:$0xe] }
  0xcb   : > { %v7911_v12 = vsel %vm7300_vm7, %v5533_v25, %v1294_v6  ;;  %v3658_v50 = vrot.slane %v3656_v8, 4  ;;  %v3661_v52 = vrot.slane %v3659_v43, 5  ;;  %v3671_v46 = vrot.slane %v3669_v38, 4 }
  0xcc   : > { %6512 = vmatmul.mubr.msk.bf16.gmra.mrb[12].mxu0 %vm658_vm3, %v6900_v33  ;;  %v9235_v33 = vcombine.low %v7664_v0, %v7683_v23  ;;  %v6955_v0 = vld [vmem:[%s7048_s25 + $0x8c] sm:$0x1]  ;;  %v3654_v36 = vsel %vm7074_vm4, %v3649_v16, %v3653_v5  ;;  %v3704_v25 = vshrl.u32 %v5862_v30, 16  ;;  %v3707_v8 = vshll.u32 %v5862_v30, 16 }
  0xcd   : > { %6358 = vmatmul.mubr.msk.bf16.gmra.mrb[28].mxu1 %vm658_vm3, %v9234_v62  ;;  %6515 = vmatprep.mubr.msk.bf16.mxu0 %vm658_vm3, %v6901_v48  ;;  %v3665_v48 = vshll.u32 %v7861_v7, 16  ;;  %v1297_v23 = vrot.slane %v6955_v0, 5  ;;  %v5859_v62 = vld [vmem:[%s7048_s25 + $0x48] sm:$0xf]  ;;  %v7904_v0 = vld [vmem:[%s7048_s25 + $0x4c] sm:$0xf]  ;;  %v9237_v38 = vcombine.low %v7668_v29, %v7672_v53  ;;  %v7938_v16 = vcombine.low %v3620_v31, %v3630_v26 }
  0xce   : > { %6363 = vmatprep.mubr.msk.bf16.mxu1 %vm658_vm3, %v9235_v33  ;;  %v7901_v33 = vld [vmem:[%s7048_s25 + $0x44] sm:$0x1]  ;;  %v3680_v27 = vshrl.u32 %v5859_v62, 16  ;;  %v3683_v15 = vshll.u32 %v5859_v62, 16  ;;  %v3689_v6 = vshll.u32 %v7904_v0, 16  ;;  %v3693_v9 = vshrl.u32 %v7904_v0, 16 }
  0xcf   : > { %9236 = vst [vmem:[#allocation8_spill] sm:$0xff] %v7901_v33  ;;  %v7917_v28 = vrot.slane %v3665_v48, 5  ;;  %v7926_v35 = vsel %vm7300_vm7, %v1296_v54, %v1297_v23  ;;  %v3713_v43 = vshll.u32 %v7915_v24, 16  ;;  %v3717_v48 = vshrl.u32 %v7915_v24, 16  ;;  %v5865_v31 = vld [vmem:[%s7048_s25 + $0x60] sm:$0xf] }
  0xd0   : > { %v3675_v5 = vshll.u32 %v7901_v33, 16  ;;  %v5534_v54 = vrot.slane %v7920_v61, 9  ;;  %v9238_v23 = vcombine.low %v7709_v34, %v7725_v4  ;;  %v7949_v29 = vcombine.low %v3644_v37, %v3654_v36  ;;  %v6904_v26 = vld [vmem:[%s7048_s25 + $0x9c] sm:$0xff]   ;;  %v6905_v30 = vld [vmem:[%s7048_s25 + $0xa8] sm:$0xff]   ;;  %v6956_v36 = vld [vmem:[%s9206_s1 + $0x4] sm:$0x1] }
  0xd1   : > { %v3662_v53 = vor.u32 %v3661_v52, %v3658_v50  ;;  %v3682_v62 = vrot.slane %v3680_v27, 4  ;;  %v7960_v34 = vrot.slane %v3689_v6, 5  ;;  %v3695_v4 = vrot.slane %v3693_v9, 4  ;;  %v6957_v6 = vld [vmem:[%s7048_s25 + $0x94] sm:$0xf] }
  0xd2   : > { %v3706_v27 = vrot.slane %v3704_v25, 4  ;;  %v3709_v37 = vrot.slane %v3707_v8, 5  ;;  %v7969_v50 = vrot.slane %v3713_v43, 5  ;;  %v3719_v52 = vrot.slane %v3717_v48, 4  ;;  %v7975_v9 = vld [vmem:[%s7048_s25 + $0x64] sm:$0xf] }
  0xd3   : > { %9239 = vst [vmem:[#allocation9_spill] sm:$0xff] %v7975_v9  ;;  %v3728_v61 = vshrl.u32 %v5865_v31, 16  ;;  %v7977_v22 = vrot.slane %v3662_v53, 4  ;;  %v1308_v25 = vrot.slane %v6959_v18, 5  ;;  %v3696_v43 = vor.u32 %v3695_v4, %v7960_v34 }
  0xd4   : > { %6516 = vmatmul.mubr.msk.bf16.gmra.mrb[16].mxu0 %vm658_vm3, %v6902_v10  ;;  %v3731_v10 = vshll.u32 %v5865_v31, 16  ;;  %v3710_v31 = vor.u32 %v3709_v37, %v3706_v27  ;;  %v3720_v53 = vor.u32 %v3719_v52, %v7969_v50  ;;  %v9240_v18 = vcombine.low %v7716_v19, %v7729_v58  ;;  %v6906_v37 = vld [vmem:[%s7048_s25 + $0xb4] sm:$0xff]  }
  0xd5   : > { %6364 = vmatmul.mubr.msk.bf16.vlgmr.msra.gmra.mrb[0].mxu1 %vm658_vm3, %v9237_v38  ;;  %6519 = vmatprep.mubr.msk.bf16.mxu0 %vm658_vm3, %v6903_v21  ;;  %v3685_v21 = vrot.slane %v3683_v15, 5  ;;  %v7958_v38 = vld [vmem:[%s7048_s25 + $0x50] sm:$0x1]  ;;  %v7967_v15 = vld [vmem:[%s7048_s25 + $0x5c] sm:$0x1]  ;;  %v9241_v27 = vcombine.low %v7734_v2, %v7738_v1  ;;  %v1310_v52 = vrot.slane %v1308_v25, 4 }
  0xd6   : > { %6396 = vmatpush3.bf16.msra.mxu1 %v7705_v49  ;;  %6367 = vmatprep.mubr.msk.bf16.mxu1 %vm658_vm3, %v9238_v23  ;;  %v3672_v49 = vor.u32 %v3671_v46, %v7917_v28  ;;  %v7971_v46 = vrot.slane %v3675_v5, 5  ;;  %v1301_v23 = vrot.slane %v6957_v6, 5  ;;  %v3699_v48 = vshll.u32 %v7958_v38, 16  ;;  %v1177_v5 = vld [vmem:[%s7048_s25 + $0x9c] sm:$0xe] }
  0xd7   : > { %6862 = vmatprep.subr.msk.bf16.mxu1 %vm707_vm0, %v6956_v36  ;;  %v6958_v36 = vld [vmem:[%s7048_s25 + $0x98] sm:$0x1]  ;;  %v3686_v7 = vor.u32 %v3685_v21, %v3682_v62  ;;  %v3723_v6 = vshll.u32 %v7967_v15, 16  ;;  %v3741_v62 = vshrl.u32 %v7975_v9, 16  ;;  %v3733_v4 = vrot.slane %v3731_v10, 5 }
  0xd8   : > { %v1304_v33 = vrot.slane %v6958_v36, 5  ;;  %v3673_v8 = vrot.slane %v3672_v49, 4  ;;  %v3737_v36 = vshll.u32 %v7975_v9, 16  ;;  %v7996_v21 = vsel %vm7300_vm7, %v5534_v54, %v1301_v23  ;;  %v8007_v2 = vld [vmem:[%s7048_s25 + $0x68] sm:$0x1] }
  0xd9   : > { %v3730_v49 = vrot.slane %v3728_v61, 4  ;;  %v3687_v19 = vrot.slane %v3686_v7, 4  ;;  %v5535_v58 = vrot.slane %v1177_v5, 9  ;;  %v3697_v3 = vrot.slane %v3696_v43, 4  ;;  %9242 = vst [vmem:[#allocation10_spill] sm:$0xff] %v8007_v2  ;;  %v6907_v5 = vld [vmem:[%s7048_s25 + $0xc0] sm:$0xff]  }
  0xda   : > { %v3701_v54 = vrot.slane %v3699_v48, 5  ;;  %v3725_v63 = vrot.slane %v3723_v6, 5  ;;  %v1315_v61 = vrot.slane %v7442_v56, 5  ;;  %v3711_v10 = vrot.slane %v3710_v31, 4  ;;  %v1179_v31 = vld [vmem:[%s7048_s25 + $0xb4] sm:$0xe] }
  0xdb   : > { %v3721_v51 = vrot.slane %v3720_v53, 4  ;;  %v8009_v1 = vrot.slane %v3737_v36, 5  ;;  %v3743_v7 = vrot.slane %v3741_v62, 4  ;;  %v3668_v43 = vsel %vm7074_vm4, %v7977_v22, %v7917_v28  ;;  %v6961_v62 = vld [vmem:[%s7048_s25 + $0xb0] sm:$0x1] }
  0xdc   : > { %6520 = vmatmul.mubr.msk.bf16.gmra.mrb[20].mxu0 %vm658_vm3, %v6904_v26  ;;  %v1303_v26 = vrot.slane %v1301_v23, 4  ;;  %v1178_v23 = vld [vmem:[%s7048_s25 + $0xa8] sm:$0xe]  ;;  %v3678_v48 = vsel %vm7074_vm4, %v3673_v8, %v7971_v46  ;;  %v3734_v6 = vor.u32 %v3733_v4, %v3730_v49  ;;  %v3692_v53 = vsel %vm7074_vm4, %v3687_v19, %v7960_v34  ;;  %v5868_v46 = vld [vmem:[%s7048_s25 + $0x6c] sm:$0xf] }
  0xdd   : > { %6368 = vmatmul.mubr.msk.bf16.gmra.mrb[4].mxu1 %vm658_vm3, %v9240_v18  ;;  %6523 = vmatprep.mubr.msk.bf16.mxu0 %vm658_vm3, %v6905_v30  ;;  %v6960_v18 = vld [vmem:[%s7048_s25 + $0xa4] sm:$0x1]  ;;  %v8029_v36 = vsel %vm7300_vm7, %v5535_v58, %v1308_v25  ;;  %v5536_v28 = vrot.slane %v1178_v23, 9  ;;  %v1317_v8 = vrot.slane %v1315_v61, 4  ;;  %v3747_v49 = vshll.u32 %v8007_v2, 16 }
  0xde   : > { %6371 = vmatprep.mubr.msk.bf16.mxu1 %vm658_vm3, %v9241_v27  ;;  %v1311_v30 = vrot.slane %v6960_v18, 5  ;;  %v8021_v56 = vsel %vm7300_vm7, %v1303_v26, %v1304_v33  ;;  %v3702_v33 = vsel %vm7074_vm4, %v3697_v3, %v3701_v54  ;;  %v1318_v26 = vrot.slane %v6961_v62, 5  ;;  %v5871_v18 = vld [vmem:[%s7048_s25 + $0x78] sm:$0xf]  ;;  %v8084_v54 = vld [vmem:[%s7048_s25 + $0xbc] sm:$0x1] }
  0xdf   : > { %v3716_v34 = vsel %vm7074_vm4, %v3711_v10, %v7969_v50  ;;  %v3726_v25 = vsel %vm7074_vm4, %v3721_v51, %v3725_v63  ;;  %v3744_v4 = vor.u32 %v3743_v7, %v8009_v1  ;;  %v5537_v27 = vrot.slane %v1179_v31, 9  ;;  %v8058_v51 = vld [vmem:[%s7048_s25 + $0x70] sm:$0xf]  ;;  %v8088_v10 = vld [vmem:[%s7048_s25 + $0x7c] sm:$0xf] }
  0xe0   : > { %v8033_v22 = vsel %vm7300_vm7, %v1310_v52, %v1311_v30  ;;  %v9244_v3 = vcombine.low %v7751_v45, %v7755_v59  ;;  %v8054_v19 = vrot.slane %v3734_v6, 4  ;;  %v1322_v50 = vrot.slane %v7466_v42, 5  ;;  %9245 = vst [vmem:[#allocation12_spill] sm:$0xff] %v8058_v51  ;;  %9247 = vst [vmem:[#allocation13_spill] sm:$0xff] %v8088_v10  ;;  %v5874_v7 = vld [vmem:[%s7048_s25 + $0x84] sm:$0xf] }
  0xe1   : > { %9243 = vst [vmem:[#allocation11_spill] sm:$0xff] %v8033_v22  ;;  %v3752_v63 = vshrl.u32 %v5868_v46, 16  ;;  %v9246_v45 = vcombine.low %v7759_v47, %v7786_v41  ;;  %v8066_v58 = vcombine.low %v3692_v53, %v3702_v33  ;;  %v8072_v42 = vsel %vm7300_vm7, %v5536_v28, %v1315_v61  ;;  %v6908_v61 = vld [vmem:[%s7048_s25 + $0xcc] sm:$0xff]   ;;  %v8100_v31 = vld [vmem:[%s7048_s25 + $0x88] sm:$0xf] }
  0xe2   : > { %v8075_v30 = vcombine.low %v3716_v34, %v3726_v25  ;;  %v8079_v47 = vsel %vm7300_vm7, %v1317_v8, %v1318_v26  ;;  %v8081_v41 = vrot.slane %v3747_v49, 5  ;;  %v3761_v6 = vshll.u32 %v8058_v51, 16  ;;  %9248 = vst [vmem:[#allocation14_spill] sm:$0xff] %v8100_v31  ;;  %v5877_v62 = vld [vmem:[%s7048_s25 + $0x90] sm:$0xf] }
  0xe3   : > { %v8106_v28 = vrot.slane %v1322_v50, 4  ;;  %v8108_v33 = vrot.slane %v3752_v63, 4  ;;  %v3765_v8 = vshrl.u32 %v8058_v51, 16  ;;  %v3776_v26 = vshrl.u32 %v5871_v18, 16  ;;  %v8115_v25 = vld [vmem:[%s7048_s25 + $0x94] sm:$0xf] }
  0xe4   : > { %6524 = vmatmul.mubr.msk.bf16.gmra.mrb[24].mxu0 %vm658_vm3, %v6906_v37  ;;  %v8052_v37 = vcombine.low %v3668_v43, %v3678_v48  ;;  %v8096_v43 = vsel %vm7300_vm7, %v5537_v27, %v1322_v50  ;;  %v3755_v48 = vshll.u32 %v5868_v46, 16  ;;  %v3779_v49 = vshll.u32 %v5871_v18, 16  ;;  %9249 = vst [vmem:[#allocation15_spill] sm:$0xff] %v8115_v25  ;;  %v8153_v2 = vld [vmem:[%s7048_s25 + $0x8c] sm:$0x1] }
  0xe5   : > { %6372 = vmatmul.mubr.msk.bf16.gmra.mrb[8].mxu1 %vm658_vm3, %v9244_v3  ;;  %6527 = vmatprep.mubr.msk.bf16.mxu0 %vm658_vm3, %v6907_v5  ;;  %v8092_v5 = vrot.slane %v3744_v4, 4  ;;  %v3785_v46 = vshll.u32 %v8088_v10, 16  ;;  %v3789_v34 = vshrl.u32 %v8088_v10, 16  ;;  %v3800_v4 = vshrl.u32 %v5874_v7, 16 }
  0xe6   : > { %6375 = vmatprep.mubr.msk.bf16.mxu1 %vm658_vm3, %v9246_v45  ;;  %v3803_v27 = vshll.u32 %v5874_v7, 16  ;;  %v3809_v3 = vshll.u32 %v8100_v31, 16  ;;  %v3813_v50 = vshrl.u32 %v8100_v31, 16  ;;  %v8125_v45 = vld [vmem:[%s7048_s25 + $0x74] sm:$0x1]  ;;  %v3757_v18 = vrot.slane %v3755_v48, 5 }
  0xe7   : > { %v3824_v52 = vshrl.u32 %v5877_v62, 16  ;;  %v3827_v53 = vshll.u32 %v5877_v62, 16  ;;  %v9250_v7 = vcombine.low %v7770_v60, %v7795_v44  ;;  %v3767_v59 = vrot.slane %v3765_v8, 4  ;;  %v5880_v48 = vld [vmem:[%s7048_s25 + $0x9c] sm:$0xf] }
  0xe8   : > { %v3833_v63 = vshll.u32 %v8115_v25, 16  ;;  %v3837_v23 = vshrl.u32 %v8115_v25, 16  ;;  %v9251_v62 = vcombine.low %v7810_v17, %v7814_v57  ;;  %v8143_v44 = vld [vmem:[%s7048_s25 + $0x80] sm:$0x1]  ;;  %v3778_v60 = vrot.slane %v3776_v26, 4 }
  0xe9   : > { %9252 = vst [vmem:[#allocation16_spill] sm:$0xff] %v8143_v44  ;;  %v3802_v31 = vrot.slane %v3800_v4, 4  ;;  %v3805_v8 = vrot.slane %v3803_v27, 5  ;;  %v8147_v10 = vrot.slane %v3809_v3, 5  ;;  %v3815_v51 = vrot.slane %v3813_v50, 4 }
  0xea   : > { %v8150_v25 = vld [vmem:[%s7048_s25 + $0xa0] sm:$0xf]  ;;  %v3826_v17 = vrot.slane %v3824_v52, 4  ;;  %v3829_v57 = vrot.slane %v3827_v53, 5  ;;  %v3851_v9 = vshll.u32 %v5880_v48, 16  ;;  %v3758_v26 = vor.u32 %v3757_v18, %v8108_v33 }
  0xeb   : > { %v3795_v27 = vshll.u32 %v8143_v44, 16  ;;  %v8162_v3 = vld [vmem:[%s7048_s25 + $0x98] sm:$0x1]  ;;  %v3857_v50 = vshll.u32 %v8150_v25, 16  ;;  %v3861_v52 = vshrl.u32 %v8150_v25, 16  ;;  %v3806_v22 = vor.u32 %v3805_v8, %v3802_v31 }
  0xec   : > { %6528 = vmatmul.mubr.msk.bf16.gmra.mrb[28].mxu0 %vm658_vm3, %v6908_v61  ;;  %v8133_v61 = vrot.slane %v3761_v6, 5  ;;  %v3791_v6 = vrot.slane %v3789_v34, 4  ;;  %v3839_v34 = vrot.slane %v3837_v23, 4  ;;  %v3819_v33 = vshll.u32 %v8153_v2, 16 }
  0xed   : > { %6376 = vmatmul.mubr.msk.bf16.gmra.mrb[12].mxu1 %vm658_vm3, %v9250_v7  ;;  %6533 = vmatprep.mubr.msk.bf16.mxu0 %vm658_vm3, %v7875_v20  ;;  %v3781_v7 = vrot.slane %v3779_v49, 5  ;;  %v8145_v20 = vrot.slane %v3785_v46, 5  ;;  %v3771_v49 = vshll.u32 %v8125_v45, 16  ;;  %v8157_v46 = vrot.slane %v3833_v63, 5 }
  0xee   : > { %6379 = vmatprep.mubr.msk.bf16.mxu1 %vm658_vm3, %v9251_v62  ;;  %v3848_v62 = vshrl.u32 %v5880_v48, 16  ;;  %v3768_v4 = vor.u32 %v3767_v59, %v8133_v61  ;;  %v3816_v23 = vor.u32 %v3815_v51, %v8147_v10  ;;  %v3830_v59 = vor.u32 %v3829_v57, %v3826_v17  ;;  %v8195_v57 = vld [vmem:[%s7048_s25 + $0xa4] sm:$0x1] }
  0xef   : > { %v3782_v53 = vor.u32 %v3781_v7, %v3778_v60  ;;  %v3792_v48 = vor.u32 %v3791_v6, %v8145_v20  ;;  %v3853_v18 = vrot.slane %v3851_v9, 5  ;;  %v9253_v44 = vcombine.low %v7822_v11, %v7826_v40 }
  0xf0   : > { %v3850_v63 = vrot.slane %v3848_v62, 4  ;;  %v9254_v31 = vrot.slane %v8084_v54, 5  ;;  %v3773_v51 = vrot.slane %v3771_v49, 5  ;;  %v3840_v60 = vor.u32 %v3839_v34, %v8157_v46  ;;  %v8198_v34 = vld [vmem:[%s7048_s25 + $0xac] sm:$0xf] }
  0xf1   : > { %v3843_v9 = vshll.u32 %v8162_v3, 16  ;;  %v9255_v11 = vcombine.low %v7894_v39, %v7898_v55  ;;  %v3759_v40 = vrot.slane %v3758_v26, 4  ;;  %v8191_v54 = vrot.slane %v3857_v50, 5 }
  0xf2   : > { %v3783_v7 = vrot.slane %v3782_v53, 4  ;;  %v3793_v6 = vrot.slane %v3792_v48, 4  ;;  %v3797_v8 = vrot.slane %v3795_v27, 5  ;;  %v3821_v17 = vrot.slane %v3819_v33, 5  ;;  %v8208_v48 = vld [vmem:[%s7048_s25 + $0xb0] sm:$0x1] }
  0xf3   : > { %v3807_v39 = vrot.slane %v3806_v22, 4  ;;  %v3817_v55 = vrot.slane %v3816_v23, 4  ;;  %v3831_v62 = vrot.slane %v3830_v59, 4  ;;  %v3854_v49 = vor.u32 %v3853_v18, %v3850_v63 }
  0xf4   : > { %6534 = vmatmul.mubr.msk.bf16.vlgmr.msra.gmra.mrb[0].mxu0 %vm658_vm3, %v7938_v16  ;;  %v8181_v16 = vsel %vm7300_vm7, %v8106_v28, %v9254_v31  ;;  %v3863_v28 = vrot.slane %v3861_v52, 4  ;;  %v3845_v26 = vrot.slane %v3843_v9, 5  ;;  %v3764_v52 = vsel %vm7074_vm4, %v3759_v40, %v8133_v61 }
  0xf5   : > { %6380 = vmatmul.mubr.msk.bf16.gmra.mrb[16].mxu1 %vm658_vm3, %v9253_v44  ;;  %6566 = vmatpush3.bf16.msra.mxu0 %v7879_v14  ;;  %v3769_v14 = vrot.slane %v3768_v4, 4  ;;  %v5883_v44 = vld [vmem:[%s7048_s25 + $0xa8] sm:$0xf]  ;;  %v3867_v22 = vshll.u32 %v8195_v57, 16  ;;  %v3788_v33 = vsel %vm7074_vm4, %v3783_v7, %v8145_v20  ;;  %v3798_v23 = vsel %vm7074_vm4, %v3793_v6, %v3797_v8 }
  0xf6   : > { %6383 = vmatprep.mubr.msk.bf16.mxu1 %vm658_vm3, %v9255_v11  ;;  %6537 = vmatprep.mubr.msk.bf16.mxu0 %vm658_vm3, %v7949_v29  ;;  %v3841_v29 = vrot.slane %v3840_v60, 4  ;;  %v3872_v4 = vshrl.u32 %v5883_v44, 16  ;;  %v3875_v50 = vshll.u32 %v5883_v44, 16  ;;  %v3864_v53 = vor.u32 %v3863_v28, %v8191_v54  ;;  %v5932_v11 = vld [vmem:[%s7048_s25 + $0x48] sm:$0xe] }
  0xf7   : > { %v3774_v27 = vsel %vm7074_vm4, %v3769_v14, %v3773_v51  ;;  %v3881_v59 = vshll.u32 %v8198_v34, 16  ;;  %v3885_v61 = vshrl.u32 %v8198_v34, 16  ;;  %v3812_v63 = vsel %vm7074_vm4, %v3807_v39, %v8147_v10  ;;  %v8273_v39 = vld [vmem:[%s7048_s25 + $0xb8] sm:$0xf] }
  0xf8   : > { %v3822_v18 = vsel %vm7074_vm4, %v3817_v55, %v3821_v17  ;;  %v3836_v20 = vsel %vm7074_vm4, %v3831_v62, %v8157_v46  ;;  %v3855_v31 = vrot.slane %v3854_v49, 4  ;;  %v9256_v51 = vcombine.low %v7911_v12, %v7926_v35 }
  0xf9   : > { %v3874_v10 = vrot.slane %v3872_v4, 4  ;;  %v3877_v60 = vrot.slane %v3875_v50, 5  ;;  %v3891_v9 = vshll.u32 %v8208_v48, 16  ;;  %v9257_v46 = vcombine.low %v7996_v21, %v8021_v56  ;;  %v5886_v21 = vld [vmem:[%s7048_s25 + $0xb4] sm:$0xf] }
  0xfa   : > { %v5553_v12 = vcombine.low %v8072_v42, %v8079_v47  ;;  %v9258_v35 = vsel %vm7074_vm4, %v8092_v5, %v8081_v41  ;;  %v3865_v14 = vrot.slane %v3864_v53, 4  ;;  %v3869_v28 = vrot.slane %v3867_v22, 5  ;;  %v5934_v4 = vld [vmem:[%s7048_s25 + $0x60] sm:$0xe]  ;;  %v5935_v53 = vld [vmem:[%s7048_s25 + $0x6c] sm:$0xe] }
  0xfb   : > { %v5554_v56 = vcombine.low %v8096_v43, %v8181_v16  ;;  %v8256_v44 = vcombine.low %v3764_v52, %v3774_v27  ;;  %v8258_v42 = vrot.slane %v3881_v59, 5  ;;  %v3887_v47 = vrot.slane %v3885_v61, 4  ;;  %v9267_v16 = vld [vmem:[#allocation4_spill] sm:$0xff] }
  0xfc   : > { %6538 = vmatmul.mubr.msk.bf16.gmra.mrb[4].mxu0 %vm658_vm3, %v8052_v37  ;;  %v3846_v37 = vsel %vm7074_vm4, %v3841_v29, %v3845_v26  ;;  %v8260_v41 = vcombine.low %v3788_v33, %v3798_v23  ;;  %v8262_v5 = vcombine.low %v3812_v63, %v3822_v18  ;;  %v3860_v6 = vsel %vm7074_vm4, %v3855_v31, %v8191_v54  ;;  %v9260_v23 = vld [vmem:[#allocation11_spill] sm:$0xff]  ;;  %v5889_v63 = vld [vmem:[%s7048_s25 + $0xc0] sm:$0xf]  ;;  %v9262_v18 = vld [vmem:[#allocation9_spill] sm:$0xff] }
  0xfd   : > { %6384 = vmatmul.mubr.msk.bf16.gmra.mrb[20].mxu1 %vm658_vm3, %v9256_v51  ;;  %6541 = vmatprep.mubr.msk.bf16.mxu0 %vm658_vm3, %v8066_v58  ;;  %v9259_v58 = vsel %vm7074_vm4, %v8054_v19, %v8009_v1  ;;  %v8264_v7 = vcombine.low %v3836_v20, %v3846_v37  ;;  %v5948_v1 = vrot.slane %v5932_v11, 9  ;;  %v5933_v19 = vld [vmem:[%s7048_s25 + $0x54] sm:$0xe]  ;;  %v3878_v8 = vor.u32 %v3877_v60, %v3874_v10  ;;  %v9263_v31 = vld [vmem:[#allocation10_spill] sm:$0xff] }
  0xfe   : > { %6387 = vmatprep.mubr.msk.bf16.mxu1 %vm658_vm3, %v9257_v46  ;;  %v5902_v40 = vcombine.low %v9259_v58, %v9258_v35  ;;  %v8270_v17 = vrot.slane %v3891_v9, 5  ;;  %v3896_v55 = vshrl.u32 %v5886_v21, 16  ;;  %v3870_v62 = vsel %vm7074_vm4, %v3865_v14, %v3869_v28  ;;  %v9264_v9 = vld [vmem:[#allocation12_spill] sm:$0xff]  ;;  %v8322_v35 = vld [vmem:[%s7048_s25 + $0xbc] sm:$0x1] }
  0xff   : > { %v3899_v49 = vshll.u32 %v5886_v21, 16  ;;  %v4355_v29 = vrot.slane %v7904_v0, 5  ;;  %v4358_v26 = vrot.slane %v7958_v38, 5  ;;  %v3888_v50 = vor.u32 %v3887_v47, %v8258_v42  ;;  %v8325_v58 = vld [vmem:[%s7048_s25 + $0xc4] sm:$0xf] }
 0x100   : > { %v5949_v52 = vrot.slane %v5933_v19, 9  ;;  %v4362_v54 = vrot.slane %v7915_v24, 5  ;;  %v4365_v27 = vrot.slane %v7967_v15, 5  ;;  %v3905_v22 = vshll.u32 %v8273_v39, 16  ;;  %v5936_v19 = vld [vmem:[%s7048_s25 + $0x78] sm:$0xe] }
 0x101   : > { %v3909_v33 = vshrl.u32 %v8273_v39, 16  ;;  %v8290_v0 = vsel %vm7300_vm7, %v5948_v1, %v4355_v29  ;;  %v4357_v38 = vrot.slane %v4355_v29, 4  ;;  %v9261_v59 = vcombine.low %v8029_v36, %v9260_v23  ;;  %v9265_v23 = vld [vmem:[#allocation13_spill] sm:$0xff] }
 0x102   : > { %v8297_v24 = vcombine.low %v3860_v6, %v3870_v62  ;;  %v8301_v15 = vsel %vm7300_vm7, %v5949_v52, %v4362_v54  ;;  %v5950_v61 = vrot.slane %v5934_v4, 9  ;;  %v4369_v20 = vrot.slane %v9262_v18, 5  ;;  %v6909_v6 = vld [vmem:[%s7048_s25 + $0xc] sm:$0xff]  }
 0x103   : > { %v8307_v36 = vsel %vm7300_vm7, %v4357_v38, %v4358_v26  ;;  %v4372_v51 = vrot.slane %v9263_v31, 5  ;;  %v5951_v37 = vrot.slane %v5935_v53, 9  ;;  %v4376_v11 = vrot.slane %v9264_v9, 5 }
 0x104   : > { %6542 = vmatmul.mubr.msk.bf16.gmra.mrb[8].mxu0 %vm658_vm3, %v8075_v30  ;;  %v4364_v30 = vrot.slane %v4362_v54, 4  ;;  %v5965_v10 = vcombine.low %v8290_v0, %v8307_v36  ;;  %v4379_v46 = vrot.slane %v8125_v45, 5  ;;  %v8331_v14 = vsel %vm7300_vm7, %v5950_v61, %v4369_v20 }
 0x105   : > { %6388 = vmatmul.mubr.msk.bf16.gmra.mrb[24].mxu1 %vm658_vm3, %v9261_v59  ;;  %6545 = vmatprep.mubr.msk.bf16.mxu0 %vm658_vm3, %v5902_v40  ;;  %v4371_v28 = vrot.slane %v4369_v20, 4  ;;  %v8333_v21 = vrot.slane %v3896_v55, 4  ;;  %v3920_v47 = vshrl.u32 %v5889_v63, 16  ;;  %v8337_v45 = vsel %vm7300_vm7, %v5951_v37, %v4376_v11  ;;  %v5663_v55 = vld [vmem:[%s7048_s25 + $0x78] sm:$0xf]  ;;  %v9266_v59 = vld [vmem:[#allocation16_spill] sm:$0xff] }
 0x106   : > { %6391 = vmatprep.mubr.msk.bf16.mxu1 %vm658_vm3, %v5553_v12  ;;  %v8315_v60 = vsel %vm7300_vm7, %v4364_v30, %v4365_v27  ;;  %v8319_v12 = vrot.slane %v3878_v8, 4  ;;  %v4378_v1 = vrot.slane %v4376_v11, 4  ;;  %v8341_v8 = vrot.slane %v3888_v50, 4 }
 0x107   : > { %v5966_v40 = vcombine.low %v8301_v15, %v8315_v60  ;;  %v8343_v62 = vrot.slane %v3899_v49, 5  ;;  %v3923_v29 = vshll.u32 %v5889_v63, 16  ;;  %v8347_v26 = vsel %vm7300_vm7, %v4371_v28, %v4372_v51  ;;  %v9269_v28 = vld [vmem:[#allocation14_spill] sm:$0xff] }
 0x108   : > { %v8350_v4 = vrot.slane %v3905_v22, 5  ;;  %v8352_v52 = vrot.slane %v3909_v33, 4  ;;  %v5967_v54 = vcombine.low %v8331_v14, %v8347_v26  ;;  %v8358_v27 = vsel %vm7300_vm7, %v4378_v1, %v4379_v46  ;;  %v5937_v33 = vld [vmem:[%s7048_s25 + $0x84] sm:$0xe]  ;;  %v6910_v1 = vld [vmem:[%s7048_s25 + $0x18] sm:$0xff]  }
 0x109   : > { %v3915_v49 = vshll.u32 %v8322_v35, 16  ;;  %v3929_v50 = vshll.u32 %v8325_v58, 16  ;;  %v5968_v53 = vcombine.low %v8337_v45, %v8358_v27  ;;  %v5952_v22 = vrot.slane %v5936_v19, 9  ;;  %v6972_v60 = vld [vmem:[%s7048_s25 + $0xa0] sm:$0xf] }
 0x10a   : > { %v3922_v38 = vrot.slane %v3920_v47, 4  ;;  %v4386_v30 = vrot.slane %v9266_v59, 5  ;;  %v2245_v61 = vshrl.u32 %v5663_v55, 16  ;;  %v3925_v63 = vrot.slane %v3923_v29, 5  ;;  %v5892_v29 = vld [vmem:[%s7048_s25 + $0xcc] sm:$0xf] }
 0x10b   : > { %v3933_v18 = vshrl.u32 %v8325_v58, 16  ;;  %v2248_v43 = vshll.u32 %v5663_v55, 16  ;;  %v5953_v37 = vrot.slane %v5937_v33, 9  ;;  %v3884_v9 = vsel %vm7074_vm4, %v8319_v12, %v8258_v42  ;;  %v8401_v55 = vld [vmem:[%s7048_s25 + $0xd0] sm:$0xf] }
 0x10c   : > { %6546 = vmatmul.mubr.msk.bf16.gmra.mrb[12].mxu0 %vm658_vm3, %v8256_v44  ;;  %v4383_v44 = vrot.slane %v9265_v23, 5  ;;  %v2247_v51 = vrot.slane %v2245_v61, 4  ;;  %v3902_v11 = vor.u32 %v8343_v62, %v8333_v21  ;;  %v4390_v47 = vrot.slane %v9269_v28, 5  ;;  %v6911_v21 = vld [vmem:[%s7048_s25 + $0x24] sm:$0xff]   ;;  %v6976_v27 = vld [vmem:[%s7048_s25 + $0xac] sm:$0xf] }
 0x10d   : > { %6392 = vmatmul.mubr.msk.bf16.gmra.mrb[28].mxu1 %vm658_vm3, %v5554_v56  ;;  %6549 = vmatprep.mubr.msk.bf16.mxu0 %vm658_vm3, %v8260_v41  ;;  %v9268_v56 = vld [vmem:[#allocation5_spill] sm:$0xff]  ;;  %v2250_v46 = vrot.slane %v2248_v43, 5  ;;  %v3894_v19 = vsel %vm7074_vm4, %v8341_v8, %v8270_v17  ;;  %v4393_v12 = vrot.slane %v8153_v2, 5  ;;  %v8409_v62 = vrot.slane %v3929_v50, 5  ;;  %v5938_v8 = vld [vmem:[%s7048_s25 + $0x90] sm:$0xe] }
 0x10e   : > { %6397 = vmatprep.mubr.msk.bf16.mxu1 %vm658_vm3, %v6909_v6  ;;  %v2267_v41 = vsel %vm7074_vm4, %v9268_v56, %v9267_v16  ;;  %v8383_v20 = vsel %vm7300_vm7, %v5952_v22, %v4383_v44  ;;  %v4385_v31 = vrot.slane %v4383_v44, 4  ;;  %v3912_v6 = vor.u32 %v8352_v52, %v8350_v4  ;;  %v8415_v52 = vld [vmem:[%s7048_s25 + $0xc8] sm:$0x1]  ;;  %v9271_v16 = vld [vmem:[#allocation2_spill] sm:$0xff] }
 0x10f   : > { %v3935_v22 = vrot.slane %v3933_v18, 4  ;;  %v2251_v17 = vor.u32 %v2250_v46, %v2247_v51  ;;  %v3917_v23 = vrot.slane %v3915_v49, 5  ;;  %v3926_v44 = vor.u32 %v3925_v63, %v3922_v38  ;;  %v9272_v51 = vld [vmem:[#allocation3_spill] sm:$0xff] }
 0x110   : > { %v8405_v42 = vsel %vm7300_vm7, %v4385_v31, %v4386_v30  ;;  %v8419_v59 = vsel %vm7300_vm7, %v5953_v37, %v4390_v47  ;;  %v4392_v30 = vrot.slane %v4390_v47, 4  ;;  %v3944_v2 = vshrl.u32 %v5892_v29, 16 }
 0x111   : > { %v5969_v33 = vcombine.low %v8383_v20, %v8405_v42  ;;  %v3947_v50 = vshll.u32 %v5892_v29, 16  ;;  %v3953_v61 = vshll.u32 %v8401_v55, 16  ;;  %v2252_v18 = vrot.slane %v2251_v17, 4  ;;  %v6912_v29 = vld [vmem:[%s7048_s25 + $0x30] sm:$0xff]  }
 0x112   : > { %v3957_v49 = vshrl.u32 %v8401_v55, 16  ;;  %v8430_v38 = vsel %vm7300_vm7, %v4392_v30, %v4393_v12  ;;  %v5954_v63 = vrot.slane %v5938_v8, 9  ;;  %v3936_v56 = vor.u32 %v3935_v22, %v8409_v62 }
 0x113   : > { %v3939_v31 = vshll.u32 %v8415_v52, 16  ;;  %v5970_v37 = vcombine.low %v8419_v59, %v8430_v38  ;;  %v5908_v46 = vcombine.low %v3884_v9, %v3894_v19  ;;  %v3903_v28 = vrot.slane %v3902_v11, 4  ;;  %v5939_v11 = vld [vmem:[%s7048_s25 + $0x9c] sm:$0xe] }
 0x114   : > { %6550 = vmatmul.mubr.msk.bf16.gmra.mrb[16].mxu0 %vm658_vm3, %v8262_v5  ;;  %v9270_v5 = vld [vmem:[#allocation15_spill] sm:$0xff]  ;;  %v3913_v47 = vrot.slane %v3912_v6, 4  ;;  %v3927_v12 = vrot.slane %v3926_v44, 4  ;;  %v4400_v8 = vrot.slane %v8162_v3, 5  ;;  %v3946_v30 = vrot.slane %v3944_v2, 4  ;;  %v6913_v19 = vld [vmem:[%s7048_s25 + $0x3c] sm:$0xff]  }
 0x115   : > { %6398 = vmatmul.mubr.msk.bf16.vlgmr.msra.gmra.mrb[0].mxu1 %vm658_vm3, %v6910_v1  ;;  %6553 = vmatprep.mubr.msk.bf16.mxu0 %vm658_vm3, %v8264_v7  ;;  %v4397_v43 = vrot.slane %v9270_v5, 5  ;;  %v2257_v7 = vsel %vm7074_vm4, %v2252_v18, %v9272_v51  ;;  %v3949_v18 = vrot.slane %v3947_v50, 5  ;;  %v8453_v5 = vrot.slane %v3953_v61, 5 }
 0x116   : > { %6600 = vmatpush3.bf16.msra.mxu1 %v9271_v16  ;;  %6401 = vmatprep.mubr.msk.bf16.mxu1 %vm658_vm3, %v6911_v21  ;;  %v8442_v1 = vcombine.low %v2257_v7, %v2267_v41  ;;  %v8446_v21 = vld [vmem:[%s7048_s25 + $0xd4] sm:$0x1]  ;;  %v3959_v9 = vrot.slane %v3957_v49, 4  ;;  %v3937_v41 = vrot.slane %v3936_v56, 4  ;;  %v3941_v6 = vrot.slane %v3939_v31, 5 }
 0x117   : > { %v8450_v22 = vsel %vm7300_vm7, %v5954_v63, %v4397_v43  ;;  %v4399_v17 = vrot.slane %v4397_v43, 4  ;;  %v3908_v63 = vsel %vm7074_vm4, %v3903_v28, %v8350_v4  ;;  %v3918_v2 = vsel %vm7074_vm4, %v3913_v47, %v3917_v23  ;;  %v6963_v16 = vld [vmem:[%s7048_s25 + $0x1c] sm:$0xf]  ;;  %v5940_v28 = vld [vmem:[%s7048_s25 + $0xa8] sm:$0xe] }
 0x118   : > { %v3963_v50 = vshll.u32 %v8446_v21, 16  ;;  %v5955_v61 = vrot.slane %v5939_v11, 9  ;;  %v4404_v49 = vrot.slane %v8150_v25, 5  ;;  %v3932_v4 = vsel %vm7074_vm4, %v3927_v12, %v8409_v62  ;;  %v5928_v62 = vld [vmem:[%s7048_s25 + $0x18] sm:$0xe]  ;;  %v6914_v47 = vld [vmem:[%s7048_s25 + $0x48] sm:$0xff]  }
 0x119   : > { %v8459_v44 = vsel %vm7300_vm7, %v4399_v17, %v4400_v8  ;;  %v3960_v43 = vor.u32 %v3959_v9, %v8453_v5  ;;  %v4407_v23 = vrot.slane %v8195_v57, 5  ;;  %v3942_v25 = vsel %vm7074_vm4, %v3937_v41, %v3941_v6  ;;  %v6964_v11 = vld [vmem:[%s7048_s25 + $0x20] sm:$0x1] }
 0x11a   : > { %v5971_v3 = vcombine.low %v8450_v22, %v8459_v44  ;;  %v4327_v56 = vrot.slane %v6963_v16, 5  ;;  %v8485_v31 = vsel %vm7300_vm7, %v5955_v61, %v4404_v49  ;;  %v4406_v51 = vrot.slane %v4404_v49, 4  ;;  %v5941_v49 = vld [vmem:[%s7048_s25 + $0xb4] sm:$0xe] }
 0x11b   : > { %v5909_v7 = vcombine.low %v3908_v63, %v3918_v2  ;;  %v3961_v17 = vrot.slane %v3960_v43, 4  ;;  %v5956_v41 = vrot.slane %v5940_v28, 9  ;;  %v4411_v6 = vrot.slane %v8198_v34, 5  ;;  %v5929_v2 = vld [vmem:[%s7048_s25 + $0x24] sm:$0xe] }
 0x11c   : > { %6554 = vmatmul.mubr.msk.bf16.gmra.mrb[20].mxu0 %vm658_vm3, %v8297_v24  ;;  %v3950_v24 = vor.u32 %v3949_v18, %v3946_v30  ;;  %v8490_v57 = vsel %vm7300_vm7, %v4406_v51, %v4407_v23  ;;  %v6915_v30 = vld [vmem:[%s7048_s25 + $0x54] sm:$0xff]   ;;  %v5944_v18 = vrot.slane %v5928_v62, 9  ;;  %v4329_v9 = vrot.slane %v4327_v56, 4  ;;  %v6967_v28 = vld [vmem:[%s7048_s25 + $0x2c] sm:$0x1] }
 0x11d   : > { %6402 = vmatmul.mubr.msk.bf16.gmra.mrb[4].mxu1 %vm658_vm3, %v6912_v29  ;;  %6557 = vmatprep.mubr.msk.bf16.mxu0 %vm658_vm3, %v5908_v46  ;;  %v3965_v46 = vrot.slane %v3963_v50, 5  ;;  %v5910_v29 = vcombine.low %v3932_v4, %v3942_v25  ;;  %v5972_v8 = vcombine.low %v8485_v31, %v8490_v57  ;;  %v4414_v63 = vrot.slane %v8208_v48, 5  ;;  %v6965_v50 = vld [vmem:[%s7048_s25 + $0x28] sm:$0xf]  ;;  %v5930_v25 = vld [vmem:[%s7048_s25 + $0x30] sm:$0xe] }
 0x11e   : > { %6405 = vmatprep.mubr.msk.bf16.mxu1 %vm658_vm3, %v6913_v19  ;;  %v3951_v12 = vrot.slane %v3950_v24, 4  ;;  %v4330_v19 = vrot.slane %v6964_v11, 5  ;;  %v4334_v61 = vrot.slane %v6965_v50, 5  ;;  %v8513_v48 = vsel %vm7300_vm7, %v5956_v41, %v4411_v6  ;;  %v6917_v11 = vld [vmem:[%s7048_s25 + $0x6c] sm:$0xff]   ;;  %v9273_v41 = vld [vmem:[#allocation6_spill] sm:$0xff] }
 0x11f   : > { %v3966_v34 = vsel %vm7074_vm4, %v3961_v17, %v3965_v46  ;;  %v4413_v24 = vrot.slane %v4411_v6, 4  ;;  %v4328_v43 = vsel %vm7300_vm7, %v5944_v18, %v4327_v56  ;;  %v5945_v51 = vrot.slane %v5929_v2, 9  ;;  %v5942_v50 = vld [vmem:[%s7048_s25 + $0xc0] sm:$0xe]  ;;  %v6981_v31 = vld [vmem:[%s7048_s25 + $0xc8] sm:$0x1] }
 0x120   : > { %v3956_v4 = vsel %vm7074_vm4, %v3951_v12, %v8453_v5  ;;  %v4331_v23 = vsel %vm7300_vm7, %v4329_v9, %v4330_v19  ;;  %v6966_v5 = vld [vmem:[%s7048_s25 + $0x34] sm:$0xf]  ;;  %v6916_v12 = vld [vmem:[%s7048_s25 + $0x60] sm:$0xff]   ;;  %v5946_v18 = vrot.slane %v5930_v25, 9  ;;  %v4421_v9 = vrot.slane %v8322_v35, 5 }
 0x121   : > { %v4341_v16 = vrot.slane %v6966_v5, 5  ;;  %v8524_v62 = vsel %vm7300_vm7, %v4413_v24, %v4414_v63  ;;  %v5911_v46 = vcombine.low %v3956_v4, %v3966_v34  ;;  %v5961_v17 = vcombine.low %v4328_v43, %v4331_v23  ;;  %v5931_v24 = vld [vmem:[%s7048_s25 + $0x3c] sm:$0xe] }
 0x122   : > { %v5973_v56 = vcombine.low %v8513_v48, %v8524_v62  ;;  %v4344_v6 = vrot.slane %v9273_v41, 5  ;;  %v4335_v35 = vsel %vm7300_vm7, %v5945_v51, %v4334_v61  ;;  %v5958_v5 = vrot.slane %v5942_v50, 9 }
 0x123   : > { %v4343_v19 = vrot.slane %v4341_v16, 4  ;;  %v4342_v23 = vsel %vm7300_vm7, %v5946_v18, %v4341_v16  ;;  %v4428_v51 = vrot.slane %v8415_v52, 5  ;;  %v2408_v57 = vshll.u32 %v6981_v31, 16 }
 0x124   : > { %6558 = vmatmul.mubr.msk.bf16.gmra.mrb[24].mxu0 %vm658_vm3, %v5909_v7  ;;  %v5957_v7 = vrot.slane %v5941_v49, 9 }
 0x125   : > { %6406 = vmatmul.mubr.msk.bf16.gmra.mrb[8].mxu1 %vm658_vm3, %v6914_v47  ;;  %6561 = vmatprep.mubr.msk.bf16.mxu0 %vm658_vm3, %v5910_v29  ;;  %v4337_v47 = vrot.slane %v6967_v28, 5  ;;  %v4418_v29 = vrot.slane %v8273_v39, 5  ;;  %v9274_v39 = vld [vmem:[#allocation7_spill] sm:$0xff]  ;;  %v4345_v25 = vsel %vm7300_vm7, %v4343_v19, %v4344_v6  ;;  %v5947_v28 = vrot.slane %v5931_v24, 9 }
 0x126   : > { %6409 = vmatprep.mubr.msk.bf16.mxu1 %vm658_vm3, %v6915_v30  ;;  %v4336_v30 = vrot.slane %v4334_v61, 4  ;;  %v4348_v49 = vrot.slane %v9274_v39, 5  ;;  %v4425_v61 = vrot.slane %v8325_v58, 5  ;;  %v6968_v39 = vld [vmem:[%s7048_s25 + $0x70] sm:$0xf]  ;;  %v4432_v24 = vrot.slane %v8401_v55, 5 }
 0x127   : > { %v8536_v63 = vsel %vm7300_vm7, %v5957_v7, %v4418_v29  ;;  %v4420_v2 = vrot.slane %v4418_v29, 4  ;;  %v5660_v7 = vld [vmem:[%s7048_s25 + $0x6c] sm:$0xf]  ;;  %v9275_v29 = vld [vmem:[#allocation8_spill] sm:$0xff] }
 0x128   : > { %v4338_v34 = vsel %vm7300_vm7, %v4336_v30, %v4337_v47  ;;  %v4350_v47 = vrot.slane %v4348_v49, 4  ;;  %v6918_v30 = vld [vmem:[%s7048_s25 + $0x78] sm:$0xff]   ;;  %v8567_v16 = vsel %vm7300_vm7, %v5958_v5, %v4425_v61  ;;  %v4427_v18 = vrot.slane %v4425_v61, 4 }
 0x129   : > { %v8543_v4 = vsel %vm7300_vm7, %v4420_v2, %v4421_v9  ;;  %v5963_v9 = vcombine.low %v4342_v23, %v4345_v25  ;;  %v2221_v19 = vshrl.u32 %v5660_v7, 16  ;;  %v2224_v41 = vshll.u32 %v5660_v7, 16 }
 0x12a   : > { %v5974_v43 = vcombine.low %v8536_v63, %v8543_v4  ;;  %v8572_v58 = vsel %vm7300_vm7, %v4427_v18, %v4428_v51  ;;  %v4349_v6 = vsel %vm7300_vm7, %v5947_v28, %v4348_v49  ;;  %v4435_v49 = vrot.slane %v8446_v21, 5  ;;  %v6920_v51 = vld [vmem:[%s7048_s25 + $0x90] sm:$0xff]   ;;  %v6921_v21 = vld [vmem:[%s7048_s25 + $0x9c] sm:$0xff]  }
 0x12b   : > { %v5975_v50 = vcombine.low %v8567_v16, %v8572_v58  ;;  %v2223_v23 = vrot.slane %v2221_v19, 4  ;;  %v2226_v25 = vrot.slane %v2224_v41, 5  ;;  %v4434_v7 = vrot.slane %v4432_v24, 4 }
 0x12c   : > { %6562 = vmatmul.mubr.msk.bf16.gmra.mrb[28].mxu0 %vm658_vm3, %v5911_v46  ;;  %v5962_v46 = vcombine.low %v4335_v35, %v4338_v34  ;;  %v2230_v35 = vshll.u32 %v6968_v39, 16  ;;  %v2234_v34 = vshrl.u32 %v6968_v39, 16 }
 0x12d   : > { %6410 = vmatmul.mubr.msk.bf16.gmra.mrb[12].mxu1 %vm658_vm3, %v6916_v12  ;;  %6567 = vmatprep.mubr.msk.bf16.mxu0 %vm658_vm3, %v5961_v17  ;;  %v4351_v12 = vrot.slane %v9275_v29, 5  ;;  %v5943_v17 = vld [vmem:[%s7048_s25 + $0xcc] sm:$0xe]  ;;  %v8594_v55 = vsel %vm7300_vm7, %v4434_v7, %v4435_v49 }
 0x12e   : > { %6413 = vmatprep.mubr.msk.bf16.mxu1 %vm658_vm3, %v6917_v11  ;;  %v6919_v11 = vld [vmem:[%s7048_s25 + $0x84] sm:$0xff]   ;;  %v5959_v52 = vrot.slane %v5943_v17, 9  ;;  %v2236_v28 = vrot.slane %v2234_v34, 4  ;;  %v6969_v17 = vld [vmem:[%s7048_s25 + $0x74] sm:$0x1] }
 0x12f   : > { %v4352_v2 = vsel %vm7300_vm7, %v4350_v47, %v4351_v12  ;;  %v5666_v47 = vld [vmem:[%s7048_s25 + $0x84] sm:$0xf]  ;;  %v2227_v12 = vor.u32 %v2226_v25, %v2223_v23  ;;  %v6923_v34 = vld [vmem:[%s7048_s25 + $0xb4] sm:$0xff]  }
 0x130   : > { %v8589_v5 = vsel %vm7300_vm7, %v5959_v52, %v4432_v24  ;;  %v5964_v61 = vcombine.low %v4349_v6, %v4352_v2  ;;  %v2272_v18 = vshll.u32 %v5666_v47, 16  ;;  %v5669_v6 = vld [vmem:[%s7048_s25 + $0x90] sm:$0xf]  ;;  %v6922_v2 = vld [vmem:[%s7048_s25 + $0xa8] sm:$0xff]  }
 0x131   : > { %v5976_v29 = vcombine.low %v8589_v5, %v8594_v55  ;;  %v2228_v52 = vrot.slane %v2227_v12, 4  ;;  %v2293_v23 = vshrl.u32 %v5669_v6, 16  ;;  %v2296_v25 = vshll.u32 %v5669_v6, 16 }
 0x132   : > { %v2326_v12 = vshll.u32 %v6972_v60, 16 }
 0x133   : > { %v2298_v14 = vrot.slane %v2296_v25, 5  ;;  %v6975_v25 = vld [vmem:[%s7048_s25 + $0xa4] sm:$0x1] }
 0x134   : > { %6568 = vmatmul.mubr.msk.bf16.vlgmr.msra.gmra.mrb[0].mxu0 %vm658_vm3, %v5962_v46  ;;  %v2232_v46 = vrot.slane %v2230_v35, 5  ;;  %v5672_v35 = vld [vmem:[%s7048_s25 + $0x9c] sm:$0xf]  ;;  %v8636_v6 = vrot.slane %v2326_v12, 5 }
 0x135   : > { %6414 = vmatmul.mubr.msk.bf16.gmra.mrb[16].mxu1 %vm658_vm3, %v6918_v30  ;;  %6571 = vmatprep.mubr.msk.bf16.mxu0 %vm658_vm3, %v5963_v9  ;;  %v2240_v30 = vshll.u32 %v6969_v17, 16  ;;  %v2269_v9 = vshrl.u32 %v5666_v47, 16  ;;  %v2320_v47 = vshll.u32 %v5672_v35, 16  ;;  %v6973_v17 = vld [vmem:[%s7048_s25 + $0x8c] sm:$0x1] }
 0x136   : > { %6417 = vmatprep.mubr.msk.bf16.mxu1 %vm658_vm3, %v6919_v11  ;;  %v2237_v13 = vor.u32 %v2236_v28, %v2232_v46  ;;  %v6970_v11 = vld [vmem:[%s7048_s25 + $0x88] sm:$0xf]  ;;  %v2233_v7 = vsel %vm7074_vm4, %v2228_v52, %v2232_v46 }
 0x137   : > { %v2278_v19 = vshll.u32 %v6970_v11, 16  ;;  %v2282_v41 = vshrl.u32 %v6970_v11, 16  ;;  %v2242_v0 = vrot.slane %v2240_v30, 5  ;;  %v2271_v36 = vrot.slane %v2269_v9, 4 }
 0x138   : > { %v2238_v39 = vrot.slane %v2237_v13, 4  ;;  %v2288_v30 = vshll.u32 %v6973_v17, 16  ;;  %v2295_v9 = vrot.slane %v2293_v23, 4  ;;  %v2322_v11 = vrot.slane %v2320_v47, 5 }
 0x139   : > { %v8613_v24 = vrot.slane %v2278_v19, 5  ;;  %v2284_v49 = vrot.slane %v2282_v41, 4  ;;  %v6924_v19 = vld [vmem:[%s7048_s25 + $0xc0] sm:$0xff]  }
 0x13a   : > { %v2243_v46 = vsel %vm7074_vm4, %v2238_v39, %v2242_v0  ;;  %v5675_v39 = vld [vmem:[%s7048_s25 + $0xa8] sm:$0xf] }
 0x13b   : > { %v2285_v13 = vor.u32 %v2284_v49, %v8613_v24  ;;  %v5693_v41 = vcombine.low %v2233_v7, %v2243_v46  ;;  %v2336_v7 = vshll.u32 %v6975_v25, 16  ;;  %v2344_v45 = vshll.u32 %v5675_v39, 16 }
 0x13c   : > { %6572 = vmatmul.mubr.msk.bf16.gmra.mrb[4].mxu0 %vm658_vm3, %v5964_v61  ;;  %v6971_v61 = vld [vmem:[%s7048_s25 + $0x94] sm:$0xf] }
 0x13d   : > { %6418 = vmatmul.mubr.msk.bf16.gmra.mrb[20].mxu1 %vm658_vm3, %v6920_v51  ;;  %6575 = vmatprep.mubr.msk.bf16.mxu0 %vm658_vm3, %v5965_v10  ;;  %v2274_v10 = vrot.slane %v2272_v18, 5  ;;  %v2302_v51 = vshll.u32 %v6971_v61, 16  ;;  %v2306_v28 = vshrl.u32 %v6971_v61, 16  ;;  %v2286_v0 = vrot.slane %v2285_v13, 4 }
 0x13e   : > { %6421 = vmatprep.mubr.msk.bf16.mxu1 %vm658_vm3, %v6921_v21  ;;  %v2317_v21 = vshrl.u32 %v5672_v35, 16  ;;  %v6974_v35 = vld [vmem:[%s7048_s25 + $0x98] sm:$0x1]  ;;  %v2341_v61 = vshrl.u32 %v5675_v39, 16  ;;  %v5681_v39 = vld [vmem:[%s7048_s25 + $0xc0] sm:$0xf] }
 0x13f   : > { %v2275_v15 = vor.u32 %v2274_v10, %v2271_v36  ;;  %v8633_v26 = vrot.slane %v2302_v51, 5  ;;  %v2290_v36 = vrot.slane %v2288_v30, 5  ;;  %v2299_v10 = vor.u32 %v2298_v14, %v2295_v9  ;;  %v5678_v51 = vld [vmem:[%s7048_s25 + $0xb4] sm:$0xf] }
 0x140   : > { %v2319_v18 = vrot.slane %v2317_v21, 4  ;;  %v2354_v21 = vshrl.u32 %v6976_v27, 16  ;;  %v2365_v20 = vshrl.u32 %v5678_v51, 16  ;;  %v2368_v42 = vshll.u32 %v5678_v51, 16 }
 0x141   : > { %v2276_v52 = vrot.slane %v2275_v15, 4  ;;  %v2291_v46 = vsel %vm7074_vm4, %v2286_v0, %v2290_v36  ;;  %v2300_v15 = vrot.slane %v2299_v10, 4  ;;  %v2338_v30 = vrot.slane %v2336_v7, 5 }
 0x142   : > { %v2323_v23 = vor.u32 %v2322_v11, %v2319_v18  ;;  %v2343_v9 = vrot.slane %v2341_v61, 4  ;;  %v2356_v11 = vrot.slane %v2354_v21, 4  ;;  %v6980_v61 = vld [vmem:[%s7048_s25 + $0xbc] sm:$0x1] }
 0x143   : > { %v2281_v47 = vsel %vm7074_vm4, %v2276_v52, %v8613_v24  ;;  %v2305_v0 = vsel %vm7074_vm4, %v2300_v15, %v8633_v26  ;;  %v2384_v22 = vshll.u32 %v6980_v61, 16 }
 0x144   : > { %6576 = vmatmul.mubr.msk.bf16.gmra.mrb[8].mxu0 %vm658_vm3, %v5966_v40  ;;  %v2330_v40 = vshrl.u32 %v6972_v60, 16  ;;  %v2324_v17 = vrot.slane %v2323_v23, 4  ;;  %v5695_v24 = vcombine.low %v2281_v47, %v2291_v46 }
 0x145   : > { %6422 = vmatmul.mubr.msk.bf16.gmra.mrb[24].mxu1 %vm658_vm3, %v6922_v2  ;;  %6579 = vmatprep.mubr.msk.bf16.mxu0 %vm658_vm3, %v5967_v54  ;;  %v2308_v54 = vrot.slane %v2306_v28, 4 }
 0x146   : > { %6425 = vmatprep.mubr.msk.bf16.mxu1 %vm658_vm3, %v6923_v34  ;;  %v2332_v2 = vrot.slane %v2330_v40, 4  ;;  %v2312_v34 = vshll.u32 %v6974_v35, 16  ;;  %v2329_v10 = vsel %vm7074_vm4, %v2324_v17, %v8636_v6  ;;  %v2410_v17 = vrot.slane %v2408_v57, 5  ;;  %v6031_v57 = vld [vmem:[%s8729_s17 + $0x18] sm:$0xf] }
 0x147   : > { %v2309_v49 = vor.u32 %v2308_v54, %v8633_v26  ;;  %v2346_v54 = vrot.slane %v2344_v45, 5  ;;  %v6978_v26 = vld [vmem:[%s7048_s25 + $0xb0] sm:$0x1] }
 0x148   : > { %v2333_v28 = vor.u32 %v2332_v2, %v8636_v6  ;;  %v2314_v60 = vrot.slane %v2312_v34, 5  ;;  %v2360_v35 = vshll.u32 %v6978_v26, 16  ;;  %v2389_v34 = vshrl.u32 %v5681_v39, 16 }
 0x149   : > { %v2310_v13 = vrot.slane %v2309_v49, 4  ;;  %v2347_v38 = vor.u32 %v2346_v54, %v2343_v9  ;;  %v2392_v6 = vshll.u32 %v5681_v39, 16  ;;  %v6979_v49 = vld [vmem:[%s7048_s25 + $0xc4] sm:$0xf]  ;;  %v8862_v39 = vld [vmem:[%s9207_s2] ss:$0 sm:$0xff] }
 0x14a   : > { %v2334_v14 = vrot.slane %v2333_v28, 4  ;;  %v2398_v23 = vshll.u32 %v6979_v49, 16  ;;  %v2402_v25 = vshrl.u32 %v6979_v49, 16  ;;  %v2362_v45 = vrot.slane %v2360_v35, 5 }
 0x14b   : > { %v2315_v36 = vsel %vm7074_vm4, %v2310_v13, %v2314_v60  ;;  %v2348_v51 = vrot.slane %v2347_v38, 4  ;;  %v2386_v60 = vrot.slane %v2384_v22, 5 }
 0x14c   : > { %6580 = vmatmul.mubr.msk.bf16.gmra.mrb[12].mxu0 %vm658_vm3, %v5968_v53  ;;  %v2350_v53 = vshll.u32 %v6976_v27, 16  ;;  %v2339_v59 = vsel %vm7074_vm4, %v2334_v14, %v2338_v30  ;;  %v5696_v44 = vcombine.low %v2305_v0, %v2315_v36  ;;  %v2391_v27 = vrot.slane %v2389_v34, 4 }
 0x14d   : > { %6426 = vmatmul.mubr.msk.bf16.gmra.mrb[28].mxu1 %vm658_vm3, %v6924_v19  ;;  %6583 = vmatprep.mubr.msk.bf16.mxu0 %vm658_vm3, %v5969_v33  ;;  %v6977_v33 = vld [vmem:[%s7048_s25 + $0xb8] sm:$0xf]  ;;  %v2367_v19 = vrot.slane %v2365_v20, 4  ;;  %v2400_v21 = vrot.slane %v2398_v23, 5  ;;  %v2404_v47 = vrot.slane %v2402_v25, 4 }
 0x14e   : > { %6447 = vmatprep.mubr.msk.bf16.mxu1 %vm658_vm3, %v5693_v41  ;;  %v2374_v12 = vshll.u32 %v6977_v33, 16  ;;  %v2378_v40 = vshrl.u32 %v6977_v33, 16  ;;  %v2352_v18 = vrot.slane %v2350_v53, 5  ;;  %v2370_v41 = vrot.slane %v2368_v42, 5 }
 0x14f   : > { %v2394_v53 = vrot.slane %v2392_v6, 5 }
 0x150   : > { %v2376_v52 = vrot.slane %v2374_v12, 5  ;;  %v2380_v2 = vrot.slane %v2378_v40, 4  ;;  %v2353_v20 = vsel %vm7074_vm4, %v2348_v51, %v2352_v18  ;;  %v2405_v12 = vor.u32 %v2404_v47, %v2400_v21 }
 0x151   : > { %v2395_v33 = vor.u32 %v2394_v53, %v2391_v27 }
 0x152   : > { %v2381_v7 = vor.u32 %v2380_v2, %v2376_v52  ;;  %v2406_v13 = vrot.slane %v2405_v12, 4 }
 0x153   : > { %v2396_v40 = vrot.slane %v2395_v33, 4 }
 0x154   : > { %6584 = vmatmul.mubr.msk.bf16.gmra.mrb[16].mxu0 %vm658_vm3, %v5970_v37  ;;  %v2357_v37 = vor.u32 %v2356_v11, %v2352_v18  ;;  %v2382_v15 = vrot.slane %v2381_v7, 4  ;;  %v2411_v9 = vsel %vm7074_vm4, %v2406_v13, %v2410_v17  ;;  %v6026_v17 = vld [vmem:[%s8729_s17 + $0xc] sm:$0xf] }
 0x155   : > { %6448 = vmatmul.mubr.msk.bf16.vlgmr.msra.gmra.mrb[16].mxu1 %vm658_vm3, %v8442_v1  ;;  %6587 = vmatprep.mubr.msk.bf16.mxu0 %vm658_vm3, %v5971_v3  ;;  %v2371_v1 = vor.u32 %v2370_v41, %v2367_v19  ;;  %v5697_v3 = vcombine.low %v2329_v10, %v2339_v59  ;;  %v2401_v30 = vsel %vm7074_vm4, %v2396_v40, %v2400_v21 }
 0x156   : > { %6451 = vmatprep.mubr.msk.bf16.mxu1 %vm658_vm3, %v5695_v24  ;;  %v2358_v28 = vrot.slane %v2357_v37, 4  ;;  %v2387_v48 = vsel %vm7074_vm4, %v2382_v15, %v2386_v60  ;;  %v5700_v14 = vcombine.low %v2401_v30, %v2411_v9 }
 0x157   : > { %v2372_v46 = vrot.slane %v2371_v1, 4 }
 0x158   : > { %v2363_v42 = vsel %vm7074_vm4, %v2358_v28, %v2362_v45 }
 0x159   : > { %v5698_v62 = vcombine.low %v2353_v20, %v2363_v42 }
 0x15c   : > { %6588 = vmatmul.mubr.msk.bf16.gmra.mrb[20].mxu0 %vm658_vm3, %v5972_v8  ;;  %v2377_v8 = vsel %vm7074_vm4, %v2372_v46, %v2376_v52 }
 0x15d   : > { %6452 = vmatmul.mubr.msk.bf16.gmra.mrb[20].mxu1 %vm658_vm3, %v5696_v44  ;;  %6591 = vmatprep.mubr.msk.bf16.mxu0 %vm658_vm3, %v5973_v56  ;;  %v5699_v56 = vcombine.low %v2377_v8, %v2387_v48 }
 0x15e   : > { %6455 = vmatprep.mubr.msk.bf16.mxu1 %vm658_vm3, %v5697_v3 }
 0x164   : > { %6592 = vmatmul.mubr.msk.bf16.gmra.mrb[24].mxu0 %vm658_vm3, %v5974_v43 }
 0x165   : > { %6456 = vmatmul.mubr.msk.bf16.gmra.mrb[24].mxu1 %vm658_vm3, %v5698_v62  ;;  %6595 = vmatprep.mubr.msk.bf16.mxu0 %vm658_vm3, %v5975_v50 }
 0x166   : > { %6459 = vmatprep.mubr.msk.bf16.mxu1 %vm658_vm3, %v5699_v56 }
 0x16c   : > { %6596 = vmatmul.mubr.msk.bf16.gmra.mrb[28].mxu0 %vm658_vm3, %v5976_v29 }
 0x16d   : > { %6460 = vmatmul.mubr.msk.bf16.gmra.mrb[28].mxu1 %vm658_vm3, %v5700_v14 }
 0x1e8   : > { %v6399_v63 = vpop.f32.mrb[0].mxu1 }
 0x1e9   : > { %v1821_v4 = vpop.f32.mrb[1].mxu1 }
 0x1ea   : > { %v6400_v43 = vpop.f32.mrb[2].mxu1 }
 0x1eb   : > { %v1824_v16 = vpop.f32.mrb[3].mxu1 }
 0x1f0   : > { %v6403_v58 = vpop.f32.mrb[4].mxu1 }
 0x1f1   : > { %v1837_v50 = vpop.f32.mrb[5].mxu1 }
 0x1f2   : > { %v8839_v5 = vpop.f32.mrb[6].mxu1 }
 0x1f3   : > { %v8841_v55 = vpop.f32.mrb[7].mxu1 }
 0x1f8   : > { %v8843_v29 = vpop.f32.mrb[8].mxu1 }
 0x1f9   : > { %v8845_v54 = vpop.f32.mrb[9].mxu1 }
 0x1fa   : > { %v8847_v18 = vpop.f32.mrb[10].mxu1 }
 0x1fb   : > { %v8849_v11 = vpop.f32.mrb[11].mxu1 }
 0x200   : > { %v8851_v24 = vpop.f32.mrb[12].mxu1 }
 0x201   : > { %v8853_v19 = vpop.f32.mrb[13].mxu1 }
 0x202   : > { %v8855_v41 = vpop.f32.mrb[14].mxu1 }
 0x203   : > { %v8857_v52 = vpop.f32.mrb[15].mxu1 }
 0x207   : > { %v6569_v2 = vpop.f32.mrb[0].mxu0 }
 0x208   : > { %v6601_v0 = vadd.f32 %v6569_v2, %v6399_v63  ;;  %v4572_v36 = vpop.f32.mrb[1].mxu0 }
 0x209   : > { %v6602_v10 = vadd.f32 %v4572_v36, %v1821_v4  ;;  %v6570_v59 = vpop.f32.mrb[2].mxu0  ;;  %v6029_v36 = vld [vmem:[%s8729_s17 + $0x14] sm:$0x1] }
 0x20a   : > { %v4740_v38 = vadd.f32 %v6601_v0, %v8862_v39  ;;  %v6603_v37 = vadd.f32 %v6570_v59, %v6400_v43  ;;  %v4575_v26 = vpop.f32.mrb[3].mxu0  ;;  %v6034_v43 = vld [vmem:[%s8729_s17 + $0x20] sm:$0x1] }
 0x20b   : > { %v4738_v35 = vadd.f32 %v6602_v10, %v8862_v39  ;;  %v6604_v34 = vadd.f32 %v4575_v26, %v1824_v16 }
 0x20c   : > { %v4772_v6 = vmax.f32 %v4740_v38, 0.0  ;;  %v4741_v49 = vadd.f32 %v6603_v37, %v8862_v39 }
 0x20d   : > { %v4770_v23 = vmax.f32 %v4738_v35, 0.0  ;;  %v4739_v25 = vadd.f32 %v6604_v34, %v8862_v39 }
 0x20e   : > { %v6110_v1 = vpack.c.bf16 %v4772_v6, %v4772_v6  ;;  %v4773_v7 = vmax.f32 %v4741_v49, 0.0 }
 0x20f   : > { %v6108_v61 = vpack.c.bf16 %v4770_v23, %v4770_v23  ;;  %v4771_v22 = vmax.f32 %v4739_v25, 0.0  ;;  %v6573_v44 = vpop.f32.mrb[4].mxu0 }
 0x210   : > { %v4975_v3 = vshrl.u32 %v6110_v1, 16  ;;  %v4978_v51 = vshll.u32 %v6110_v1, 16  ;;  %v6111_v28 = vpack.c.bf16 %v4773_v7, %v4773_v7  ;;  %v6605_v45 = vadd.f32 %v6573_v44, %v6403_v58  ;;  %v4588_v27 = vpop.f32.mrb[5].mxu0 }
 0x211   : > { %v4958_v53 = vshrl.u32 %v6108_v61, 16  ;;  %v4961_v21 = vshll.u32 %v6108_v61, 16  ;;  %v6109_v47 = vpack.c.bf16 %v4771_v22, %v4771_v22  ;;  %v6606_v46 = vadd.f32 %v4588_v27, %v1837_v50  ;;  %v6574_v15 = vpop.f32.mrb[6].mxu0 }
 0x212   : > { %v4977_v60 = vrot.slane %v4975_v3, 7  ;;  %v4983_v20 = vshrl.u32 %v6111_v28, 16  ;;  %v4986_v42 = vshll.u32 %v6111_v28, 16  ;;  %v4744_v33 = vadd.f32 %v6605_v45, %v8862_v39  ;;  %v4591_v12 = vpop.f32.mrb[7].mxu0 }
 0x213   : > { %v4960_v8 = vrot.slane %v4958_v53, 7  ;;  %v4966_v48 = vshrl.u32 %v6109_v47, 16  ;;  %v4969_v62 = vshll.u32 %v6109_v47, 16  ;;  %v4742_v56 = vadd.f32 %v6606_v46, %v8862_v39  ;;  %v6041_v53 = vld [vmem:[%s8729_s17 + $0x30] sm:$0xf] }
 0x214   : > { %v4980_v40 = vor.u32 %v4978_v51, %v4977_v60  ;;  %v4981_v13 = vrot.slane %v4977_v60, 4  ;;  %v4985_v9 = vrot.slane %v4983_v20, 7  ;;  %v4776_v14 = vmax.f32 %v4744_v33, 0.0 }
 0x215   : > { %v4963_v32 = vor.u32 %v4961_v21, %v4960_v8  ;;  %v4964_v63 = vrot.slane %v4960_v8, 4  ;;  %v4968_v16 = vrot.slane %v4966_v48, 7  ;;  %v4774_v58 = vmax.f32 %v4742_v56, 0.0 }
 0x216   : > { %v5291_v50 = vsel %vm8871_vm13, %v4980_v40, %v6031_v57  ;;  %v4988_v2 = vor.u32 %v4986_v42, %v4985_v9  ;;  %v4990_v0 = vrot.slane %v4985_v9, 4  ;;  %v6114_v10 = vpack.c.bf16 %v4776_v14, %v4776_v14 }
 0x217   : > { %6032 = vst [vmem:[%s8729_s17 + $0x18] sm:$0xf] %v5291_v50  ;;  %v5282_v59 = vsel %vm8871_vm13, %v4963_v32, %v6026_v17  ;;  %v4971_v38 = vor.u32 %v4969_v62, %v4968_v16  ;;  %v4973_v37 = vrot.slane %v4968_v16, 4  ;;  %v6112_v26 = vpack.c.bf16 %v4774_v58, %v4774_v58  ;;  %v6577_v35 = vpop.f32.mrb[8].mxu0 }
 0x218   : > { %6027 = vst [vmem:[%s8729_s17 + $0xc] sm:$0xf] %v5282_v59  ;;  %v4989_v34 = vsel %vm8880_vm14, %v4981_v13, %v4988_v2  ;;  %v5295_v6 = vsel %vm8886_vm15, %v4990_v0, %v6034_v43  ;;  %v5009_v49 = vshrl.u32 %v6114_v10, 16  ;;  %v5012_v23 = vshll.u32 %v6114_v10, 16  ;;  %v4604_v25 = vpop.f32.mrb[9].mxu0 }
 0x219   : > { %6033 = vst.msk [vmem:[%s8729_s17 + $0x1c] sm:$0xf] %vm4802_vm8, %v4989_v34  ;;  %6035 = vst [vmem:[%s8729_s17 + $0x20] sm:$0x1] %v5295_v6  ;;  %v4972_v1 = vsel %vm8880_vm14, %v4964_v63, %v4971_v38  ;;  %v5288_v7 = vsel %vm8886_vm15, %v4973_v37, %v6029_v36  ;;  %v4992_v61 = vshrl.u32 %v6112_v26, 16  ;;  %v4995_v22 = vshll.u32 %v6112_v26, 16 }
 0x21a   : > { %v6578_v44 = vpop.f32.mrb[10].mxu0  ;;  %6028 = vst.msk [vmem:[%s8729_s17 + $0x10] sm:$0xf] %vm4802_vm8, %v4972_v1  ;;  %6030 = vst [vmem:[%s8729_s17 + $0x14] sm:$0x1] %v5288_v7  ;;  %v8912_v3 = vrot.slane %v5009_v49, 7  ;;  %v6607_v51 = vadd.f32 %v6574_v15, %v8839_v5  ;;  %v6608_v28 = vadd.f32 %v4591_v12, %v8841_v55  ;;  %v6609_v45 = vadd.f32 %v6577_v35, %v8843_v29 }
 0x21b   : > { %v4607_v27 = vpop.f32.mrb[11].mxu0  ;;  %v8918_v21 = vrot.slane %v4992_v61, 7  ;;  %v6610_v47 = vadd.f32 %v4604_v25, %v8845_v54  ;;  %v6611_v46 = vadd.f32 %v6578_v44, %v8847_v18  ;;  %v6036_v5 = vld [vmem:[%s8729_s17 + $0x24] sm:$0xf]  ;;  %v6044_v25 = vld [vmem:[%s8729_s17 + $0x38] sm:$0x1] }
 0x21c   : > { %v6612_v60 = vadd.f32 %v4607_v27, %v8849_v11  ;;  %v5014_v20 = vor.u32 %v5012_v23, %v8912_v3  ;;  %v5015_v42 = vrot.slane %v8912_v3, 4  ;;  %v4745_v55 = vadd.f32 %v6607_v51, %v8862_v39  ;;  %v6039_v1 = vld [vmem:[%s8729_s17 + $0x2c] sm:$0x1]  ;;  %v6046_v27 = vld [vmem:[%s8729_s17 + $0x3c] sm:$0xf] }
 0x21d   : > { %v4743_v29 = vadd.f32 %v6608_v28, %v8862_v39  ;;  %v4997_v15 = vor.u32 %v4995_v22, %v8918_v21  ;;  %v4998_v33 = vrot.slane %v8918_v21, 4  ;;  %v4748_v54 = vadd.f32 %v6609_v45, %v8862_v39  ;;  %v6051_v45 = vld [vmem:[%s8729_s17 + $0x48] sm:$0xf] }
 0x21e   : > { %v4746_v18 = vadd.f32 %v6610_v47, %v8862_v39  ;;  %v5305_v11 = vsel %vm8871_vm13, %v5014_v20, %v6041_v53  ;;  %v4777_v12 = vmax.f32 %v4745_v55, 0.0  ;;  %v4749_v8 = vadd.f32 %v6611_v46, %v8862_v39 }
 0x21f   : > { %v4775_v57 = vmax.f32 %v4743_v29, 0.0  ;;  %6042 = vst [vmem:[%s8729_s17 + $0x30] sm:$0xf] %v5305_v11  ;;  %v5298_v48 = vsel %vm8871_vm13, %v4997_v15, %v6036_v5  ;;  %v4780_v62 = vmax.f32 %v4748_v54, 0.0  ;;  %v4747_v40 = vadd.f32 %v6612_v60, %v8862_v39  ;;  %v6581_v13 = vpop.f32.mrb[12].mxu0 }
 0x220   : > { %v4778_v56 = vmax.f32 %v4746_v18, 0.0  ;;  %6037 = vst [vmem:[%s8729_s17 + $0x24] sm:$0xf] %v5298_v48  ;;  %v6115_v17 = vpack.c.bf16 %v4777_v12, %v4777_v12  ;;  %v4781_v14 = vmax.f32 %v4749_v8, 0.0  ;;  %v6613_v32 = vadd.f32 %v6581_v13, %v8851_v24  ;;  %v4620_v63 = vpop.f32.mrb[13].mxu0 }
 0x221   : > { %v6113_v9 = vpack.c.bf16 %v4775_v57, %v4775_v57  ;;  %v6118_v43 = vpack.c.bf16 %v4780_v62, %v4780_v62  ;;  %v4779_v58 = vmax.f32 %v4747_v40, 0.0  ;;  %v6614_v50 = vadd.f32 %v4620_v63, %v8853_v19  ;;  %v6582_v2 = vpop.f32.mrb[14].mxu0 }
 0x222   : > { %v6116_v16 = vpack.c.bf16 %v4778_v56, %v4778_v56  ;;  %v5017_v0 = vshrl.u32 %v6115_v17, 16  ;;  %v5020_v36 = vshll.u32 %v6115_v17, 16  ;;  %v4623_v38 = vpop.f32.mrb[15].mxu0  ;;  %v6119_v49 = vpack.c.bf16 %v4781_v14, %v4781_v14 }
 0x223   : > { %v5000_v10 = vshrl.u32 %v6113_v9, 16  ;;  %v5003_v59 = vshll.u32 %v6113_v9, 16  ;;  %v5043_v37 = vshrl.u32 %v6118_v43, 16  ;;  %v5046_v26 = vshll.u32 %v6118_v43, 16  ;;  %v6054_v43 = vld [vmem:[%s8729_s17 + $0x50] sm:$0x1] }
 0x224   : > { %v5026_v35 = vshrl.u32 %v6116_v16, 16  ;;  %v5029_v34 = vshll.u32 %v6116_v16, 16  ;;  %v5019_v24 = vrot.slane %v5017_v0, 7  ;;  %v6117_v23 = vpack.c.bf16 %v4779_v58, %v4779_v58 }
 0x225   : > { %v5002_v6 = vrot.slane %v5000_v10, 7  ;;  %v5045_v19 = vrot.slane %v5043_v37, 7  ;;  %v4752_v61 = vadd.f32 %v6613_v32, %v8862_v39  ;;  %v4750_v22 = vadd.f32 %v6614_v50, %v8862_v39 }
 0x226   : > { %v8944_v7 = vrot.slane %v5026_v35, 7  ;;  %v5022_v44 = vor.u32 %v5020_v36, %v5019_v24  ;;  %v5024_v3 = vrot.slane %v5019_v24, 4  ;;  %v5051_v11 = vshrl.u32 %v6119_v49, 16 }
 0x227   : > { %v5005_v51 = vor.u32 %v5003_v59, %v5002_v6  ;;  %v5007_v28 = vrot.slane %v5002_v6, 4  ;;  %v5048_v53 = vor.u32 %v5046_v26, %v5045_v19  ;;  %v5049_v21 = vrot.slane %v5045_v19, 4  ;;  %v6585_v60 = vpop.f32.mrb[16].mxu0  ;;  %v6049_v59 = vld [vmem:[%s8729_s17 + $0x44] sm:$0x1] }
 0x228   : > { %v5031_v47 = vor.u32 %v5029_v34, %v8944_v7  ;;  %v5032_v46 = vrot.slane %v8944_v7, 4  ;;  %v5023_v20 = vsel %vm8880_vm14, %v5015_v42, %v5022_v44  ;;  %v5309_v5 = vsel %vm8886_vm15, %v5024_v3, %v6044_v25  ;;  %v6449_v15 = vpop.f32.mrb[16].mxu1  ;;  %v4636_v54 = vpop.f32.mrb[17].mxu0 }
 0x229   : > { %v5006_v55 = vsel %vm8880_vm14, %v4998_v33, %v5005_v51  ;;  %v5302_v29 = vsel %vm8886_vm15, %v5007_v28, %v6039_v1  ;;  %6043 = vst.msk [vmem:[%s8729_s17 + $0x34] sm:$0xf] %vm4802_vm8, %v5023_v20  ;;  %6045 = vst [vmem:[%s8729_s17 + $0x38] sm:$0x1] %v5309_v5  ;;  %v5319_v42 = vsel %vm8871_vm13, %v5048_v53, %v6051_v45  ;;  %v5054_v12 = vshll.u32 %v6119_v49, 16  ;;  %v2611_v33 = vpop.f32.mrb[17].mxu1 }
 0x22a   : > { %6038 = vst.msk [vmem:[%s8729_s17 + $0x28] sm:$0xf] %vm4802_vm8, %v5006_v55  ;;  %6040 = vst [vmem:[%s8729_s17 + $0x2c] sm:$0x1] %v5302_v29  ;;  %v5312_v18 = vsel %vm8871_vm13, %v5031_v47, %v6046_v27  ;;  %v6586_v57 = vpop.f32.mrb[18].mxu0  ;;  %v5034_v8 = vshrl.u32 %v6117_v23, 16  ;;  %v6615_v9 = vadd.f32 %v6582_v2, %v8855_v41  ;;  %v6616_v14 = vadd.f32 %v4623_v38, %v8857_v52 }
 0x22b   : > { %6052 = vst [vmem:[%s8729_s17 + $0x48] sm:$0xf] %v5319_v42  ;;  %6047 = vst [vmem:[%s8729_s17 + $0x3c] sm:$0xf] %v5312_v18  ;;  %v5037_v48 = vshll.u32 %v6117_v23, 16  ;;  %v4784_v62 = vmax.f32 %v4752_v61, 0.0  ;;  %v6617_v32 = vadd.f32 %v6585_v60, %v6449_v15  ;;  %v6618_v0 = vadd.f32 %v4636_v54, %v2611_v33 }
 0x22c   : > { %v4782_v56 = vmax.f32 %v4750_v22, 0.0  ;;  %v6450_v40 = vpop.f32.mrb[18].mxu1  ;;  %v8972_v13 = vpop.f32.mrb[19].mxu0  ;;  %v5053_v17 = vrot.slane %v5051_v11, 7  ;;  %v5036_v16 = vrot.slane %v5034_v8, 7  ;;  %v4753_v37 = vadd.f32 %v6615_v9, %v8862_v39 }
 0x22d   : > { %v8976_v63 = vpop.f32.mrb[19].mxu1  ;;  %v6122_v58 = vpack.c.bf16 %v4784_v62, %v4784_v62  ;;  %v4751_v26 = vadd.f32 %v6616_v14, %v8862_v39  ;;  %v6061_v22 = vld [vmem:[%s8729_s17 + $0x60] sm:$0xf]  ;;  %v4756_v51 = vadd.f32 %v6617_v32, %v8862_v39  ;;  %v4754_v28 = vadd.f32 %v6618_v0, %v8862_v39  ;;  %v6056_v47 = vld [vmem:[%s8729_s17 + $0x54] sm:$0xf] }
 0x22e   : > { %v6120_v50 = vpack.c.bf16 %v4782_v56, %v4782_v56  ;;  %v5056_v36 = vor.u32 %v5054_v12, %v5053_v17  ;;  %v5058_v10 = vrot.slane %v5053_v17, 4  ;;  %v5039_v41 = vor.u32 %v5037_v48, %v5036_v16 }
 0x22f   : > { %v5041_v2 = vrot.slane %v5036_v16, 4  ;;  %v5077_v52 = vshrl.u32 %v6122_v58, 16  ;;  %v5080_v38 = vshll.u32 %v6122_v58, 16  ;;  %v6589_v49 = vpop.f32.mrb[20].mxu0  ;;  %v4785_v19 = vmax.f32 %v4753_v37, 0.0 }
 0x230   : > { %v5057_v35 = vsel %vm8880_vm14, %v5049_v21, %v5056_v36  ;;  %v5323_v34 = vsel %vm8886_vm15, %v5058_v10, %v6054_v43  ;;  %v5060_v24 = vshrl.u32 %v6120_v50, 16  ;;  %v5063_v6 = vshll.u32 %v6120_v50, 16  ;;  %v6453_v7 = vpop.f32.mrb[20].mxu1  ;;  %v8993_v61 = vpop.f32.mrb[21].mxu0  ;;  %v6059_v43 = vld [vmem:[%s8729_s17 + $0x5c] sm:$0x1] }
 0x231   : > { %6053 = vst.msk [vmem:[%s8729_s17 + $0x4c] sm:$0xf] %vm4802_vm8, %v5057_v35  ;;  %6055 = vst [vmem:[%s8729_s17 + $0x50] sm:$0x1] %v5323_v34  ;;  %v5040_v23 = vsel %vm8880_vm14, %v5032_v46, %v5039_v41  ;;  %v5316_v25 = vsel %vm8886_vm15, %v5041_v2, %v6049_v59  ;;  %v5079_v1 = vrot.slane %v5077_v52, 7  ;;  %v4783_v3 = vmax.f32 %v4751_v26, 0.0 }
 0x232   : > { %6048 = vst.msk [vmem:[%s8729_s17 + $0x40] sm:$0xf] %vm4802_vm8, %v5040_v23  ;;  %6050 = vst [vmem:[%s8729_s17 + $0x44] sm:$0x1] %v5316_v25  ;;  %v5062_v44 = vrot.slane %v5060_v24, 7  ;;  %v9001_v45 = vpop.f32.mrb[21].mxu1  ;;  %v6123_v46 = vpack.c.bf16 %v4785_v19, %v4785_v19  ;;  %v6619_v60 = vadd.f32 %v6586_v57, %v6450_v40  ;;  %v6620_v14 = vadd.f32 %v8972_v13, %v8976_v63 }
 0x233   : > { %v9003_v27 = vpop.f32.mrb[22].mxu0  ;;  %v5082_v53 = vor.u32 %v5080_v38, %v5079_v1  ;;  %v5083_v21 = vrot.slane %v5079_v1, 4  ;;  %v9006_v20 = vpop.f32.mrb[22].mxu1  ;;  %v6121_v15 = vpack.c.bf16 %v4783_v3, %v4783_v3  ;;  %v4788_v54 = vmax.f32 %v4756_v51, 0.0  ;;  %v6064_v40 = vld [vmem:[%s8729_s17 + $0x68] sm:$0x1] }
 0x234   : > { %v9008_v5 = vpop.f32.mrb[23].mxu0  ;;  %v5065_v55 = vor.u32 %v5063_v6, %v5062_v44  ;;  %v5066_v29 = vrot.slane %v5062_v44, 4  ;;  %v9010_v42 = vpop.f32.mrb[23].mxu1  ;;  %v5085_v11 = vshrl.u32 %v6123_v46, 16  ;;  %v5088_v12 = vshll.u32 %v6123_v46, 16 }
 0x235   : > { %v5333_v18 = vsel %vm8871_vm13, %v5082_v53, %v6061_v22  ;;  %v4786_v33 = vmax.f32 %v4754_v28, 0.0  ;;  %v5068_v8 = vshrl.u32 %v6121_v15, 16  ;;  %v5071_v48 = vshll.u32 %v6121_v15, 16  ;;  %v6071_v6 = vld [vmem:[%s8729_s17 + $0x78] sm:$0xf] }
 0x236   : > { %6062 = vst [vmem:[%s8729_s17 + $0x60] sm:$0xf] %v5333_v18  ;;  %v5326_v57 = vsel %vm8871_vm13, %v5065_v55, %v6056_v47  ;;  %v6126_v62 = vpack.c.bf16 %v4788_v54, %v4788_v54  ;;  %v5087_v56 = vrot.slane %v5085_v11, 7  ;;  %v4757_v9 = vadd.f32 %v6619_v60, %v8862_v39  ;;  %v6066_v3 = vld [vmem:[%s8729_s17 + $0x6c] sm:$0xf] }
 0x237   : > { %6057 = vst [vmem:[%s8729_s17 + $0x54] sm:$0xf] %v5326_v57  ;;  %v6124_v17 = vpack.c.bf16 %v4786_v33, %v4786_v33  ;;  %v5070_v32 = vrot.slane %v5068_v8, 7  ;;  %v6621_v50 = vadd.f32 %v6589_v49, %v6453_v7  ;;  %v6593_v0 = vpop.f32.mrb[24].mxu0  ;;  %v4755_v23 = vadd.f32 %v6620_v14, %v8862_v39 }
 0x238   : > { %v5111_v16 = vshrl.u32 %v6126_v62, 16  ;;  %v5114_v58 = vshll.u32 %v6126_v62, 16  ;;  %v5090_v36 = vor.u32 %v5088_v12, %v5087_v56  ;;  %v5092_v10 = vrot.slane %v5087_v56, 4  ;;  %v6457_v26 = vpop.f32.mrb[24].mxu1  ;;  %v9023_v41 = vpop.f32.mrb[25].mxu0 }
 0x239   : > { %v5094_v59 = vshrl.u32 %v6124_v17, 16  ;;  %v5097_v37 = vshll.u32 %v6124_v17, 16  ;;  %v5073_v2 = vor.u32 %v5071_v48, %v5070_v32  ;;  %v5075_v52 = vrot.slane %v5070_v32, 4  ;;  %v9027_v63 = vpop.f32.mrb[25].mxu1  ;;  %v9029_v35 = vpop.f32.mrb[26].mxu0 }
 0x23a   : > { %v9025_v38 = vrot.slane %v5111_v16, 7  ;;  %v4789_v13 = vmax.f32 %v4757_v9, 0.0  ;;  %v5091_v34 = vsel %vm8880_vm14, %v5083_v21, %v5090_v36  ;;  %v5337_v24 = vsel %vm8886_vm15, %v5092_v10, %v6064_v40  ;;  %v9039_v25 = vpop.f32.mrb[26].mxu1  ;;  %v9041_v1 = vpop.f32.mrb[27].mxu0  ;;  %v6074_v40 = vld [vmem:[%s8729_s17 + $0x80] sm:$0x1] }
 0x23b   : > { %v9036_v49 = vrot.slane %v5094_v59, 7  ;;  %6063 = vst.msk [vmem:[%s8729_s17 + $0x64] sm:$0xf] %vm4802_vm8, %v5091_v34  ;;  %6065 = vst [vmem:[%s8729_s17 + $0x68] sm:$0x1] %v5337_v24  ;;  %v5074_v19 = vsel %vm8880_vm14, %v5066_v29, %v5073_v2  ;;  %v5330_v7 = vsel %vm8886_vm15, %v5075_v52, %v6059_v43  ;;  %v9053_v51 = vpop.f32.mrb[27].mxu1  ;;  %v4760_v60 = vadd.f32 %v6621_v50, %v8862_v39 }
 0x23c   : > { %v5116_v22 = vor.u32 %v5114_v58, %v9025_v38  ;;  %v5117_v44 = vrot.slane %v9025_v38, 4  ;;  %6058 = vst.msk [vmem:[%s8729_s17 + $0x58] sm:$0xf] %vm4802_vm8, %v5074_v19  ;;  %6060 = vst [vmem:[%s8729_s17 + $0x5c] sm:$0x1] %v5330_v7  ;;  %v6127_v21 = vpack.c.bf16 %v4789_v13, %v4789_v13  ;;  %v4787_v47 = vmax.f32 %v4755_v23, 0.0 }
 0x23d   : > { %v5099_v28 = vor.u32 %v5097_v37, %v9036_v49  ;;  %v5100_v53 = vrot.slane %v9036_v49, 4  ;;  %v6622_v55 = vadd.f32 %v8993_v61, %v9001_v45  ;;  %v6623_v29 = vadd.f32 %v9003_v27, %v9006_v20  ;;  %v6069_v10 = vld [vmem:[%s8729_s17 + $0x74] sm:$0x1] }
 0x23e   : > { %v5347_v46 = vsel %vm8871_vm13, %v5116_v22, %v6071_v6  ;;  %v5119_v54 = vshrl.u32 %v6127_v21, 16  ;;  %v5122_v18 = vshll.u32 %v6127_v21, 16  ;;  %v6125_v11 = vpack.c.bf16 %v4787_v47, %v4787_v47 }
 0x23f   : > { %6072 = vst [vmem:[%s8729_s17 + $0x78] sm:$0xf] %v5347_v46  ;;  %v5340_v15 = vsel %vm8871_vm13, %v5099_v28, %v6066_v3  ;;  %v4792_v12 = vmax.f32 %v4760_v60, 0.0  ;;  %v4758_v33 = vadd.f32 %v6622_v55, %v8862_v39  ;;  %v4761_v57 = vadd.f32 %v6623_v29, %v8862_v39  ;;  %v9075_v45 = vpop.f32.mrb[28].mxu0  ;;  %v6076_v55 = vld [vmem:[%s8729_s17 + $0x84] sm:$0xf] }
 0x240   : > { %6067 = vst [vmem:[%s8729_s17 + $0x6c] sm:$0xf] %v5340_v15  ;;  %v6624_v61 = vadd.f32 %v9008_v5, %v9010_v42  ;;  %v5121_v27 = vrot.slane %v5119_v54, 7  ;;  %v5102_v20 = vshrl.u32 %v6125_v11, 16  ;;  %v5105_v8 = vshll.u32 %v6125_v11, 16  ;;  %v9077_v62 = vpop.f32.mrb[28].mxu1 }
 0x241   : > { %v6625_v48 = vadd.f32 %v6593_v0, %v6457_v26  ;;  %v9079_v56 = vpop.f32.mrb[29].mxu0  ;;  %v6130_v17 = vpack.c.bf16 %v4792_v12, %v4792_v12  ;;  %v4790_v9 = vmax.f32 %v4758_v33, 0.0  ;;  %v4793_v14 = vmax.f32 %v4761_v57, 0.0  ;;  %v9083_v43 = vpop.f32.mrb[29].mxu1  ;;  %v6084_v57 = vld [vmem:[%s8729_s17 + $0x98] sm:$0x1] }
 0x242   : > { %v4759_v32 = vadd.f32 %v6624_v61, %v8862_v39  ;;  %v9085_v5 = vpop.f32.mrb[30].mxu0  ;;  %v5124_v42 = vor.u32 %v5122_v18, %v5121_v27  ;;  %v5126_v16 = vrot.slane %v5121_v27, 4  ;;  %v5104_v58 = vrot.slane %v5102_v20, 7  ;;  %v9088_v0 = vpop.f32.mrb[30].mxu1 }
 0x243   : > { %v4764_v50 = vadd.f32 %v6625_v48, %v8862_v39  ;;  %v9090_v36 = vpop.f32.mrb[31].mxu0  ;;  %v5145_v59 = vshrl.u32 %v6130_v17, 16  ;;  %v5148_v37 = vshll.u32 %v6130_v17, 16  ;;  %v6128_v26 = vpack.c.bf16 %v4790_v9, %v4790_v9  ;;  %v9093_v52 = vpop.f32.mrb[31].mxu1 }
 0x244   : > { %v6131_v2 = vpack.c.bf16 %v4793_v14, %v4793_v14  ;;  %v5125_v38 = vsel %vm8880_vm14, %v5117_v44, %v5124_v42  ;;  %v5351_v13 = vsel %vm8886_vm15, %v5126_v16, %v6074_v40  ;;  %v5107_v34 = vor.u32 %v5105_v8, %v5104_v58  ;;  %v6081_v44 = vld [vmem:[%s8729_s17 + $0x90] sm:$0xf]  ;;  %v6079_v14 = vld [vmem:[%s8729_s17 + $0x8c] sm:$0x1] }
 0x245   : > { %v5109_v24 = vrot.slane %v5104_v58, 4  ;;  %6073 = vst.msk [vmem:[%s8729_s17 + $0x7c] sm:$0xf] %vm4802_vm8, %v5125_v38  ;;  %6075 = vst [vmem:[%s8729_s17 + $0x80] sm:$0x1] %v5351_v13  ;;  %v5147_v6 = vrot.slane %v5145_v59, 7  ;;  %v6627_v54 = vadd.f32 %v9029_v35, %v9039_v25  ;;  %v6628_v16 = vadd.f32 %v9041_v1, %v9053_v51 }
 0x246   : > { %v5128_v49 = vshrl.u32 %v6128_v26, 16  ;;  %v5131_v23 = vshll.u32 %v6128_v26, 16  ;;  %v5153_v19 = vshrl.u32 %v6131_v2, 16  ;;  %v5108_v7 = vsel %vm8880_vm14, %v5100_v53, %v5107_v34  ;;  %v6091_v26 = vld [vmem:[%s8729_s17 + $0xa8] sm:$0xf] }
 0x247   : > { %v5344_v22 = vsel %vm8886_vm15, %v5109_v24, %v6069_v10  ;;  %v5156_v3 = vshll.u32 %v6131_v2, 16  ;;  %v4791_v28 = vmax.f32 %v4759_v32, 0.0  ;;  %6068 = vst.msk [vmem:[%s8729_s17 + $0x70] sm:$0xf] %vm4802_vm8, %v5108_v7  ;;  %v5150_v21 = vor.u32 %v5148_v37, %v5147_v6 }
 0x248   : > { %6070 = vst [vmem:[%s8729_s17 + $0x74] sm:$0x1] %v5344_v22  ;;  %v5151_v47 = vrot.slane %v5147_v6, 4  ;;  %v5130_v46 = vrot.slane %v5128_v49, 7  ;;  %v5155_v60 = vrot.slane %v5153_v19, 7  ;;  %v4796_v15 = vmax.f32 %v4764_v50, 0.0 }
 0x249   : > { %v6129_v29 = vpack.c.bf16 %v4791_v28, %v4791_v28  ;;  %v6626_v53 = vadd.f32 %v9023_v41, %v9027_v63  ;;  %v5361_v18 = vsel %vm8871_vm13, %v5150_v21, %v6081_v44  ;;  %v4765_v25 = vadd.f32 %v6627_v54, %v8862_v39  ;;  %v6086_v28 = vld [vmem:[%s8729_s17 + $0x9c] sm:$0xf]  ;;  %v6094_v21 = vld [vmem:[%s8729_s17 + $0xb0] sm:$0x1] }
 0x24a   : > { %v5133_v11 = vor.u32 %v5131_v23, %v5130_v46  ;;  %v5134_v12 = vrot.slane %v5130_v46, 4  ;;  %v5158_v33 = vor.u32 %v5156_v3, %v5155_v60  ;;  %6082 = vst [vmem:[%s8729_s17 + $0x90] sm:$0xf] %v5361_v18  ;;  %v5160_v61 = vrot.slane %v5155_v60, 4 }
 0x24b   : > { %v5136_v27 = vshrl.u32 %v6129_v29, 16  ;;  %v5139_v20 = vshll.u32 %v6129_v29, 16  ;;  %v6134_v8 = vpack.c.bf16 %v4796_v15, %v4796_v15  ;;  %v4762_v35 = vadd.f32 %v6626_v53, %v8862_v39 }
 0x24c   : > { %v5354_v41 = vsel %vm8871_vm13, %v5133_v11, %v6076_v55  ;;  %v5159_v63 = vsel %vm8880_vm14, %v5151_v47, %v5158_v33  ;;  %v5365_v48 = vsel %vm8886_vm15, %v5160_v61, %v6084_v57  ;;  %v4797_v42 = vmax.f32 %v4765_v25, 0.0 }
 0x24d   : > { %6077 = vst [vmem:[%s8729_s17 + $0x84] sm:$0xf] %v5354_v41  ;;  %6083 = vst.msk [vmem:[%s8729_s17 + $0x94] sm:$0xf] %vm4802_vm8, %v5159_v63  ;;  %v5138_v40 = vrot.slane %v5136_v27, 7  ;;  %v5179_v17 = vshrl.u32 %v6134_v8, 16  ;;  %v6629_v58 = vadd.f32 %v9075_v45, %v9077_v62  ;;  %v6630_v37 = vadd.f32 %v9079_v56, %v9083_v43 }
 0x24e   : > { %v5182_v9 = vshll.u32 %v6134_v8, 16  ;;  %6085 = vst [vmem:[%s8729_s17 + $0x98] sm:$0x1] %v5365_v48  ;;  %v4794_v32 = vmax.f32 %v4762_v35, 0.0  ;;  %v6135_v38 = vpack.c.bf16 %v4797_v42, %v4797_v42  ;;  %v4763_v13 = vadd.f32 %v6628_v16, %v8862_v39  ;;  %v6101_v8 = vld [vmem:[%s8729_s17 + $0xc0] sm:$0xf] }
 0x24f   : > { %v5141_v50 = vor.u32 %v5139_v20, %v5138_v40  ;;  %v5143_v10 = vrot.slane %v5138_v40, 4  ;;  %v5181_v59 = vrot.slane %v5179_v17, 7  ;;  %v4768_v34 = vadd.f32 %v6629_v58, %v8862_v39  ;;  %v6089_v20 = vld [vmem:[%s8729_s17 + $0xa4] sm:$0x1]  ;;  %v6096_v16 = vld [vmem:[%s8729_s17 + $0xb4] sm:$0xf] }
 0x250   : > { %v6132_v2 = vpack.c.bf16 %v4794_v32, %v4794_v32  ;;  %v5187_v43 = vshrl.u32 %v6135_v38, 16  ;;  %v5190_v24 = vshll.u32 %v6135_v38, 16  ;;  %v4795_v49 = vmax.f32 %v4763_v13, 0.0 }
 0x251   : > { %v5142_v1 = vsel %vm8880_vm14, %v5134_v12, %v5141_v50  ;;  %v5358_v51 = vsel %vm8886_vm15, %v5143_v10, %v6079_v14  ;;  %v5184_v45 = vor.u32 %v5182_v9, %v5181_v59  ;;  %v4800_v23 = vmax.f32 %v4768_v34, 0.0 }
 0x252   : > { %6078 = vst.msk [vmem:[%s8729_s17 + $0x88] sm:$0xf] %vm4802_vm8, %v5142_v1  ;;  %6080 = vst [vmem:[%s8729_s17 + $0x8c] sm:$0x1] %v5358_v51  ;;  %v5162_v62 = vshrl.u32 %v6132_v2, 16  ;;  %v5165_v56 = vshll.u32 %v6132_v2, 16  ;;  %v4766_v19 = vadd.f32 %v6630_v37, %v8862_v39  ;;  %v6631_v44 = vadd.f32 %v9085_v5, %v9088_v0 }
 0x253   : > { %v5375_v6 = vsel %vm8871_vm13, %v5184_v45, %v6091_v26  ;;  %v5189_v22 = vrot.slane %v5187_v43, 7  ;;  %v6632_v3 = vadd.f32 %v9090_v36, %v9093_v52  ;;  %v6133_v47 = vpack.c.bf16 %v4795_v49, %v4795_v49  ;;  %v6104_v45 = vld [vmem:[%s8729_s17 + $0xc8] sm:$0x1] }
 0x254   : > { %6092 = vst [vmem:[%s8729_s17 + $0xa8] sm:$0xf] %v5375_v6  ;;  %v5164_v7 = vrot.slane %v5162_v62, 7  ;;  %v6138_v46 = vpack.c.bf16 %v4800_v23, %v4800_v23  ;;  %v4798_v60 = vmax.f32 %v4766_v19, 0.0  ;;  %v5185_v55 = vrot.slane %v5181_v59, 4 }
 0x255   : > { %v5192_v15 = vor.u32 %v5190_v24, %v5189_v22  ;;  %v5194_v53 = vrot.slane %v5189_v22, 4  ;;  %v5170_v54 = vshrl.u32 %v6133_v47, 16  ;;  %v5173_v18 = vshll.u32 %v6133_v47, 16  ;;  %v6099_v62 = vld [vmem:[%s8729_s17 + $0xbc] sm:$0x1] }
 0x256   : > { %v5167_v29 = vor.u32 %v5165_v56, %v5164_v7  ;;  %v5213_v5 = vshrl.u32 %v6138_v46, 16  ;;  %v5216_v0 = vshll.u32 %v6138_v46, 16  ;;  %v6136_v12 = vpack.c.bf16 %v4798_v60, %v4798_v60 }
 0x257   : > { %v5193_v52 = vsel %vm8880_vm14, %v5185_v55, %v5192_v15  ;;  %v5379_v11 = vsel %vm8886_vm15, %v5194_v53, %v6094_v21  ;;  %v5172_v33 = vrot.slane %v5170_v54, 7  ;;  %v4769_v61 = vadd.f32 %v6631_v44, %v8862_v39 }
 0x258   : > { %v5368_v36 = vsel %vm8871_vm13, %v5167_v29, %v6086_v28  ;;  %6093 = vst.msk [vmem:[%s8729_s17 + $0xac] sm:$0xf] %vm4802_vm8, %v5193_v52  ;;  %6095 = vst [vmem:[%s8729_s17 + $0xb0] sm:$0x1] %v5379_v11  ;;  %v5215_v57 = vrot.slane %v5213_v5, 7  ;;  %v4767_v27 = vadd.f32 %v6632_v3, %v8862_v39  ;;  %v5196_v41 = vshrl.u32 %v6136_v12, 16 }
 0x259   : > { %6087 = vst [vmem:[%s8729_s17 + $0x9c] sm:$0xf] %v5368_v36  ;;  %v5168_v63 = vrot.slane %v5164_v7, 4  ;;  %v5175_v35 = vor.u32 %v5173_v18, %v5172_v33  ;;  %v5177_v25 = vrot.slane %v5172_v33, 4  ;;  %v5199_v17 = vshll.u32 %v6136_v12, 16 }
 0x25a   : > { %v5218_v48 = vor.u32 %v5216_v0, %v5215_v57  ;;  %v5198_v40 = vrot.slane %v5196_v41, 7  ;;  %v4801_v9 = vmax.f32 %v4769_v61, 0.0  ;;  %v4799_v14 = vmax.f32 %v4767_v27, 0.0 }
 0x25b   : > { %v5176_v32 = vsel %vm8880_vm14, %v5168_v63, %v5175_v35  ;;  %v5372_v39 = vsel %vm8886_vm15, %v5177_v25, %v6089_v20  ;;  %v5219_v1 = vrot.slane %v5215_v57, 4 }
 0x25c   : > { %v5389_v42 = vsel %vm8871_vm13, %v5218_v48, %v6101_v8  ;;  %6088 = vst.msk [vmem:[%s8729_s17 + $0xa0] sm:$0xf] %vm4802_vm8, %v5176_v32  ;;  %6090 = vst [vmem:[%s8729_s17 + $0xa4] sm:$0x1] %v5372_v39  ;;  %v5201_v58 = vor.u32 %v5199_v17, %v5198_v40  ;;  %v6139_v50 = vpack.c.bf16 %v4801_v9, %v4801_v9  ;;  %v5202_v51 = vrot.slane %v5198_v40, 4 }
 0x25d   : > { %6102 = vst [vmem:[%s8729_s17 + $0xc0] sm:$0xf] %v5389_v42  ;;  %v6137_v10 = vpack.c.bf16 %v4799_v14, %v4799_v14 }
 0x25e   : > { %v5382_v59 = vsel %vm8871_vm13, %v5201_v58, %v6096_v16  ;;  %v5221_v37 = vshrl.u32 %v6139_v50, 16  ;;  %v5224_v38 = vshll.u32 %v6139_v50, 16 }
 0x25f   : > { %v5204_v26 = vshrl.u32 %v6137_v10, 16  ;;  %6097 = vst [vmem:[%s8729_s17 + $0xb4] sm:$0xf] %v5382_v59  ;;  %v5207_v34 = vshll.u32 %v6137_v10, 16 }
 0x260   : > { %v5223_v2 = vrot.slane %v5221_v37, 7 }
 0x261   : > { %v5206_v13 = vrot.slane %v5204_v26, 7 }
 0x262   : > { %v5226_v56 = vor.u32 %v5224_v38, %v5223_v2  ;;  %v5228_v43 = vrot.slane %v5223_v2, 4 }
 0x263   : > { %v5209_v24 = vor.u32 %v5207_v34, %v5206_v13  ;;  %v5211_v31 = vrot.slane %v5206_v13, 4 }
 0x264   : > { %v5227_v6 = vsel %vm8880_vm14, %v5219_v1, %v5226_v56  ;;  %v5393_v49 = vsel %vm8886_vm15, %v5228_v43, %v6104_v45 }
 0x265   : > { %v5210_v23 = vsel %vm8880_vm14, %v5202_v51, %v5209_v24  ;;  %v5386_v19 = vsel %vm8886_vm15, %v5211_v31, %v6099_v62  ;;  %6103 = vst.msk [vmem:[%s8729_s17 + $0xc4] sm:$0xf] %vm4802_vm8, %v5227_v6  ;;  %6105 = vst [vmem:[%s8729_s17 + $0xc8] sm:$0x1] %v5393_v49 }
 0x266   : > { %6098 = vst.msk [vmem:[%s8729_s17 + $0xb8] sm:$0xf] %vm4802_vm8, %v5210_v23  ;;  %6100 = vst [vmem:[%s8729_s17 + $0xbc] sm:$0x1] %v5386_v19 }
 0x267 PF: > { %s13_s12 = sadd.s32 1, %s6988_s12  }
 0x268   : > { %p10_p4 = scmp.ge.s32.totalorder %s13_s12, 4  }
 0x26a   :  { %12 = sbr.rel (!%p10_p4) target bundleno = 1 (0x1), region = 73 }

</bundles_post_ra>
